<compile_context>
chip_gen: v7x
topology: tpu7x:2x2x1
jax: 0.10.0
libtpu: 0.0.40
codegen_flags: <defaults>
</compile_context>

<pallas_src>
import functools
import math

import jax
import jax.numpy as jnp
from jax import lax
from jax.experimental import pallas as pl
from jax.experimental.pallas import tpu as pltpu


# ----------------------------- fused model kernel ---------------------------

def _model_kernel(
    # activations (2-D, batch folded into rows; conv taps pre-concatenated)
    x_enc_ref, x_dec_ref,
    # embeddings
    enc_emb_W_ref, pe_enc_ref, dec_emb_W_ref, pe_dec_ref,
    # additive attention masks (block-diagonal over (head, batch))
    m_enc_ref, m_dec_ref, m_cross_ref,
    # encoder layers (stacked over e_layers)
    e_Wqkv_ref, e_bqkv_ref, e_Wo_ref, e_bo_ref,
    e_W1_ref, e_b1_ref, e_W2_ref, e_b2_ref, e_ln_g_ref, e_ln_b_ref,
    enc_ng_ref, enc_nb_ref,
    # decoder layers (stacked over d_layers)
    ds_Wqkv_ref, ds_bqkv_ref, ds_Wo_ref, ds_bo_ref,
    dc_Wqkv_ref, dc_bqkv_ref, dc_Wo_ref, dc_bo_ref,
    d_W1_ref, d_b1_ref, d_W2_ref, d_b2_ref, d_ln_g_ref, d_ln_b_ref,
    dec_ng_ref, dec_nb_ref,
    # output projection (lane-padded)
    proj_W_ref, proj_b_ref,
    # output (lane-padded)
    out_ref,
    *, B, L_enc, L_dec, d_model, n_heads, e_layers, d_layers, ln_eps):

  D = d_model
  H = n_heads
  E = D // H
  f32 = jnp.float32
  scale = 1.0 / math.sqrt(E)

  def mm(a, b):
    return jnp.dot(a, b, preferred_element_type=f32)

  def layer_norm(z, g, b):
    mu = jnp.mean(z, axis=-1, keepdims=True)
    var = jnp.mean((z - mu) ** 2, axis=-1, keepdims=True)
    return (z - mu) * lax.rsqrt(var + ln_eps) * g + b

  def ffn(x, W1, b1, W2, b2):
    h = jnp.maximum(mm(x, W1) + b1, 0.0)        # conv1 (1x1) + relu
    return mm(h, W2) + b2                       # conv2 (1x1)

  def stack_heads(x):
    # (B*L, D) -> (H*B*L, E); rows ordered (head, batch, position).
    return jnp.concatenate([x[:, h * E:(h + 1) * E] for h in range(H)], axis=0)

  def attention(xq, xkv, Wqkv, bqkv, Wo, bo, Lq, Lk, mask, is_self):
    # Block-diagonal batched multi-head attention:
    #   one fused QKV (or Q + fused KV) matmul, one (H*B*Lq, H*B*Lk) score
    #   matmul with additive block-diag (+causal) mask, one softmax, one PV
    #   matmul, H out-projection matmuls accumulated per head.
    BLq = B * Lq
    if is_self:
      qkv = mm(xq, Wqkv) + bqkv                 # (B*Lq, 3D)
      q, k, v = qkv[:, :D], qkv[:, D:2 * D], qkv[:, 2 * D:]
    else:
      q = mm(xq, Wqkv[:, :D]) + bqkv[:, :D]     # (B*Lq, D)
      kv = mm(xkv, Wqkv[:, D:]) + bqkv[:, D:]   # (B*Lk, 2D)
      k, v = kv[:, :D], kv[:, D:]
    q_s, k_s, v_s = stack_heads(q), stack_heads(k), stack_heads(v)
    s = lax.dot_general(q_s, k_s, (((1,), (1,)), ((), ())),
                        preferred_element_type=f32) * scale + mask
    s = s - jnp.max(s, axis=-1, keepdims=True)
    p = jnp.exp(s)                              # masked entries -> exactly 0
    p = p * pl.reciprocal(jnp.sum(p, axis=-1, keepdims=True), approx=True)
    o_s = mm(p, v_s)                            # (H*B*Lq, E)
    # per-head folded output projection (all slices sublane-aligned)
    acc = mm(o_s[0:BLq, :], Wo[0:E, :])
    for h in range(1, H):
      acc = acc + mm(o_s[h * BLq:(h + 1) * BLq, :], Wo[h * E:(h + 1) * E, :])
    return acc + bo                             # (B*Lq, D)

  # ------------------------------- encoder ----------------------------------
  enc = mm(x_enc_ref[...], enc_emb_W_ref[...]) + pe_enc_ref[...]
  for i in range(e_layers):
    ln_g, ln_b = e_ln_g_ref[i], e_ln_b_ref[i]   # (2, D)
    new = attention(enc, enc, e_Wqkv_ref[i], e_bqkv_ref[i],
                    e_Wo_ref[i], e_bo_ref[i], L_enc, L_enc,
                    m_enc_ref[...], True)
    x1 = layer_norm(enc + new, ln_g[0:1, :], ln_b[0:1, :])
    y = ffn(x1, e_W1_ref[i], e_b1_ref[i], e_W2_ref[i], e_b2_ref[i])
    enc = layer_norm(x1 + y, ln_g[1:2, :], ln_b[1:2, :])
  enc = layer_norm(enc, enc_ng_ref[...], enc_nb_ref[...])

  # ------------------------------- decoder ----------------------------------
  dec = mm(x_dec_ref[...], dec_emb_W_ref[...]) + pe_dec_ref[...]
  for i in range(d_layers):
    ln_g, ln_b = d_ln_g_ref[i], d_ln_b_ref[i]   # (3, D)
    sa = attention(dec, dec, ds_Wqkv_ref[i], ds_bqkv_ref[i],
                   ds_Wo_ref[i], ds_bo_ref[i], L_dec, L_dec,
                   m_dec_ref[...], True)
    x1 = layer_norm(dec + sa, ln_g[0:1, :], ln_b[0:1, :])
    ca = attention(x1, enc, dc_Wqkv_ref[i], dc_bqkv_ref[i],
                   dc_Wo_ref[i], dc_bo_ref[i], L_dec, L_enc,
                   m_cross_ref[...], False)
    x2 = layer_norm(x1 + ca, ln_g[1:2, :], ln_b[1:2, :])
    y = ffn(x2, d_W1_ref[i], d_b1_ref[i], d_W2_ref[i], d_b2_ref[i])
    dec = layer_norm(x2 + y, ln_g[2:3, :], ln_b[2:3, :])
  dec = layer_norm(dec, dec_ng_ref[...], dec_nb_ref[...])

  out = mm(dec, proj_W_ref[...]) + proj_b_ref[...]   # (B*L_dec, 128-padded)
  out_ref[...] = out.astype(out_ref.dtype)


# ------------------------------ wrapper --------------------------------------

_FACTOR = 5  # ProbAttention factor


def _block_mask(B, H, Lq, Lk, causal):
  # Additive mask for the (head, batch)-stacked score matrix.
  i = jnp.arange(H * B * Lq, dtype=jnp.int32)[:, None]
  j = jnp.arange(H * B * Lk, dtype=jnp.int32)[None, :]
  ok = (i // Lq) == (j // Lk)           # same (head, batch) block
  if causal:
    ok = ok & ((j % Lk) <= (i % Lq))    # causal within the block
  return jnp.where(ok, 0.0, -1e30).astype(jnp.float32)


@functools.partial(jax.jit, static_argnums=(3, 4))
def model_forward(params, x_enc, x_dec, pred_len, n_heads):
  B, L_enc, C = x_enc.shape
  L_dec = x_dec.shape[1]
  D = params["proj_W"].shape[0]
  e_layers = params["e_Wqkv"].shape[0]
  d_layers = params["ds_Wqkv"].shape[0]
  H = n_heads

  # Encoder ProbAttention degenerates to full attention only when
  # u = factor*ceil(ln L) >= L (true for these tiny lengths).
  assert _FACTOR * math.ceil(math.log(L_enc)) >= L_enc, (
      "sparse top-u ProbAttention path not implemented")

  def conv_taps(x, L):
    # Circular Conv1d(kernel=3) taps precomputed in plain JAX:
    # columns = [x[t-1], x[t], x[t+1]]  (circular over time, per batch).
    x_prev = jnp.roll(x, 1, axis=1)
    x_next = jnp.roll(x, -1, axis=1)
    return jnp.concatenate([x_prev, x, x_next], axis=-1).reshape(B * L, 3 * C)

  x_enc_cat = conv_taps(x_enc, L_enc).astype(jnp.float32)
  x_dec_cat = conv_taps(x_dec, L_dec).astype(jnp.float32)
  pe_enc = jnp.tile(params["pe_enc"], (B, 1))          # (B*L_enc, D)
  pe_dec = jnp.tile(params["pe_dec"], (B, 1))          # (B*L_dec, D)
  m_enc = _block_mask(B, H, L_enc, L_enc, False)
  m_dec = _block_mask(B, H, L_dec, L_dec, True)
  m_cross = _block_mask(B, H, L_dec, L_enc, False)

  # lane-dense output slab: pad the final projection to >=128 columns
  out_cols = max(128, ((C + 127) // 128) * 128)
  proj_W = jnp.zeros((D, out_cols), jnp.float32).at[:, :C].set(params["proj_W"])
  proj_b = jnp.zeros((1, out_cols), jnp.float32).at[:, :C].set(params["proj_b"])

  inputs = [
      x_enc_cat, x_dec_cat,
      params["enc_emb_W"].reshape(3 * C, D), pe_enc,
      params["dec_emb_W"].reshape(3 * C, D), pe_dec,
      m_enc, m_dec, m_cross,
      params["e_Wqkv"], params["e_bqkv"], params["e_Wo"], params["e_bo"],
      params["e_W1"], params["e_b1"], params["e_W2"], params["e_b2"],
      params["e_ln_g"], params["e_ln_b"],
      params["enc_norm_g"], params["enc_norm_b"],
      params["ds_Wqkv"], params["ds_bqkv"], params["ds_Wo"], params["ds_bo"],
      params["dc_Wqkv"], params["dc_bqkv"], params["dc_Wo"], params["dc_bo"],
      params["d_W1"], params["d_b1"], params["d_W2"], params["d_b2"],
      params["d_ln_g"], params["d_ln_b"],
      params["dec_norm_g"], params["dec_norm_b"],
      proj_W, proj_b,
  ]
  kern = functools.partial(
      _model_kernel, B=B, L_enc=L_enc, L_dec=L_dec, d_model=D,
      n_heads=H, e_layers=e_layers, d_layers=d_layers, ln_eps=1e-5)

  out2d = pl.pallas_call(
      kern,
      out_shape=jax.ShapeDtypeStruct((B * L_dec, out_cols), jnp.float32),
      # single grid point, whole arrays resident in VMEM (total < 1 MB)
      in_specs=[pl.BlockSpec(memory_space=pltpu.MemorySpace.VMEM)] * len(inputs),
      out_specs=pl.BlockSpec(memory_space=pltpu.MemorySpace.VMEM),
  )(*inputs)
  return out2d[:, :C].reshape(B, L_dec, C)[:, -pred_len:, :]


# ------------------------------ parameter init -------------------------------

def _init_linear(key, din, dout):
  k1, k2 = jax.random.split(key)
  s = 1.0 / math.sqrt(din)
  W = jax.random.uniform(k1, (din, dout), jnp.float32, -s, s)
  b = jax.random.uniform(k2, (dout,), jnp.float32, -s, s)
  return W, b


def _init_attention(key, D):
  ks = jax.random.split(key, 4)
  Wq, bq = _init_linear(ks[0], D, D)
  Wk, bk = _init_linear(ks[1], D, D)
  Wv, bv = _init_linear(ks[2], D, D)
  Wo, bo = _init_linear(ks[3], D, D)
  Wqkv = jnp.concatenate([Wq, Wk, Wv], axis=1)          # (D, 3D)
  bqkv = jnp.concatenate([bq, bk, bv])[None, :]         # (1, 3D)
  return Wqkv, bqkv, Wo, bo[None, :]


def _init_token_conv(key, c_in, D):
  # Conv1d(c_in, D, kernel=3, circular, bias=False) as 3 stacked (c_in, D)
  # taps: tap0 -> x[t-1], tap1 -> x[t], tap2 -> x[t+1].
  std = math.sqrt(2.0 / (3 * c_in))
  return jax.random.normal(key, (3, c_in, D), jnp.float32) * std


def _make_positional_embedding(L, D):
  pos = jnp.arange(L, dtype=jnp.float32)[:, None]
  div = jnp.exp(jnp.arange(0, D, 2, dtype=jnp.float32) * (-math.log(10000.0) / D))
  pe = jnp.zeros((L, D), jnp.float32)
  pe = pe.at[:, 0::2].set(jnp.sin(pos * div))
  pe = pe.at[:, 1::2].set(jnp.cos(pos * div))
  return pe


def init_params(key, c_in, d_model, n_heads, d_ff, e_layers, d_layers,
                enc_len, dec_len):
  D, F = d_model, d_ff
  k_e_emb, k_d_emb, k_proj, k_enc, k_dec = jax.random.split(key, 5)

  def enc_layer(k):
    ka, k1, k2 = jax.random.split(k, 3)
    Wqkv, bqkv, Wo, bo = _init_attention(ka, D)
    W1, b1 = _init_linear(k1, D, F)
    W2, b2 = _init_linear(k2, F, D)
    return dict(Wqkv=Wqkv, bqkv=bqkv, Wo=Wo, bo=bo,
                W1=W1, b1=b1[None, :], W2=W2, b2=b2[None, :])

  def dec_layer(k):
    ks_, kc, k1, k2 = jax.random.split(k, 4)
    sWqkv, sbqkv, sWo, sbo = _init_attention(ks_, D)
    cWqkv, cbqkv, cWo, cbo = _init_attention(kc, D)
    W1, b1 = _init_linear(k1, D, F)
    W2, b2 = _init_linear(k2, F, D)
    return dict(sWqkv=sWqkv, sbqkv=sbqkv, sWo=sWo, sbo=sbo,
                cWqkv=cWqkv, cbqkv=cbqkv, cWo=cWo, cbo=cbo,
                W1=W1, b1=b1[None, :], W2=W2, b2=b2[None, :])

  enc_ls = [enc_layer(jax.random.fold_in(k_enc, i)) for i in range(e_layers)]
  dec_ls = [dec_layer(jax.random.fold_in(k_dec, i)) for i in range(d_layers)]

  def stack(layers, name):
    return jnp.stack([l[name] for l in layers], axis=0)

  proj_W, proj_b = _init_linear(k_proj, D, c_in)

  return dict(
      enc_emb_W=_init_token_conv(k_e_emb, c_in, D),
      dec_emb_W=_init_token_conv(k_d_emb, c_in, D),
      pe_enc=_make_positional_embedding(enc_len, D),
      pe_dec=_make_positional_embedding(dec_len, D),
      # encoder stack
      e_Wqkv=stack(enc_ls, "Wqkv"), e_bqkv=stack(enc_ls, "bqkv"),
      e_Wo=stack(enc_ls, "Wo"), e_bo=stack(enc_ls, "bo"),
      e_W1=stack(enc_ls, "W1"), e_b1=stack(enc_ls, "b1"),
      e_W2=stack(enc_ls, "W2"), e_b2=stack(enc_ls, "b2"),
      e_ln_g=jnp.ones((e_layers, 2, D), jnp.float32),
      e_ln_b=jnp.zeros((e_layers, 2, D), jnp.float32),
      enc_norm_g=jnp.ones((1, D), jnp.float32),
      enc_norm_b=jnp.zeros((1, D), jnp.float32),
      # decoder stack
      ds_Wqkv=stack(dec_ls, "sWqkv"), ds_bqkv=stack(dec_ls, "sbqkv"),
      ds_Wo=stack(dec_ls, "sWo"), ds_bo=stack(dec_ls, "sbo"),
      dc_Wqkv=stack(dec_ls, "cWqkv"), dc_bqkv=stack(dec_ls, "cbqkv"),
      dc_Wo=stack(dec_ls, "cWo"), dc_bo=stack(dec_ls, "cbo"),
      d_W1=stack(dec_ls, "W1"), d_b1=stack(dec_ls, "b1"),
      d_W2=stack(dec_ls, "W2"), d_b2=stack(dec_ls, "b2"),
      d_ln_g=jnp.ones((d_layers, 3, D), jnp.float32),
      d_ln_b=jnp.zeros((d_layers, 3, D), jnp.float32),
      dec_norm_g=jnp.ones((1, D), jnp.float32),
      dec_norm_b=jnp.zeros((1, D), jnp.float32),
      proj_W=proj_W, proj_b=proj_b[None, :],
  )


# ----------------------------------- main ------------------------------------

if __name__ == "__main__":
  # config (small): num_series=4, d_model=32, n_heads=4, d_ff=64,
  # e_layers=2, d_layers=1, factor=5, dropout=0.0, activation='relu',
  # embed_type=0, distil=False, output_attention=False, forecast_horizon=4
  B, enc_len, dec_len = 2, 8, 8
  c_in, d_model, n_heads, d_ff = 4, 32, 4, 64
  e_layers, d_layers, pred_len = 2, 1, 4

  key = jax.random.PRNGKey(0)
  k_param, k_enc, k_dec = jax.random.split(key, 3)
  params = init_params(k_param, c_in, d_model, n_heads, d_ff,
                       e_layers, d_layers, enc_len, dec_len)

  x_enc = jax.random.normal(k_enc, (B, enc_len, c_in), jnp.float32)
  x_dec = jax.random.normal(k_dec, (B, dec_len, c_in), jnp.float32)

  out = model_forward(params, x_enc, x_dec, pred_len, n_heads)
  out = jax.block_until_ready(out)
  assert out.shape == (B, pred_len, c_in)
  assert bool(jnp.all(jnp.isfinite(out)))
  print("KERNEL_OK")
</pallas_src>

<mosaic_0001>
module attributes {stable_mosaic.version = 11 : i64} {
  func.func @_model_kernel(%arg0: memref<16x12xf32, #tpu.memory_space<vmem>>, %arg1: memref<16x12xf32, #tpu.memory_space<vmem>>, %arg2: memref<12x32xf32, #tpu.memory_space<vmem>>, %arg3: memref<16x32xf32, #tpu.memory_space<vmem>>, %arg4: memref<12x32xf32, #tpu.memory_space<vmem>>, %arg5: memref<16x32xf32, #tpu.memory_space<vmem>>, %arg6: memref<64x64xf32, #tpu.memory_space<vmem>>, %arg7: memref<64x64xf32, #tpu.memory_space<vmem>>, %arg8: memref<64x64xf32, #tpu.memory_space<vmem>>, %arg9: memref<2x32x96xf32, #tpu.memory_space<vmem>>, %arg10: memref<2x1x96xf32, #tpu.memory_space<vmem>>, %arg11: memref<2x32x32xf32, #tpu.memory_space<vmem>>, %arg12: memref<2x1x32xf32, #tpu.memory_space<vmem>>, %arg13: memref<2x32x64xf32, #tpu.memory_space<vmem>>, %arg14: memref<2x1x64xf32, #tpu.memory_space<vmem>>, %arg15: memref<2x64x32xf32, #tpu.memory_space<vmem>>, %arg16: memref<2x1x32xf32, #tpu.memory_space<vmem>>, %arg17: memref<2x2x32xf32, #tpu.memory_space<vmem>>, %arg18: memref<2x2x32xf32, #tpu.memory_space<vmem>>, %arg19: memref<1x32xf32, #tpu.memory_space<vmem>>, %arg20: memref<1x32xf32, #tpu.memory_space<vmem>>, %arg21: memref<1x32x96xf32, #tpu.memory_space<vmem>>, %arg22: memref<1x1x96xf32, #tpu.memory_space<vmem>>, %arg23: memref<1x32x32xf32, #tpu.memory_space<vmem>>, %arg24: memref<1x1x32xf32, #tpu.memory_space<vmem>>, %arg25: memref<1x32x96xf32, #tpu.memory_space<vmem>>, %arg26: memref<1x1x96xf32, #tpu.memory_space<vmem>>, %arg27: memref<1x32x32xf32, #tpu.memory_space<vmem>>, %arg28: memref<1x1x32xf32, #tpu.memory_space<vmem>>, %arg29: memref<1x32x64xf32, #tpu.memory_space<vmem>>, %arg30: memref<1x1x64xf32, #tpu.memory_space<vmem>>, %arg31: memref<1x64x32xf32, #tpu.memory_space<vmem>>, %arg32: memref<1x1x32xf32, #tpu.memory_space<vmem>>, %arg33: memref<1x3x32xf32, #tpu.memory_space<vmem>>, %arg34: memref<1x3x32xf32, #tpu.memory_space<vmem>>, %arg35: memref<1x32xf32, #tpu.memory_space<vmem>>, %arg36: memref<1x32xf32, #tpu.memory_space<vmem>>, %arg37: memref<32x128xf32, #tpu.memory_space<vmem>>, %arg38: memref<1x128xf32, #tpu.memory_space<vmem>>, %arg39: memref<16x128xf32, #tpu.memory_space<vmem>>) attributes {dimension_semantics = [], scalar_prefetch = 0 : i64, scratch_operands = 0 : i64, tpu.core_type = #tpu.core_type<tc>} {
    %c0 = arith.constant 0 : index
    %c0_0 = arith.constant 0 : index
    %0 = vector.load %arg0[%c0, %c0_0] : memref<16x12xf32, #tpu.memory_space<vmem>>, vector<16x12xf32>
    %c0_1 = arith.constant 0 : index
    %c0_2 = arith.constant 0 : index
    %1 = vector.load %arg2[%c0_1, %c0_2] : memref<12x32xf32, #tpu.memory_space<vmem>>, vector<12x32xf32>
    %cst = arith.constant dense<0.000000e+00> : vector<16x32xf32>
    %2 = tpu.matmul %0, %1, %cst {dimension_numbers = #tpu.dot_dimension_numbers<[1], [0], [0], [1], [0, 0, 1, 1], [], []>} : vector<16x12xf32>, vector<12x32xf32>, vector<16x32xf32> -> vector<16x32xf32>
    %c0_3 = arith.constant 0 : index
    %c0_4 = arith.constant 0 : index
    %3 = vector.load %arg3[%c0_3, %c0_4] : memref<16x32xf32, #tpu.memory_space<vmem>>, vector<16x32xf32>
    %4 = arith.addf %2, %3 : vector<16x32xf32>
    %c0_5 = arith.constant 0 : index
    %c0_6 = arith.constant 0 : index
    %c0_7 = arith.constant 0 : index
    %5 = vector.load %arg17[%c0_5, %c0_6, %c0_7] : memref<2x2x32xf32, #tpu.memory_space<vmem>>, vector<1x2x32xf32>
    %6 = vector.shape_cast %5 : vector<1x2x32xf32> to vector<2x32xf32>
    %c0_8 = arith.constant 0 : index
    %c0_9 = arith.constant 0 : index
    %c0_10 = arith.constant 0 : index
    %7 = vector.load %arg18[%c0_8, %c0_9, %c0_10] : memref<2x2x32xf32, #tpu.memory_space<vmem>>, vector<1x2x32xf32>
    %8 = vector.shape_cast %7 : vector<1x2x32xf32> to vector<2x32xf32>
    %c0_11 = arith.constant 0 : index
    %c0_12 = arith.constant 0 : index
    %c0_13 = arith.constant 0 : index
    %9 = vector.load %arg9[%c0_11, %c0_12, %c0_13] : memref<2x32x96xf32, #tpu.memory_space<vmem>>, vector<1x32x96xf32>
    %10 = vector.shape_cast %9 : vector<1x32x96xf32> to vector<32x96xf32>
    %c0_14 = arith.constant 0 : index
    %c0_15 = arith.constant 0 : index
    %c0_16 = arith.constant 0 : index
    %11 = vector.load %arg10[%c0_14, %c0_15, %c0_16] : memref<2x1x96xf32, #tpu.memory_space<vmem>>, vector<1x1x96xf32>
    %12 = vector.shape_cast %11 : vector<1x1x96xf32> to vector<1x96xf32>
    %c0_17 = arith.constant 0 : index
    %c0_18 = arith.constant 0 : index
    %c0_19 = arith.constant 0 : index
    %13 = vector.load %arg11[%c0_17, %c0_18, %c0_19] : memref<2x32x32xf32, #tpu.memory_space<vmem>>, vector<1x32x32xf32>
    %14 = vector.shape_cast %13 : vector<1x32x32xf32> to vector<32x32xf32>
    %c0_20 = arith.constant 0 : index
    %c0_21 = arith.constant 0 : index
    %c0_22 = arith.constant 0 : index
    %15 = vector.load %arg12[%c0_20, %c0_21, %c0_22] : memref<2x1x32xf32, #tpu.memory_space<vmem>>, vector<1x1x32xf32>
    %16 = vector.shape_cast %15 : vector<1x1x32xf32> to vector<1x32xf32>
    %c0_23 = arith.constant 0 : index
    %c0_24 = arith.constant 0 : index
    %17 = vector.load %arg6[%c0_23, %c0_24] : memref<64x64xf32, #tpu.memory_space<vmem>>, vector<64x64xf32>
    %cst_25 = arith.constant dense<0.000000e+00> : vector<16x96xf32>
    %18 = tpu.matmul %4, %10, %cst_25 {dimension_numbers = #tpu.dot_dimension_numbers<[1], [0], [0], [1], [0, 0, 1, 1], [], []>} : vector<16x32xf32>, vector<32x96xf32>, vector<16x96xf32> -> vector<16x96xf32>
    %19 = vector.broadcast %12 : vector<1x96xf32> to vector<16x96xf32>
    %20 = arith.addf %18, %19 : vector<16x96xf32>
    %21 = vector.extract_strided_slice %20 {offsets = [0, 0], sizes = [16, 32], strides = [1, 1]} : vector<16x96xf32> to vector<16x32xf32>
    %22 = vector.extract_strided_slice %20 {offsets = [0, 32], sizes = [16, 32], strides = [1, 1]} : vector<16x96xf32> to vector<16x32xf32>
    %23 = vector.extract_strided_slice %20 {offsets = [0, 64], sizes = [16, 32], strides = [1, 1]} : vector<16x96xf32> to vector<16x32xf32>
    %24 = vector.extract_strided_slice %21 {offsets = [0, 0], sizes = [16, 8], strides = [1, 1]} : vector<16x32xf32> to vector<16x8xf32>
    %25 = vector.extract_strided_slice %21 {offsets = [0, 8], sizes = [16, 8], strides = [1, 1]} : vector<16x32xf32> to vector<16x8xf32>
    %26 = vector.extract_strided_slice %21 {offsets = [0, 16], sizes = [16, 8], strides = [1, 1]} : vector<16x32xf32> to vector<16x8xf32>
    %27 = vector.extract_strided_slice %21 {offsets = [0, 24], sizes = [16, 8], strides = [1, 1]} : vector<16x32xf32> to vector<16x8xf32>
    %28 = tpu.concatenate %24, %25, %26, %27 in 0 : vector<16x8xf32>, vector<16x8xf32>, vector<16x8xf32>, vector<16x8xf32> -> vector<64x8xf32>
    %29 = vector.extract_strided_slice %22 {offsets = [0, 0], sizes = [16, 8], strides = [1, 1]} : vector<16x32xf32> to vector<16x8xf32>
    %30 = vector.extract_strided_slice %22 {offsets = [0, 8], sizes = [16, 8], strides = [1, 1]} : vector<16x32xf32> to vector<16x8xf32>
    %31 = vector.extract_strided_slice %22 {offsets = [0, 16], sizes = [16, 8], strides = [1, 1]} : vector<16x32xf32> to vector<16x8xf32>
    %32 = vector.extract_strided_slice %22 {offsets = [0, 24], sizes = [16, 8], strides = [1, 1]} : vector<16x32xf32> to vector<16x8xf32>
    %33 = tpu.concatenate %29, %30, %31, %32 in 0 : vector<16x8xf32>, vector<16x8xf32>, vector<16x8xf32>, vector<16x8xf32> -> vector<64x8xf32>
    %34 = vector.extract_strided_slice %23 {offsets = [0, 0], sizes = [16, 8], strides = [1, 1]} : vector<16x32xf32> to vector<16x8xf32>
    %35 = vector.extract_strided_slice %23 {offsets = [0, 8], sizes = [16, 8], strides = [1, 1]} : vector<16x32xf32> to vector<16x8xf32>
    %36 = vector.extract_strided_slice %23 {offsets = [0, 16], sizes = [16, 8], strides = [1, 1]} : vector<16x32xf32> to vector<16x8xf32>
    %37 = vector.extract_strided_slice %23 {offsets = [0, 24], sizes = [16, 8], strides = [1, 1]} : vector<16x32xf32> to vector<16x8xf32>
    %38 = tpu.concatenate %34, %35, %36, %37 in 0 : vector<16x8xf32>, vector<16x8xf32>, vector<16x8xf32>, vector<16x8xf32> -> vector<64x8xf32>
    %cst_26 = arith.constant dense<0.000000e+00> : vector<64x64xf32>
    %39 = tpu.matmul %28, %33, %cst_26 {dimension_numbers = #tpu.dot_dimension_numbers<[1], [1], [0], [0], [0, 0, 1, 0], [], []>} : vector<64x8xf32>, vector<64x8xf32>, vector<64x64xf32> -> vector<64x64xf32>
    %cst_27 = arith.constant 0.353553385 : f32
    %40 = vector.broadcast %cst_27 : f32 to vector<64x64xf32>
    %41 = arith.mulf %39, %40 : vector<64x64xf32>
    %42 = arith.addf %41, %17 : vector<64x64xf32>
    %cst_28 = arith.constant dense<0xFF800000> : vector<64xf32>
    %43 = vector.multi_reduction <maximumf>, %42, %cst_28 [1] : vector<64x64xf32> to vector<64xf32>
    %44 = vector.shape_cast %43 : vector<64xf32> to vector<64x1xf32>
    %45 = vector.broadcast %44 : vector<64x1xf32> to vector<64x64xf32>
    %46 = arith.subf %42, %45 : vector<64x64xf32>
    %47 = math.exp %46 : vector<64x64xf32>
    %cst_29 = arith.constant dense<0.000000e+00> : vector<64xf32>
    %48 = vector.multi_reduction <add>, %47, %cst_29 [1] : vector<64x64xf32> to vector<64xf32>
    %49 = vector.shape_cast %48 : vector<64xf32> to vector<64x1xf32>
    %50 = tpu.reciprocal %49 {approx = true} : vector<64x1xf32> -> vector<64x1xf32>
    %51 = vector.broadcast %50 : vector<64x1xf32> to vector<64x64xf32>
    %52 = arith.mulf %47, %51 : vector<64x64xf32>
    %cst_30 = arith.constant dense<0.000000e+00> : vector<64x8xf32>
    %53 = tpu.matmul %52, %38, %cst_30 {dimension_numbers = #tpu.dot_dimension_numbers<[1], [0], [0], [1], [0, 0, 1, 1], [], []>} : vector<64x64xf32>, vector<64x8xf32>, vector<64x8xf32> -> vector<64x8xf32>
    %54 = vector.extract_strided_slice %53 {offsets = [0, 0], sizes = [16, 8], strides = [1, 1]} : vector<64x8xf32> to vector<16x8xf32>
    %55 = vector.extract_strided_slice %14 {offsets = [0, 0], sizes = [8, 32], strides = [1, 1]} : vector<32x32xf32> to vector<8x32xf32>
    %cst_31 = arith.constant dense<0.000000e+00> : vector<16x32xf32>
    %56 = tpu.matmul %54, %55, %cst_31 {dimension_numbers = #tpu.dot_dimension_numbers<[1], [0], [0], [1], [0, 0, 1, 1], [], []>} : vector<16x8xf32>, vector<8x32xf32>, vector<16x32xf32> -> vector<16x32xf32>
    %57 = vector.extract_strided_slice %53 {offsets = [16, 0], sizes = [16, 8], strides = [1, 1]} : vector<64x8xf32> to vector<16x8xf32>
    %58 = vector.extract_strided_slice %14 {offsets = [8, 0], sizes = [8, 32], strides = [1, 1]} : vector<32x32xf32> to vector<8x32xf32>
    %cst_32 = arith.constant dense<0.000000e+00> : vector<16x32xf32>
    %59 = tpu.matmul %57, %58, %cst_32 {dimension_numbers = #tpu.dot_dimension_numbers<[1], [0], [0], [1], [0, 0, 1, 1], [], []>} : vector<16x8xf32>, vector<8x32xf32>, vector<16x32xf32> -> vector<16x32xf32>
    %60 = arith.addf %56, %59 : vector<16x32xf32>
    %61 = vector.extract_strided_slice %53 {offsets = [32, 0], sizes = [16, 8], strides = [1, 1]} : vector<64x8xf32> to vector<16x8xf32>
    %62 = vector.extract_strided_slice %14 {offsets = [16, 0], sizes = [8, 32], strides = [1, 1]} : vector<32x32xf32> to vector<8x32xf32>
    %cst_33 = arith.constant dense<0.000000e+00> : vector<16x32xf32>
    %63 = tpu.matmul %61, %62, %cst_33 {dimension_numbers = #tpu.dot_dimension_numbers<[1], [0], [0], [1], [0, 0, 1, 1], [], []>} : vector<16x8xf32>, vector<8x32xf32>, vector<16x32xf32> -> vector<16x32xf32>
    %64 = arith.addf %60, %63 : vector<16x32xf32>
    %65 = vector.extract_strided_slice %53 {offsets = [48, 0], sizes = [16, 8], strides = [1, 1]} : vector<64x8xf32> to vector<16x8xf32>
    %66 = vector.extract_strided_slice %14 {offsets = [24, 0], sizes = [8, 32], strides = [1, 1]} : vector<32x32xf32> to vector<8x32xf32>
    %cst_34 = arith.constant dense<0.000000e+00> : vector<16x32xf32>
    %67 = tpu.matmul %65, %66, %cst_34 {dimension_numbers = #tpu.dot_dimension_numbers<[1], [0], [0], [1], [0, 0, 1, 1], [], []>} : vector<16x8xf32>, vector<8x32xf32>, vector<16x32xf32> -> vector<16x32xf32>
    %68 = arith.addf %64, %67 : vector<16x32xf32>
    %69 = vector.broadcast %16 : vector<1x32xf32> to vector<16x32xf32>
    %70 = arith.addf %68, %69 : vector<16x32xf32>
    %71 = arith.addf %4, %70 : vector<16x32xf32>
    %72 = vector.extract_strided_slice %6 {offsets = [0, 0], sizes = [1, 32], strides = [1, 1]} : vector<2x32xf32> to vector<1x32xf32>
    %73 = vector.extract_strided_slice %8 {offsets = [0, 0], sizes = [1, 32], strides = [1, 1]} : vector<2x32xf32> to vector<1x32xf32>
    %cst_35 = arith.constant dense<0.000000e+00> : vector<16xf32>
    %74 = vector.multi_reduction <add>, %71, %cst_35 [1] : vector<16x32xf32> to vector<16xf32>
    %75 = vector.shape_cast %74 : vector<16xf32> to vector<16x1xf32>
    %cst_36 = arith.constant 3.200000e+01 : f32
    %76 = vector.broadcast %cst_36 : f32 to vector<16x1xf32>
    %77 = arith.divf %75, %76 : vector<16x1xf32>
    %78 = vector.broadcast %77 : vector<16x1xf32> to vector<16x32xf32>
    %79 = arith.subf %71, %78 : vector<16x32xf32>
    %80 = arith.mulf %79, %79 : vector<16x32xf32>
    %cst_37 = arith.constant dense<0.000000e+00> : vector<16xf32>
    %81 = vector.multi_reduction <add>, %80, %cst_37 [1] : vector<16x32xf32> to vector<16xf32>
    %82 = vector.shape_cast %81 : vector<16xf32> to vector<16x1xf32>
    %cst_38 = arith.constant 3.200000e+01 : f32
    %83 = vector.broadcast %cst_38 : f32 to vector<16x1xf32>
    %84 = arith.divf %82, %83 : vector<16x1xf32>
    %85 = vector.broadcast %77 : vector<16x1xf32> to vector<16x32xf32>
    %86 = arith.subf %71, %85 : vector<16x32xf32>
    %cst_39 = arith.constant 9.99999974E-6 : f32
    %87 = vector.broadcast %cst_39 : f32 to vector<16x1xf32>
    %88 = arith.addf %84, %87 : vector<16x1xf32>
    %89 = math.rsqrt %88 : vector<16x1xf32>
    %90 = vector.broadcast %89 : vector<16x1xf32> to vector<16x32xf32>
    %91 = arith.mulf %86, %90 : vector<16x32xf32>
    %92 = vector.broadcast %72 : vector<1x32xf32> to vector<16x32xf32>
    %93 = arith.mulf %91, %92 : vector<16x32xf32>
    %94 = vector.broadcast %73 : vector<1x32xf32> to vector<16x32xf32>
    %95 = arith.addf %93, %94 : vector<16x32xf32>
    %c0_40 = arith.constant 0 : index
    %c0_41 = arith.constant 0 : index
    %c0_42 = arith.constant 0 : index
    %96 = vector.load %arg13[%c0_40, %c0_41, %c0_42] : memref<2x32x64xf32, #tpu.memory_space<vmem>>, vector<1x32x64xf32>
    %97 = vector.shape_cast %96 : vector<1x32x64xf32> to vector<32x64xf32>
    %c0_43 = arith.constant 0 : index
    %c0_44 = arith.constant 0 : index
    %c0_45 = arith.constant 0 : index
    %98 = vector.load %arg14[%c0_43, %c0_44, %c0_45] : memref<2x1x64xf32, #tpu.memory_space<vmem>>, vector<1x1x64xf32>
    %99 = vector.shape_cast %98 : vector<1x1x64xf32> to vector<1x64xf32>
    %c0_46 = arith.constant 0 : index
    %c0_47 = arith.constant 0 : index
    %c0_48 = arith.constant 0 : index
    %100 = vector.load %arg15[%c0_46, %c0_47, %c0_48] : memref<2x64x32xf32, #tpu.memory_space<vmem>>, vector<1x64x32xf32>
    %101 = vector.shape_cast %100 : vector<1x64x32xf32> to vector<64x32xf32>
    %c0_49 = arith.constant 0 : index
    %c0_50 = arith.constant 0 : index
    %c0_51 = arith.constant 0 : index
    %102 = vector.load %arg16[%c0_49, %c0_50, %c0_51] : memref<2x1x32xf32, #tpu.memory_space<vmem>>, vector<1x1x32xf32>
    %103 = vector.shape_cast %102 : vector<1x1x32xf32> to vector<1x32xf32>
    %cst_52 = arith.constant dense<0.000000e+00> : vector<16x64xf32>
    %104 = tpu.matmul %95, %97, %cst_52 {dimension_numbers = #tpu.dot_dimension_numbers<[1], [0], [0], [1], [0, 0, 1, 1], [], []>} : vector<16x32xf32>, vector<32x64xf32>, vector<16x64xf32> -> vector<16x64xf32>
    %105 = vector.broadcast %99 : vector<1x64xf32> to vector<16x64xf32>
    %106 = arith.addf %104, %105 : vector<16x64xf32>
    %cst_53 = arith.constant 0.000000e+00 : f32
    %107 = vector.broadcast %cst_53 : f32 to vector<16x64xf32>
    %108 = arith.maximumf %106, %107 : vector<16x64xf32>
    %cst_54 = arith.constant dense<0.000000e+00> : vector<16x32xf32>
    %109 = tpu.matmul %108, %101, %cst_54 {dimension_numbers = #tpu.dot_dimension_numbers<[1], [0], [0], [1], [0, 0, 1, 1], [], []>} : vector<16x64xf32>, vector<64x32xf32>, vector<16x32xf32> -> vector<16x32xf32>
    %110 = vector.broadcast %103 : vector<1x32xf32> to vector<16x32xf32>
    %111 = arith.addf %109, %110 : vector<16x32xf32>
    %112 = arith.addf %95, %111 : vector<16x32xf32>
    %113 = vector.extract_strided_slice %6 {offsets = [1, 0], sizes = [1, 32], strides = [1, 1]} : vector<2x32xf32> to vector<1x32xf32>
    %114 = vector.extract_strided_slice %8 {offsets = [1, 0], sizes = [1, 32], strides = [1, 1]} : vector<2x32xf32> to vector<1x32xf32>
    %cst_55 = arith.constant dense<0.000000e+00> : vector<16xf32>
    %115 = vector.multi_reduction <add>, %112, %cst_55 [1] : vector<16x32xf32> to vector<16xf32>
    %116 = vector.shape_cast %115 : vector<16xf32> to vector<16x1xf32>
    %cst_56 = arith.constant 3.200000e+01 : f32
    %117 = vector.broadcast %cst_56 : f32 to vector<16x1xf32>
    %118 = arith.divf %116, %117 : vector<16x1xf32>
    %119 = vector.broadcast %118 : vector<16x1xf32> to vector<16x32xf32>
    %120 = arith.subf %112, %119 : vector<16x32xf32>
    %121 = arith.mulf %120, %120 : vector<16x32xf32>
    %cst_57 = arith.constant dense<0.000000e+00> : vector<16xf32>
    %122 = vector.multi_reduction <add>, %121, %cst_57 [1] : vector<16x32xf32> to vector<16xf32>
    %123 = vector.shape_cast %122 : vector<16xf32> to vector<16x1xf32>
    %cst_58 = arith.constant 3.200000e+01 : f32
    %124 = vector.broadcast %cst_58 : f32 to vector<16x1xf32>
    %125 = arith.divf %123, %124 : vector<16x1xf32>
    %126 = vector.broadcast %118 : vector<16x1xf32> to vector<16x32xf32>
    %127 = arith.subf %112, %126 : vector<16x32xf32>
    %cst_59 = arith.constant 9.99999974E-6 : f32
    %128 = vector.broadcast %cst_59 : f32 to vector<16x1xf32>
    %129 = arith.addf %125, %128 : vector<16x1xf32>
    %130 = math.rsqrt %129 : vector<16x1xf32>
    %131 = vector.broadcast %130 : vector<16x1xf32> to vector<16x32xf32>
    %132 = arith.mulf %127, %131 : vector<16x32xf32>
    %133 = vector.broadcast %113 : vector<1x32xf32> to vector<16x32xf32>
    %134 = arith.mulf %132, %133 : vector<16x32xf32>
    %135 = vector.broadcast %114 : vector<1x32xf32> to vector<16x32xf32>
    %136 = arith.addf %134, %135 : vector<16x32xf32>
    %c1 = arith.constant 1 : index
    %c0_60 = arith.constant 0 : index
    %c0_61 = arith.constant 0 : index
    %137 = vector.load %arg17[%c1, %c0_60, %c0_61] : memref<2x2x32xf32, #tpu.memory_space<vmem>>, vector<1x2x32xf32>
    %138 = vector.shape_cast %137 : vector<1x2x32xf32> to vector<2x32xf32>
    %c1_62 = arith.constant 1 : index
    %c0_63 = arith.constant 0 : index
    %c0_64 = arith.constant 0 : index
    %139 = vector.load %arg18[%c1_62, %c0_63, %c0_64] : memref<2x2x32xf32, #tpu.memory_space<vmem>>, vector<1x2x32xf32>
    %140 = vector.shape_cast %139 : vector<1x2x32xf32> to vector<2x32xf32>
    %c1_65 = arith.constant 1 : index
    %c0_66 = arith.constant 0 : index
    %c0_67 = arith.constant 0 : index
    %141 = vector.load %arg9[%c1_65, %c0_66, %c0_67] : memref<2x32x96xf32, #tpu.memory_space<vmem>>, vector<1x32x96xf32>
    %142 = vector.shape_cast %141 : vector<1x32x96xf32> to vector<32x96xf32>
    %c1_68 = arith.constant 1 : index
    %c0_69 = arith.constant 0 : index
    %c0_70 = arith.constant 0 : index
    %143 = vector.load %arg10[%c1_68, %c0_69, %c0_70] : memref<2x1x96xf32, #tpu.memory_space<vmem>>, vector<1x1x96xf32>
    %144 = vector.shape_cast %143 : vector<1x1x96xf32> to vector<1x96xf32>
    %c1_71 = arith.constant 1 : index
    %c0_72 = arith.constant 0 : index
    %c0_73 = arith.constant 0 : index
    %145 = vector.load %arg11[%c1_71, %c0_72, %c0_73] : memref<2x32x32xf32, #tpu.memory_space<vmem>>, vector<1x32x32xf32>
    %146 = vector.shape_cast %145 : vector<1x32x32xf32> to vector<32x32xf32>
    %c1_74 = arith.constant 1 : index
    %c0_75 = arith.constant 0 : index
    %c0_76 = arith.constant 0 : index
    %147 = vector.load %arg12[%c1_74, %c0_75, %c0_76] : memref<2x1x32xf32, #tpu.memory_space<vmem>>, vector<1x1x32xf32>
    %148 = vector.shape_cast %147 : vector<1x1x32xf32> to vector<1x32xf32>
    %c0_77 = arith.constant 0 : index
    %c0_78 = arith.constant 0 : index
    %149 = vector.load %arg6[%c0_77, %c0_78] : memref<64x64xf32, #tpu.memory_space<vmem>>, vector<64x64xf32>
    %cst_79 = arith.constant dense<0.000000e+00> : vector<16x96xf32>
    %150 = tpu.matmul %136, %142, %cst_79 {dimension_numbers = #tpu.dot_dimension_numbers<[1], [0], [0], [1], [0, 0, 1, 1], [], []>} : vector<16x32xf32>, vector<32x96xf32>, vector<16x96xf32> -> vector<16x96xf32>
    %151 = vector.broadcast %144 : vector<1x96xf32> to vector<16x96xf32>
    %152 = arith.addf %150, %151 : vector<16x96xf32>
    %153 = vector.extract_strided_slice %152 {offsets = [0, 0], sizes = [16, 32], strides = [1, 1]} : vector<16x96xf32> to vector<16x32xf32>
    %154 = vector.extract_strided_slice %152 {offsets = [0, 32], sizes = [16, 32], strides = [1, 1]} : vector<16x96xf32> to vector<16x32xf32>
    %155 = vector.extract_strided_slice %152 {offsets = [0, 64], sizes = [16, 32], strides = [1, 1]} : vector<16x96xf32> to vector<16x32xf32>
    %156 = vector.extract_strided_slice %153 {offsets = [0, 0], sizes = [16, 8], strides = [1, 1]} : vector<16x32xf32> to vector<16x8xf32>
    %157 = vector.extract_strided_slice %153 {offsets = [0, 8], sizes = [16, 8], strides = [1, 1]} : vector<16x32xf32> to vector<16x8xf32>
    %158 = vector.extract_strided_slice %153 {offsets = [0, 16], sizes = [16, 8], strides = [1, 1]} : vector<16x32xf32> to vector<16x8xf32>
    %159 = vector.extract_strided_slice %153 {offsets = [0, 24], sizes = [16, 8], strides = [1, 1]} : vector<16x32xf32> to vector<16x8xf32>
    %160 = tpu.concatenate %156, %157, %158, %159 in 0 : vector<16x8xf32>, vector<16x8xf32>, vector<16x8xf32>, vector<16x8xf32> -> vector<64x8xf32>
    %161 = vector.extract_strided_slice %154 {offsets = [0, 0], sizes = [16, 8], strides = [1, 1]} : vector<16x32xf32> to vector<16x8xf32>
    %162 = vector.extract_strided_slice %154 {offsets = [0, 8], sizes = [16, 8], strides = [1, 1]} : vector<16x32xf32> to vector<16x8xf32>
    %163 = vector.extract_strided_slice %154 {offsets = [0, 16], sizes = [16, 8], strides = [1, 1]} : vector<16x32xf32> to vector<16x8xf32>
    %164 = vector.extract_strided_slice %154 {offsets = [0, 24], sizes = [16, 8], strides = [1, 1]} : vector<16x32xf32> to vector<16x8xf32>
    %165 = tpu.concatenate %161, %162, %163, %164 in 0 : vector<16x8xf32>, vector<16x8xf32>, vector<16x8xf32>, vector<16x8xf32> -> vector<64x8xf32>
    %166 = vector.extract_strided_slice %155 {offsets = [0, 0], sizes = [16, 8], strides = [1, 1]} : vector<16x32xf32> to vector<16x8xf32>
    %167 = vector.extract_strided_slice %155 {offsets = [0, 8], sizes = [16, 8], strides = [1, 1]} : vector<16x32xf32> to vector<16x8xf32>
    %168 = vector.extract_strided_slice %155 {offsets = [0, 16], sizes = [16, 8], strides = [1, 1]} : vector<16x32xf32> to vector<16x8xf32>
    %169 = vector.extract_strided_slice %155 {offsets = [0, 24], sizes = [16, 8], strides = [1, 1]} : vector<16x32xf32> to vector<16x8xf32>
    %170 = tpu.concatenate %166, %167, %168, %169 in 0 : vector<16x8xf32>, vector<16x8xf32>, vector<16x8xf32>, vector<16x8xf32> -> vector<64x8xf32>
    %cst_80 = arith.constant dense<0.000000e+00> : vector<64x64xf32>
    %171 = tpu.matmul %160, %165, %cst_80 {dimension_numbers = #tpu.dot_dimension_numbers<[1], [1], [0], [0], [0, 0, 1, 0], [], []>} : vector<64x8xf32>, vector<64x8xf32>, vector<64x64xf32> -> vector<64x64xf32>
    %cst_81 = arith.constant 0.353553385 : f32
    %172 = vector.broadcast %cst_81 : f32 to vector<64x64xf32>
    %173 = arith.mulf %171, %172 : vector<64x64xf32>
    %174 = arith.addf %173, %149 : vector<64x64xf32>
    %cst_82 = arith.constant dense<0xFF800000> : vector<64xf32>
    %175 = vector.multi_reduction <maximumf>, %174, %cst_82 [1] : vector<64x64xf32> to vector<64xf32>
    %176 = vector.shape_cast %175 : vector<64xf32> to vector<64x1xf32>
    %177 = vector.broadcast %176 : vector<64x1xf32> to vector<64x64xf32>
    %178 = arith.subf %174, %177 : vector<64x64xf32>
    %179 = math.exp %178 : vector<64x64xf32>
    %cst_83 = arith.constant dense<0.000000e+00> : vector<64xf32>
    %180 = vector.multi_reduction <add>, %179, %cst_83 [1] : vector<64x64xf32> to vector<64xf32>
    %181 = vector.shape_cast %180 : vector<64xf32> to vector<64x1xf32>
    %182 = tpu.reciprocal %181 {approx = true} : vector<64x1xf32> -> vector<64x1xf32>
    %183 = vector.broadcast %182 : vector<64x1xf32> to vector<64x64xf32>
    %184 = arith.mulf %179, %183 : vector<64x64xf32>
    %cst_84 = arith.constant dense<0.000000e+00> : vector<64x8xf32>
    %185 = tpu.matmul %184, %170, %cst_84 {dimension_numbers = #tpu.dot_dimension_numbers<[1], [0], [0], [1], [0, 0, 1, 1], [], []>} : vector<64x64xf32>, vector<64x8xf32>, vector<64x8xf32> -> vector<64x8xf32>
    %186 = vector.extract_strided_slice %185 {offsets = [0, 0], sizes = [16, 8], strides = [1, 1]} : vector<64x8xf32> to vector<16x8xf32>
    %187 = vector.extract_strided_slice %146 {offsets = [0, 0], sizes = [8, 32], strides = [1, 1]} : vector<32x32xf32> to vector<8x32xf32>
    %cst_85 = arith.constant dense<0.000000e+00> : vector<16x32xf32>
    %188 = tpu.matmul %186, %187, %cst_85 {dimension_numbers = #tpu.dot_dimension_numbers<[1], [0], [0], [1], [0, 0, 1, 1], [], []>} : vector<16x8xf32>, vector<8x32xf32>, vector<16x32xf32> -> vector<16x32xf32>
    %189 = vector.extract_strided_slice %185 {offsets = [16, 0], sizes = [16, 8], strides = [1, 1]} : vector<64x8xf32> to vector<16x8xf32>
    %190 = vector.extract_strided_slice %146 {offsets = [8, 0], sizes = [8, 32], strides = [1, 1]} : vector<32x32xf32> to vector<8x32xf32>
    %cst_86 = arith.constant dense<0.000000e+00> : vector<16x32xf32>
    %191 = tpu.matmul %189, %190, %cst_86 {dimension_numbers = #tpu.dot_dimension_numbers<[1], [0], [0], [1], [0, 0, 1, 1], [], []>} : vector<16x8xf32>, vector<8x32xf32>, vector<16x32xf32> -> vector<16x32xf32>
    %192 = arith.addf %188, %191 : vector<16x32xf32>
    %193 = vector.extract_strided_slice %185 {offsets = [32, 0], sizes = [16, 8], strides = [1, 1]} : vector<64x8xf32> to vector<16x8xf32>
    %194 = vector.extract_strided_slice %146 {offsets = [16, 0], sizes = [8, 32], strides = [1, 1]} : vector<32x32xf32> to vector<8x32xf32>
    %cst_87 = arith.constant dense<0.000000e+00> : vector<16x32xf32>
    %195 = tpu.matmul %193, %194, %cst_87 {dimension_numbers = #tpu.dot_dimension_numbers<[1], [0], [0], [1], [0, 0, 1, 1], [], []>} : vector<16x8xf32>, vector<8x32xf32>, vector<16x32xf32> -> vector<16x32xf32>
    %196 = arith.addf %192, %195 : vector<16x32xf32>
    %197 = vector.extract_strided_slice %185 {offsets = [48, 0], sizes = [16, 8], strides = [1, 1]} : vector<64x8xf32> to vector<16x8xf32>
    %198 = vector.extract_strided_slice %146 {offsets = [24, 0], sizes = [8, 32], strides = [1, 1]} : vector<32x32xf32> to vector<8x32xf32>
    %cst_88 = arith.constant dense<0.000000e+00> : vector<16x32xf32>
    %199 = tpu.matmul %197, %198, %cst_88 {dimension_numbers = #tpu.dot_dimension_numbers<[1], [0], [0], [1], [0, 0, 1, 1], [], []>} : vector<16x8xf32>, vector<8x32xf32>, vector<16x32xf32> -> vector<16x32xf32>
    %200 = arith.addf %196, %199 : vector<16x32xf32>
    %201 = vector.broadcast %148 : vector<1x32xf32> to vector<16x32xf32>
    %202 = arith.addf %200, %201 : vector<16x32xf32>
    %203 = arith.addf %136, %202 : vector<16x32xf32>
    %204 = vector.extract_strided_slice %138 {offsets = [0, 0], sizes = [1, 32], strides = [1, 1]} : vector<2x32xf32> to vector<1x32xf32>
    %205 = vector.extract_strided_slice %140 {offsets = [0, 0], sizes = [1, 32], strides = [1, 1]} : vector<2x32xf32> to vector<1x32xf32>
    %cst_89 = arith.constant dense<0.000000e+00> : vector<16xf32>
    %206 = vector.multi_reduction <add>, %203, %cst_89 [1] : vector<16x32xf32> to vector<16xf32>
    %207 = vector.shape_cast %206 : vector<16xf32> to vector<16x1xf32>
    %cst_90 = arith.constant 3.200000e+01 : f32
    %208 = vector.broadcast %cst_90 : f32 to vector<16x1xf32>
    %209 = arith.divf %207, %208 : vector<16x1xf32>
    %210 = vector.broadcast %209 : vector<16x1xf32> to vector<16x32xf32>
    %211 = arith.subf %203, %210 : vector<16x32xf32>
    %212 = arith.mulf %211, %211 : vector<16x32xf32>
    %cst_91 = arith.constant dense<0.000000e+00> : vector<16xf32>
    %213 = vector.multi_reduction <add>, %212, %cst_91 [1] : vector<16x32xf32> to vector<16xf32>
    %214 = vector.shape_cast %213 : vector<16xf32> to vector<16x1xf32>
    %cst_92 = arith.constant 3.200000e+01 : f32
    %215 = vector.broadcast %cst_92 : f32 to vector<16x1xf32>
    %216 = arith.divf %214, %215 : vector<16x1xf32>
    %217 = vector.broadcast %209 : vector<16x1xf32> to vector<16x32xf32>
    %218 = arith.subf %203, %217 : vector<16x32xf32>
    %cst_93 = arith.constant 9.99999974E-6 : f32
    %219 = vector.broadcast %cst_93 : f32 to vector<16x1xf32>
    %220 = arith.addf %216, %219 : vector<16x1xf32>
    %221 = math.rsqrt %220 : vector<16x1xf32>
    %222 = vector.broadcast %221 : vector<16x1xf32> to vector<16x32xf32>
    %223 = arith.mulf %218, %222 : vector<16x32xf32>
    %224 = vector.broadcast %204 : vector<1x32xf32> to vector<16x32xf32>
    %225 = arith.mulf %223, %224 : vector<16x32xf32>
    %226 = vector.broadcast %205 : vector<1x32xf32> to vector<16x32xf32>
    %227 = arith.addf %225, %226 : vector<16x32xf32>
    %c1_94 = arith.constant 1 : index
    %c0_95 = arith.constant 0 : index
    %c0_96 = arith.constant 0 : index
    %228 = vector.load %arg13[%c1_94, %c0_95, %c0_96] : memref<2x32x64xf32, #tpu.memory_space<vmem>>, vector<1x32x64xf32>
    %229 = vector.shape_cast %228 : vector<1x32x64xf32> to vector<32x64xf32>
    %c1_97 = arith.constant 1 : index
    %c0_98 = arith.constant 0 : index
    %c0_99 = arith.constant 0 : index
    %230 = vector.load %arg14[%c1_97, %c0_98, %c0_99] : memref<2x1x64xf32, #tpu.memory_space<vmem>>, vector<1x1x64xf32>
    %231 = vector.shape_cast %230 : vector<1x1x64xf32> to vector<1x64xf32>
    %c1_100 = arith.constant 1 : index
    %c0_101 = arith.constant 0 : index
    %c0_102 = arith.constant 0 : index
    %232 = vector.load %arg15[%c1_100, %c0_101, %c0_102] : memref<2x64x32xf32, #tpu.memory_space<vmem>>, vector<1x64x32xf32>
    %233 = vector.shape_cast %232 : vector<1x64x32xf32> to vector<64x32xf32>
    %c1_103 = arith.constant 1 : index
    %c0_104 = arith.constant 0 : index
    %c0_105 = arith.constant 0 : index
    %234 = vector.load %arg16[%c1_103, %c0_104, %c0_105] : memref<2x1x32xf32, #tpu.memory_space<vmem>>, vector<1x1x32xf32>
    %235 = vector.shape_cast %234 : vector<1x1x32xf32> to vector<1x32xf32>
    %cst_106 = arith.constant dense<0.000000e+00> : vector<16x64xf32>
    %236 = tpu.matmul %227, %229, %cst_106 {dimension_numbers = #tpu.dot_dimension_numbers<[1], [0], [0], [1], [0, 0, 1, 1], [], []>} : vector<16x32xf32>, vector<32x64xf32>, vector<16x64xf32> -> vector<16x64xf32>
    %237 = vector.broadcast %231 : vector<1x64xf32> to vector<16x64xf32>
    %238 = arith.addf %236, %237 : vector<16x64xf32>
    %cst_107 = arith.constant 0.000000e+00 : f32
    %239 = vector.broadcast %cst_107 : f32 to vector<16x64xf32>
    %240 = arith.maximumf %238, %239 : vector<16x64xf32>
    %cst_108 = arith.constant dense<0.000000e+00> : vector<16x32xf32>
    %241 = tpu.matmul %240, %233, %cst_108 {dimension_numbers = #tpu.dot_dimension_numbers<[1], [0], [0], [1], [0, 0, 1, 1], [], []>} : vector<16x64xf32>, vector<64x32xf32>, vector<16x32xf32> -> vector<16x32xf32>
    %242 = vector.broadcast %235 : vector<1x32xf32> to vector<16x32xf32>
    %243 = arith.addf %241, %242 : vector<16x32xf32>
    %244 = arith.addf %227, %243 : vector<16x32xf32>
    %245 = vector.extract_strided_slice %138 {offsets = [1, 0], sizes = [1, 32], strides = [1, 1]} : vector<2x32xf32> to vector<1x32xf32>
    %246 = vector.extract_strided_slice %140 {offsets = [1, 0], sizes = [1, 32], strides = [1, 1]} : vector<2x32xf32> to vector<1x32xf32>
    %cst_109 = arith.constant dense<0.000000e+00> : vector<16xf32>
    %247 = vector.multi_reduction <add>, %244, %cst_109 [1] : vector<16x32xf32> to vector<16xf32>
    %248 = vector.shape_cast %247 : vector<16xf32> to vector<16x1xf32>
    %cst_110 = arith.constant 3.200000e+01 : f32
    %249 = vector.broadcast %cst_110 : f32 to vector<16x1xf32>
    %250 = arith.divf %248, %249 : vector<16x1xf32>
    %251 = vector.broadcast %250 : vector<16x1xf32> to vector<16x32xf32>
    %252 = arith.subf %244, %251 : vector<16x32xf32>
    %253 = arith.mulf %252, %252 : vector<16x32xf32>
    %cst_111 = arith.constant dense<0.000000e+00> : vector<16xf32>
    %254 = vector.multi_reduction <add>, %253, %cst_111 [1] : vector<16x32xf32> to vector<16xf32>
    %255 = vector.shape_cast %254 : vector<16xf32> to vector<16x1xf32>
    %cst_112 = arith.constant 3.200000e+01 : f32
    %256 = vector.broadcast %cst_112 : f32 to vector<16x1xf32>
    %257 = arith.divf %255, %256 : vector<16x1xf32>
    %258 = vector.broadcast %250 : vector<16x1xf32> to vector<16x32xf32>
    %259 = arith.subf %244, %258 : vector<16x32xf32>
    %cst_113 = arith.constant 9.99999974E-6 : f32
    %260 = vector.broadcast %cst_113 : f32 to vector<16x1xf32>
    %261 = arith.addf %257, %260 : vector<16x1xf32>
    %262 = math.rsqrt %261 : vector<16x1xf32>
    %263 = vector.broadcast %262 : vector<16x1xf32> to vector<16x32xf32>
    %264 = arith.mulf %259, %263 : vector<16x32xf32>
    %265 = vector.broadcast %245 : vector<1x32xf32> to vector<16x32xf32>
    %266 = arith.mulf %264, %265 : vector<16x32xf32>
    %267 = vector.broadcast %246 : vector<1x32xf32> to vector<16x32xf32>
    %268 = arith.addf %266, %267 : vector<16x32xf32>
    %c0_114 = arith.constant 0 : index
    %c0_115 = arith.constant 0 : index
    %269 = vector.load %arg19[%c0_114, %c0_115] : memref<1x32xf32, #tpu.memory_space<vmem>>, vector<1x32xf32>
    %c0_116 = arith.constant 0 : index
    %c0_117 = arith.constant 0 : index
    %270 = vector.load %arg20[%c0_116, %c0_117] : memref<1x32xf32, #tpu.memory_space<vmem>>, vector<1x32xf32>
    %cst_118 = arith.constant dense<0.000000e+00> : vector<16xf32>
    %271 = vector.multi_reduction <add>, %268, %cst_118 [1] : vector<16x32xf32> to vector<16xf32>
    %272 = vector.shape_cast %271 : vector<16xf32> to vector<16x1xf32>
    %cst_119 = arith.constant 3.200000e+01 : f32
    %273 = vector.broadcast %cst_119 : f32 to vector<16x1xf32>
    %274 = arith.divf %272, %273 : vector<16x1xf32>
    %275 = vector.broadcast %274 : vector<16x1xf32> to vector<16x32xf32>
    %276 = arith.subf %268, %275 : vector<16x32xf32>
    %277 = arith.mulf %276, %276 : vector<16x32xf32>
    %cst_120 = arith.constant dense<0.000000e+00> : vector<16xf32>
    %278 = vector.multi_reduction <add>, %277, %cst_120 [1] : vector<16x32xf32> to vector<16xf32>
    %279 = vector.shape_cast %278 : vector<16xf32> to vector<16x1xf32>
    %cst_121 = arith.constant 3.200000e+01 : f32
    %280 = vector.broadcast %cst_121 : f32 to vector<16x1xf32>
    %281 = arith.divf %279, %280 : vector<16x1xf32>
    %282 = vector.broadcast %274 : vector<16x1xf32> to vector<16x32xf32>
    %283 = arith.subf %268, %282 : vector<16x32xf32>
    %cst_122 = arith.constant 9.99999974E-6 : f32
    %284 = vector.broadcast %cst_122 : f32 to vector<16x1xf32>
    %285 = arith.addf %281, %284 : vector<16x1xf32>
    %286 = math.rsqrt %285 : vector<16x1xf32>
    %287 = vector.broadcast %286 : vector<16x1xf32> to vector<16x32xf32>
    %288 = arith.mulf %283, %287 : vector<16x32xf32>
    %289 = vector.broadcast %269 : vector<1x32xf32> to vector<16x32xf32>
    %290 = arith.mulf %288, %289 : vector<16x32xf32>
    %291 = vector.broadcast %270 : vector<1x32xf32> to vector<16x32xf32>
    %292 = arith.addf %290, %291 : vector<16x32xf32>
    %c0_123 = arith.constant 0 : index
    %c0_124 = arith.constant 0 : index
    %293 = vector.load %arg1[%c0_123, %c0_124] : memref<16x12xf32, #tpu.memory_space<vmem>>, vector<16x12xf32>
    %c0_125 = arith.constant 0 : index
    %c0_126 = arith.constant 0 : index
    %294 = vector.load %arg4[%c0_125, %c0_126] : memref<12x32xf32, #tpu.memory_space<vmem>>, vector<12x32xf32>
    %cst_127 = arith.constant dense<0.000000e+00> : vector<16x32xf32>
    %295 = tpu.matmul %293, %294, %cst_127 {dimension_numbers = #tpu.dot_dimension_numbers<[1], [0], [0], [1], [0, 0, 1, 1], [], []>} : vector<16x12xf32>, vector<12x32xf32>, vector<16x32xf32> -> vector<16x32xf32>
    %c0_128 = arith.constant 0 : index
    %c0_129 = arith.constant 0 : index
    %296 = vector.load %arg5[%c0_128, %c0_129] : memref<16x32xf32, #tpu.memory_space<vmem>>, vector<16x32xf32>
    %297 = arith.addf %295, %296 : vector<16x32xf32>
    %c0_130 = arith.constant 0 : index
    %c0_131 = arith.constant 0 : index
    %c0_132 = arith.constant 0 : index
    %298 = vector.load %arg33[%c0_130, %c0_131, %c0_132] : memref<1x3x32xf32, #tpu.memory_space<vmem>>, vector<1x3x32xf32>
    %299 = vector.shape_cast %298 : vector<1x3x32xf32> to vector<3x32xf32>
    %c0_133 = arith.constant 0 : index
    %c0_134 = arith.constant 0 : index
    %c0_135 = arith.constant 0 : index
    %300 = vector.load %arg34[%c0_133, %c0_134, %c0_135] : memref<1x3x32xf32, #tpu.memory_space<vmem>>, vector<1x3x32xf32>
    %301 = vector.shape_cast %300 : vector<1x3x32xf32> to vector<3x32xf32>
    %c0_136 = arith.constant 0 : index
    %c0_137 = arith.constant 0 : index
    %c0_138 = arith.constant 0 : index
    %302 = vector.load %arg21[%c0_136, %c0_137, %c0_138] : memref<1x32x96xf32, #tpu.memory_space<vmem>>, vector<1x32x96xf32>
    %303 = vector.shape_cast %302 : vector<1x32x96xf32> to vector<32x96xf32>
    %c0_139 = arith.constant 0 : index
    %c0_140 = arith.constant 0 : index
    %c0_141 = arith.constant 0 : index
    %304 = vector.load %arg22[%c0_139, %c0_140, %c0_141] : memref<1x1x96xf32, #tpu.memory_space<vmem>>, vector<1x1x96xf32>
    %305 = vector.shape_cast %304 : vector<1x1x96xf32> to vector<1x96xf32>
    %c0_142 = arith.constant 0 : index
    %c0_143 = arith.constant 0 : index
    %c0_144 = arith.constant 0 : index
    %306 = vector.load %arg23[%c0_142, %c0_143, %c0_144] : memref<1x32x32xf32, #tpu.memory_space<vmem>>, vector<1x32x32xf32>
    %307 = vector.shape_cast %306 : vector<1x32x32xf32> to vector<32x32xf32>
    %c0_145 = arith.constant 0 : index
    %c0_146 = arith.constant 0 : index
    %c0_147 = arith.constant 0 : index
    %308 = vector.load %arg24[%c0_145, %c0_146, %c0_147] : memref<1x1x32xf32, #tpu.memory_space<vmem>>, vector<1x1x32xf32>
    %309 = vector.shape_cast %308 : vector<1x1x32xf32> to vector<1x32xf32>
    %c0_148 = arith.constant 0 : index
    %c0_149 = arith.constant 0 : index
    %310 = vector.load %arg7[%c0_148, %c0_149] : memref<64x64xf32, #tpu.memory_space<vmem>>, vector<64x64xf32>
    %cst_150 = arith.constant dense<0.000000e+00> : vector<16x96xf32>
    %311 = tpu.matmul %297, %303, %cst_150 {dimension_numbers = #tpu.dot_dimension_numbers<[1], [0], [0], [1], [0, 0, 1, 1], [], []>} : vector<16x32xf32>, vector<32x96xf32>, vector<16x96xf32> -> vector<16x96xf32>
    %312 = vector.broadcast %305 : vector<1x96xf32> to vector<16x96xf32>
    %313 = arith.addf %311, %312 : vector<16x96xf32>
    %314 = vector.extract_strided_slice %313 {offsets = [0, 0], sizes = [16, 32], strides = [1, 1]} : vector<16x96xf32> to vector<16x32xf32>
    %315 = vector.extract_strided_slice %313 {offsets = [0, 32], sizes = [16, 32], strides = [1, 1]} : vector<16x96xf32> to vector<16x32xf32>
    %316 = vector.extract_strided_slice %313 {offsets = [0, 64], sizes = [16, 32], strides = [1, 1]} : vector<16x96xf32> to vector<16x32xf32>
    %317 = vector.extract_strided_slice %314 {offsets = [0, 0], sizes = [16, 8], strides = [1, 1]} : vector<16x32xf32> to vector<16x8xf32>
    %318 = vector.extract_strided_slice %314 {offsets = [0, 8], sizes = [16, 8], strides = [1, 1]} : vector<16x32xf32> to vector<16x8xf32>
    %319 = vector.extract_strided_slice %314 {offsets = [0, 16], sizes = [16, 8], strides = [1, 1]} : vector<16x32xf32> to vector<16x8xf32>
    %320 = vector.extract_strided_slice %314 {offsets = [0, 24], sizes = [16, 8], strides = [1, 1]} : vector<16x32xf32> to vector<16x8xf32>
    %321 = tpu.concatenate %317, %318, %319, %320 in 0 : vector<16x8xf32>, vector<16x8xf32>, vector<16x8xf32>, vector<16x8xf32> -> vector<64x8xf32>
    %322 = vector.extract_strided_slice %315 {offsets = [0, 0], sizes = [16, 8], strides = [1, 1]} : vector<16x32xf32> to vector<16x8xf32>
    %323 = vector.extract_strided_slice %315 {offsets = [0, 8], sizes = [16, 8], strides = [1, 1]} : vector<16x32xf32> to vector<16x8xf32>
    %324 = vector.extract_strided_slice %315 {offsets = [0, 16], sizes = [16, 8], strides = [1, 1]} : vector<16x32xf32> to vector<16x8xf32>
    %325 = vector.extract_strided_slice %315 {offsets = [0, 24], sizes = [16, 8], strides = [1, 1]} : vector<16x32xf32> to vector<16x8xf32>
    %326 = tpu.concatenate %322, %323, %324, %325 in 0 : vector<16x8xf32>, vector<16x8xf32>, vector<16x8xf32>, vector<16x8xf32> -> vector<64x8xf32>
    %327 = vector.extract_strided_slice %316 {offsets = [0, 0], sizes = [16, 8], strides = [1, 1]} : vector<16x32xf32> to vector<16x8xf32>
    %328 = vector.extract_strided_slice %316 {offsets = [0, 8], sizes = [16, 8], strides = [1, 1]} : vector<16x32xf32> to vector<16x8xf32>
    %329 = vector.extract_strided_slice %316 {offsets = [0, 16], sizes = [16, 8], strides = [1, 1]} : vector<16x32xf32> to vector<16x8xf32>
    %330 = vector.extract_strided_slice %316 {offsets = [0, 24], sizes = [16, 8], strides = [1, 1]} : vector<16x32xf32> to vector<16x8xf32>
    %331 = tpu.concatenate %327, %328, %329, %330 in 0 : vector<16x8xf32>, vector<16x8xf32>, vector<16x8xf32>, vector<16x8xf32> -> vector<64x8xf32>
    %cst_151 = arith.constant dense<0.000000e+00> : vector<64x64xf32>
    %332 = tpu.matmul %321, %326, %cst_151 {dimension_numbers = #tpu.dot_dimension_numbers<[1], [1], [0], [0], [0, 0, 1, 0], [], []>} : vector<64x8xf32>, vector<64x8xf32>, vector<64x64xf32> -> vector<64x64xf32>
    %cst_152 = arith.constant 0.353553385 : f32
    %333 = vector.broadcast %cst_152 : f32 to vector<64x64xf32>
    %334 = arith.mulf %332, %333 : vector<64x64xf32>
    %335 = arith.addf %334, %310 : vector<64x64xf32>
    %cst_153 = arith.constant dense<0xFF800000> : vector<64xf32>
    %336 = vector.multi_reduction <maximumf>, %335, %cst_153 [1] : vector<64x64xf32> to vector<64xf32>
    %337 = vector.shape_cast %336 : vector<64xf32> to vector<64x1xf32>
    %338 = vector.broadcast %337 : vector<64x1xf32> to vector<64x64xf32>
    %339 = arith.subf %335, %338 : vector<64x64xf32>
    %340 = math.exp %339 : vector<64x64xf32>
    %cst_154 = arith.constant dense<0.000000e+00> : vector<64xf32>
    %341 = vector.multi_reduction <add>, %340, %cst_154 [1] : vector<64x64xf32> to vector<64xf32>
    %342 = vector.shape_cast %341 : vector<64xf32> to vector<64x1xf32>
    %343 = tpu.reciprocal %342 {approx = true} : vector<64x1xf32> -> vector<64x1xf32>
    %344 = vector.broadcast %343 : vector<64x1xf32> to vector<64x64xf32>
    %345 = arith.mulf %340, %344 : vector<64x64xf32>
    %cst_155 = arith.constant dense<0.000000e+00> : vector<64x8xf32>
    %346 = tpu.matmul %345, %331, %cst_155 {dimension_numbers = #tpu.dot_dimension_numbers<[1], [0], [0], [1], [0, 0, 1, 1], [], []>} : vector<64x64xf32>, vector<64x8xf32>, vector<64x8xf32> -> vector<64x8xf32>
    %347 = vector.extract_strided_slice %346 {offsets = [0, 0], sizes = [16, 8], strides = [1, 1]} : vector<64x8xf32> to vector<16x8xf32>
    %348 = vector.extract_strided_slice %307 {offsets = [0, 0], sizes = [8, 32], strides = [1, 1]} : vector<32x32xf32> to vector<8x32xf32>
    %cst_156 = arith.constant dense<0.000000e+00> : vector<16x32xf32>
    %349 = tpu.matmul %347, %348, %cst_156 {dimension_numbers = #tpu.dot_dimension_numbers<[1], [0], [0], [1], [0, 0, 1, 1], [], []>} : vector<16x8xf32>, vector<8x32xf32>, vector<16x32xf32> -> vector<16x32xf32>
    %350 = vector.extract_strided_slice %346 {offsets = [16, 0], sizes = [16, 8], strides = [1, 1]} : vector<64x8xf32> to vector<16x8xf32>
    %351 = vector.extract_strided_slice %307 {offsets = [8, 0], sizes = [8, 32], strides = [1, 1]} : vector<32x32xf32> to vector<8x32xf32>
    %cst_157 = arith.constant dense<0.000000e+00> : vector<16x32xf32>
    %352 = tpu.matmul %350, %351, %cst_157 {dimension_numbers = #tpu.dot_dimension_numbers<[1], [0], [0], [1], [0, 0, 1, 1], [], []>} : vector<16x8xf32>, vector<8x32xf32>, vector<16x32xf32> -> vector<16x32xf32>
    %353 = arith.addf %349, %352 : vector<16x32xf32>
    %354 = vector.extract_strided_slice %346 {offsets = [32, 0], sizes = [16, 8], strides = [1, 1]} : vector<64x8xf32> to vector<16x8xf32>
    %355 = vector.extract_strided_slice %307 {offsets = [16, 0], sizes = [8, 32], strides = [1, 1]} : vector<32x32xf32> to vector<8x32xf32>
    %cst_158 = arith.constant dense<0.000000e+00> : vector<16x32xf32>
    %356 = tpu.matmul %354, %355, %cst_158 {dimension_numbers = #tpu.dot_dimension_numbers<[1], [0], [0], [1], [0, 0, 1, 1], [], []>} : vector<16x8xf32>, vector<8x32xf32>, vector<16x32xf32> -> vector<16x32xf32>
    %357 = arith.addf %353, %356 : vector<16x32xf32>
    %358 = vector.extract_strided_slice %346 {offsets = [48, 0], sizes = [16, 8], strides = [1, 1]} : vector<64x8xf32> to vector<16x8xf32>
    %359 = vector.extract_strided_slice %307 {offsets = [24, 0], sizes = [8, 32], strides = [1, 1]} : vector<32x32xf32> to vector<8x32xf32>
    %cst_159 = arith.constant dense<0.000000e+00> : vector<16x32xf32>
    %360 = tpu.matmul %358, %359, %cst_159 {dimension_numbers = #tpu.dot_dimension_numbers<[1], [0], [0], [1], [0, 0, 1, 1], [], []>} : vector<16x8xf32>, vector<8x32xf32>, vector<16x32xf32> -> vector<16x32xf32>
    %361 = arith.addf %357, %360 : vector<16x32xf32>
    %362 = vector.broadcast %309 : vector<1x32xf32> to vector<16x32xf32>
    %363 = arith.addf %361, %362 : vector<16x32xf32>
    %364 = arith.addf %297, %363 : vector<16x32xf32>
    %365 = vector.extract_strided_slice %299 {offsets = [0, 0], sizes = [1, 32], strides = [1, 1]} : vector<3x32xf32> to vector<1x32xf32>
    %366 = vector.extract_strided_slice %301 {offsets = [0, 0], sizes = [1, 32], strides = [1, 1]} : vector<3x32xf32> to vector<1x32xf32>
    %cst_160 = arith.constant dense<0.000000e+00> : vector<16xf32>
    %367 = vector.multi_reduction <add>, %364, %cst_160 [1] : vector<16x32xf32> to vector<16xf32>
    %368 = vector.shape_cast %367 : vector<16xf32> to vector<16x1xf32>
    %cst_161 = arith.constant 3.200000e+01 : f32
    %369 = vector.broadcast %cst_161 : f32 to vector<16x1xf32>
    %370 = arith.divf %368, %369 : vector<16x1xf32>
    %371 = vector.broadcast %370 : vector<16x1xf32> to vector<16x32xf32>
    %372 = arith.subf %364, %371 : vector<16x32xf32>
    %373 = arith.mulf %372, %372 : vector<16x32xf32>
    %cst_162 = arith.constant dense<0.000000e+00> : vector<16xf32>
    %374 = vector.multi_reduction <add>, %373, %cst_162 [1] : vector<16x32xf32> to vector<16xf32>
    %375 = vector.shape_cast %374 : vector<16xf32> to vector<16x1xf32>
    %cst_163 = arith.constant 3.200000e+01 : f32
    %376 = vector.broadcast %cst_163 : f32 to vector<16x1xf32>
    %377 = arith.divf %375, %376 : vector<16x1xf32>
    %378 = vector.broadcast %370 : vector<16x1xf32> to vector<16x32xf32>
    %379 = arith.subf %364, %378 : vector<16x32xf32>
    %cst_164 = arith.constant 9.99999974E-6 : f32
    %380 = vector.broadcast %cst_164 : f32 to vector<16x1xf32>
    %381 = arith.addf %377, %380 : vector<16x1xf32>
    %382 = math.rsqrt %381 : vector<16x1xf32>
    %383 = vector.broadcast %382 : vector<16x1xf32> to vector<16x32xf32>
    %384 = arith.mulf %379, %383 : vector<16x32xf32>
    %385 = vector.broadcast %365 : vector<1x32xf32> to vector<16x32xf32>
    %386 = arith.mulf %384, %385 : vector<16x32xf32>
    %387 = vector.broadcast %366 : vector<1x32xf32> to vector<16x32xf32>
    %388 = arith.addf %386, %387 : vector<16x32xf32>
    %c0_165 = arith.constant 0 : index
    %c0_166 = arith.constant 0 : index
    %c0_167 = arith.constant 0 : index
    %389 = vector.load %arg25[%c0_165, %c0_166, %c0_167] : memref<1x32x96xf32, #tpu.memory_space<vmem>>, vector<1x32x96xf32>
    %390 = vector.shape_cast %389 : vector<1x32x96xf32> to vector<32x96xf32>
    %c0_168 = arith.constant 0 : index
    %c0_169 = arith.constant 0 : index
    %c0_170 = arith.constant 0 : index
    %391 = vector.load %arg26[%c0_168, %c0_169, %c0_170] : memref<1x1x96xf32, #tpu.memory_space<vmem>>, vector<1x1x96xf32>
    %392 = vector.shape_cast %391 : vector<1x1x96xf32> to vector<1x96xf32>
    %c0_171 = arith.constant 0 : index
    %c0_172 = arith.constant 0 : index
    %c0_173 = arith.constant 0 : index
    %393 = vector.load %arg27[%c0_171, %c0_172, %c0_173] : memref<1x32x32xf32, #tpu.memory_space<vmem>>, vector<1x32x32xf32>
    %394 = vector.shape_cast %393 : vector<1x32x32xf32> to vector<32x32xf32>
    %c0_174 = arith.constant 0 : index
    %c0_175 = arith.constant 0 : index
    %c0_176 = arith.constant 0 : index
    %395 = vector.load %arg28[%c0_174, %c0_175, %c0_176] : memref<1x1x32xf32, #tpu.memory_space<vmem>>, vector<1x1x32xf32>
    %396 = vector.shape_cast %395 : vector<1x1x32xf32> to vector<1x32xf32>
    %c0_177 = arith.constant 0 : index
    %c0_178 = arith.constant 0 : index
    %397 = vector.load %arg8[%c0_177, %c0_178] : memref<64x64xf32, #tpu.memory_space<vmem>>, vector<64x64xf32>
    %398 = vector.extract_strided_slice %390 {offsets = [0, 0], sizes = [32, 32], strides = [1, 1]} : vector<32x96xf32> to vector<32x32xf32>
    %cst_179 = arith.constant dense<0.000000e+00> : vector<16x32xf32>
    %399 = tpu.matmul %388, %398, %cst_179 {dimension_numbers = #tpu.dot_dimension_numbers<[1], [0], [0], [1], [0, 0, 1, 1], [], []>} : vector<16x32xf32>, vector<32x32xf32>, vector<16x32xf32> -> vector<16x32xf32>
    %400 = vector.extract_strided_slice %392 {offsets = [0, 0], sizes = [1, 32], strides = [1, 1]} : vector<1x96xf32> to vector<1x32xf32>
    %401 = vector.broadcast %400 : vector<1x32xf32> to vector<16x32xf32>
    %402 = arith.addf %399, %401 : vector<16x32xf32>
    %403 = vector.extract_strided_slice %390 {offsets = [0, 32], sizes = [32, 64], strides = [1, 1]} : vector<32x96xf32> to vector<32x64xf32>
    %cst_180 = arith.constant dense<0.000000e+00> : vector<16x64xf32>
    %404 = tpu.matmul %292, %403, %cst_180 {dimension_numbers = #tpu.dot_dimension_numbers<[1], [0], [0], [1], [0, 0, 1, 1], [], []>} : vector<16x32xf32>, vector<32x64xf32>, vector<16x64xf32> -> vector<16x64xf32>
    %405 = vector.extract_strided_slice %392 {offsets = [0, 32], sizes = [1, 64], strides = [1, 1]} : vector<1x96xf32> to vector<1x64xf32>
    %406 = vector.broadcast %405 : vector<1x64xf32> to vector<16x64xf32>
    %407 = arith.addf %404, %406 : vector<16x64xf32>
    %408 = vector.extract_strided_slice %407 {offsets = [0, 0], sizes = [16, 32], strides = [1, 1]} : vector<16x64xf32> to vector<16x32xf32>
    %409 = vector.extract_strided_slice %407 {offsets = [0, 32], sizes = [16, 32], strides = [1, 1]} : vector<16x64xf32> to vector<16x32xf32>
    %410 = vector.extract_strided_slice %402 {offsets = [0, 0], sizes = [16, 8], strides = [1, 1]} : vector<16x32xf32> to vector<16x8xf32>
    %411 = vector.extract_strided_slice %402 {offsets = [0, 8], sizes = [16, 8], strides = [1, 1]} : vector<16x32xf32> to vector<16x8xf32>
    %412 = vector.extract_strided_slice %402 {offsets = [0, 16], sizes = [16, 8], strides = [1, 1]} : vector<16x32xf32> to vector<16x8xf32>
    %413 = vector.extract_strided_slice %402 {offsets = [0, 24], sizes = [16, 8], strides = [1, 1]} : vector<16x32xf32> to vector<16x8xf32>
    %414 = tpu.concatenate %410, %411, %412, %413 in 0 : vector<16x8xf32>, vector<16x8xf32>, vector<16x8xf32>, vector<16x8xf32> -> vector<64x8xf32>
    %415 = vector.extract_strided_slice %408 {offsets = [0, 0], sizes = [16, 8], strides = [1, 1]} : vector<16x32xf32> to vector<16x8xf32>
    %416 = vector.extract_strided_slice %408 {offsets = [0, 8], sizes = [16, 8], strides = [1, 1]} : vector<16x32xf32> to vector<16x8xf32>
    %417 = vector.extract_strided_slice %408 {offsets = [0, 16], sizes = [16, 8], strides = [1, 1]} : vector<16x32xf32> to vector<16x8xf32>
    %418 = vector.extract_strided_slice %408 {offsets = [0, 24], sizes = [16, 8], strides = [1, 1]} : vector<16x32xf32> to vector<16x8xf32>
    %419 = tpu.concatenate %415, %416, %417, %418 in 0 : vector<16x8xf32>, vector<16x8xf32>, vector<16x8xf32>, vector<16x8xf32> -> vector<64x8xf32>
    %420 = vector.extract_strided_slice %409 {offsets = [0, 0], sizes = [16, 8], strides = [1, 1]} : vector<16x32xf32> to vector<16x8xf32>
    %421 = vector.extract_strided_slice %409 {offsets = [0, 8], sizes = [16, 8], strides = [1, 1]} : vector<16x32xf32> to vector<16x8xf32>
    %422 = vector.extract_strided_slice %409 {offsets = [0, 16], sizes = [16, 8], strides = [1, 1]} : vector<16x32xf32> to vector<16x8xf32>
    %423 = vector.extract_strided_slice %409 {offsets = [0, 24], sizes = [16, 8], strides = [1, 1]} : vector<16x32xf32> to vector<16x8xf32>
    %424 = tpu.concatenate %420, %421, %422, %423 in 0 : vector<16x8xf32>, vector<16x8xf32>, vector<16x8xf32>, vector<16x8xf32> -> vector<64x8xf32>
    %cst_181 = arith.constant dense<0.000000e+00> : vector<64x64xf32>
    %425 = tpu.matmul %414, %419, %cst_181 {dimension_numbers = #tpu.dot_dimension_numbers<[1], [1], [0], [0], [0, 0, 1, 0], [], []>} : vector<64x8xf32>, vector<64x8xf32>, vector<64x64xf32> -> vector<64x64xf32>
    %cst_182 = arith.constant 0.353553385 : f32
    %426 = vector.broadcast %cst_182 : f32 to vector<64x64xf32>
    %427 = arith.mulf %425, %426 : vector<64x64xf32>
    %428 = arith.addf %427, %397 : vector<64x64xf32>
    %cst_183 = arith.constant dense<0xFF800000> : vector<64xf32>
    %429 = vector.multi_reduction <maximumf>, %428, %cst_183 [1] : vector<64x64xf32> to vector<64xf32>
    %430 = vector.shape_cast %429 : vector<64xf32> to vector<64x1xf32>
    %431 = vector.broadcast %430 : vector<64x1xf32> to vector<64x64xf32>
    %432 = arith.subf %428, %431 : vector<64x64xf32>
    %433 = math.exp %432 : vector<64x64xf32>
    %cst_184 = arith.constant dense<0.000000e+00> : vector<64xf32>
    %434 = vector.multi_reduction <add>, %433, %cst_184 [1] : vector<64x64xf32> to vector<64xf32>
    %435 = vector.shape_cast %434 : vector<64xf32> to vector<64x1xf32>
    %436 = tpu.reciprocal %435 {approx = true} : vector<64x1xf32> -> vector<64x1xf32>
    %437 = vector.broadcast %436 : vector<64x1xf32> to vector<64x64xf32>
    %438 = arith.mulf %433, %437 : vector<64x64xf32>
    %cst_185 = arith.constant dense<0.000000e+00> : vector<64x8xf32>
    %439 = tpu.matmul %438, %424, %cst_185 {dimension_numbers = #tpu.dot_dimension_numbers<[1], [0], [0], [1], [0, 0, 1, 1], [], []>} : vector<64x64xf32>, vector<64x8xf32>, vector<64x8xf32> -> vector<64x8xf32>
    %440 = vector.extract_strided_slice %439 {offsets = [0, 0], sizes = [16, 8], strides = [1, 1]} : vector<64x8xf32> to vector<16x8xf32>
    %441 = vector.extract_strided_slice %394 {offsets = [0, 0], sizes = [8, 32], strides = [1, 1]} : vector<32x32xf32> to vector<8x32xf32>
    %cst_186 = arith.constant dense<0.000000e+00> : vector<16x32xf32>
    %442 = tpu.matmul %440, %441, %cst_186 {dimension_numbers = #tpu.dot_dimension_numbers<[1], [0], [0], [1], [0, 0, 1, 1], [], []>} : vector<16x8xf32>, vector<8x32xf32>, vector<16x32xf32> -> vector<16x32xf32>
    %443 = vector.extract_strided_slice %439 {offsets = [16, 0], sizes = [16, 8], strides = [1, 1]} : vector<64x8xf32> to vector<16x8xf32>
    %444 = vector.extract_strided_slice %394 {offsets = [8, 0], sizes = [8, 32], strides = [1, 1]} : vector<32x32xf32> to vector<8x32xf32>
    %cst_187 = arith.constant dense<0.000000e+00> : vector<16x32xf32>
    %445 = tpu.matmul %443, %444, %cst_187 {dimension_numbers = #tpu.dot_dimension_numbers<[1], [0], [0], [1], [0, 0, 1, 1], [], []>} : vector<16x8xf32>, vector<8x32xf32>, vector<16x32xf32> -> vector<16x32xf32>
    %446 = arith.addf %442, %445 : vector<16x32xf32>
    %447 = vector.extract_strided_slice %439 {offsets = [32, 0], sizes = [16, 8], strides = [1, 1]} : vector<64x8xf32> to vector<16x8xf32>
    %448 = vector.extract_strided_slice %394 {offsets = [16, 0], sizes = [8, 32], strides = [1, 1]} : vector<32x32xf32> to vector<8x32xf32>
    %cst_188 = arith.constant dense<0.000000e+00> : vector<16x32xf32>
    %449 = tpu.matmul %447, %448, %cst_188 {dimension_numbers = #tpu.dot_dimension_numbers<[1], [0], [0], [1], [0, 0, 1, 1], [], []>} : vector<16x8xf32>, vector<8x32xf32>, vector<16x32xf32> -> vector<16x32xf32>
    %450 = arith.addf %446, %449 : vector<16x32xf32>
    %451 = vector.extract_strided_slice %439 {offsets = [48, 0], sizes = [16, 8], strides = [1, 1]} : vector<64x8xf32> to vector<16x8xf32>
    %452 = vector.extract_strided_slice %394 {offsets = [24, 0], sizes = [8, 32], strides = [1, 1]} : vector<32x32xf32> to vector<8x32xf32>
    %cst_189 = arith.constant dense<0.000000e+00> : vector<16x32xf32>
    %453 = tpu.matmul %451, %452, %cst_189 {dimension_numbers = #tpu.dot_dimension_numbers<[1], [0], [0], [1], [0, 0, 1, 1], [], []>} : vector<16x8xf32>, vector<8x32xf32>, vector<16x32xf32> -> vector<16x32xf32>
    %454 = arith.addf %450, %453 : vector<16x32xf32>
    %455 = vector.broadcast %396 : vector<1x32xf32> to vector<16x32xf32>
    %456 = arith.addf %454, %455 : vector<16x32xf32>
    %457 = arith.addf %388, %456 : vector<16x32xf32>
    %458 = vector.extract_strided_slice %299 {offsets = [1, 0], sizes = [1, 32], strides = [1, 1]} : vector<3x32xf32> to vector<1x32xf32>
    %459 = vector.extract_strided_slice %301 {offsets = [1, 0], sizes = [1, 32], strides = [1, 1]} : vector<3x32xf32> to vector<1x32xf32>
    %cst_190 = arith.constant dense<0.000000e+00> : vector<16xf32>
    %460 = vector.multi_reduction <add>, %457, %cst_190 [1] : vector<16x32xf32> to vector<16xf32>
    %461 = vector.shape_cast %460 : vector<16xf32> to vector<16x1xf32>
    %cst_191 = arith.constant 3.200000e+01 : f32
    %462 = vector.broadcast %cst_191 : f32 to vector<16x1xf32>
    %463 = arith.divf %461, %462 : vector<16x1xf32>
    %464 = vector.broadcast %463 : vector<16x1xf32> to vector<16x32xf32>
    %465 = arith.subf %457, %464 : vector<16x32xf32>
    %466 = arith.mulf %465, %465 : vector<16x32xf32>
    %cst_192 = arith.constant dense<0.000000e+00> : vector<16xf32>
    %467 = vector.multi_reduction <add>, %466, %cst_192 [1] : vector<16x32xf32> to vector<16xf32>
    %468 = vector.shape_cast %467 : vector<16xf32> to vector<16x1xf32>
    %cst_193 = arith.constant 3.200000e+01 : f32
    %469 = vector.broadcast %cst_193 : f32 to vector<16x1xf32>
    %470 = arith.divf %468, %469 : vector<16x1xf32>
    %471 = vector.broadcast %463 : vector<16x1xf32> to vector<16x32xf32>
    %472 = arith.subf %457, %471 : vector<16x32xf32>
    %cst_194 = arith.constant 9.99999974E-6 : f32
    %473 = vector.broadcast %cst_194 : f32 to vector<16x1xf32>
    %474 = arith.addf %470, %473 : vector<16x1xf32>
    %475 = math.rsqrt %474 : vector<16x1xf32>
    %476 = vector.broadcast %475 : vector<16x1xf32> to vector<16x32xf32>
    %477 = arith.mulf %472, %476 : vector<16x32xf32>
    %478 = vector.broadcast %458 : vector<1x32xf32> to vector<16x32xf32>
    %479 = arith.mulf %477, %478 : vector<16x32xf32>
    %480 = vector.broadcast %459 : vector<1x32xf32> to vector<16x32xf32>
    %481 = arith.addf %479, %480 : vector<16x32xf32>
    %c0_195 = arith.constant 0 : index
    %c0_196 = arith.constant 0 : index
    %c0_197 = arith.constant 0 : index
    %482 = vector.load %arg29[%c0_195, %c0_196, %c0_197] : memref<1x32x64xf32, #tpu.memory_space<vmem>>, vector<1x32x64xf32>
    %483 = vector.shape_cast %482 : vector<1x32x64xf32> to vector<32x64xf32>
    %c0_198 = arith.constant 0 : index
    %c0_199 = arith.constant 0 : index
    %c0_200 = arith.constant 0 : index
    %484 = vector.load %arg30[%c0_198, %c0_199, %c0_200] : memref<1x1x64xf32, #tpu.memory_space<vmem>>, vector<1x1x64xf32>
    %485 = vector.shape_cast %484 : vector<1x1x64xf32> to vector<1x64xf32>
    %c0_201 = arith.constant 0 : index
    %c0_202 = arith.constant 0 : index
    %c0_203 = arith.constant 0 : index
    %486 = vector.load %arg31[%c0_201, %c0_202, %c0_203] : memref<1x64x32xf32, #tpu.memory_space<vmem>>, vector<1x64x32xf32>
    %487 = vector.shape_cast %486 : vector<1x64x32xf32> to vector<64x32xf32>
    %c0_204 = arith.constant 0 : index
    %c0_205 = arith.constant 0 : index
    %c0_206 = arith.constant 0 : index
    %488 = vector.load %arg32[%c0_204, %c0_205, %c0_206] : memref<1x1x32xf32, #tpu.memory_space<vmem>>, vector<1x1x32xf32>
    %489 = vector.shape_cast %488 : vector<1x1x32xf32> to vector<1x32xf32>
    %cst_207 = arith.constant dense<0.000000e+00> : vector<16x64xf32>
    %490 = tpu.matmul %481, %483, %cst_207 {dimension_numbers = #tpu.dot_dimension_numbers<[1], [0], [0], [1], [0, 0, 1, 1], [], []>} : vector<16x32xf32>, vector<32x64xf32>, vector<16x64xf32> -> vector<16x64xf32>
    %491 = vector.broadcast %485 : vector<1x64xf32> to vector<16x64xf32>
    %492 = arith.addf %490, %491 : vector<16x64xf32>
    %cst_208 = arith.constant 0.000000e+00 : f32
    %493 = vector.broadcast %cst_208 : f32 to vector<16x64xf32>
    %494 = arith.maximumf %492, %493 : vector<16x64xf32>
    %cst_209 = arith.constant dense<0.000000e+00> : vector<16x32xf32>
    %495 = tpu.matmul %494, %487, %cst_209 {dimension_numbers = #tpu.dot_dimension_numbers<[1], [0], [0], [1], [0, 0, 1, 1], [], []>} : vector<16x64xf32>, vector<64x32xf32>, vector<16x32xf32> -> vector<16x32xf32>
    %496 = vector.broadcast %489 : vector<1x32xf32> to vector<16x32xf32>
    %497 = arith.addf %495, %496 : vector<16x32xf32>
    %498 = arith.addf %481, %497 : vector<16x32xf32>
    %499 = vector.extract_strided_slice %299 {offsets = [2, 0], sizes = [1, 32], strides = [1, 1]} : vector<3x32xf32> to vector<1x32xf32>
    %500 = vector.extract_strided_slice %301 {offsets = [2, 0], sizes = [1, 32], strides = [1, 1]} : vector<3x32xf32> to vector<1x32xf32>
    %cst_210 = arith.constant dense<0.000000e+00> : vector<16xf32>
    %501 = vector.multi_reduction <add>, %498, %cst_210 [1] : vector<16x32xf32> to vector<16xf32>
    %502 = vector.shape_cast %501 : vector<16xf32> to vector<16x1xf32>
    %cst_211 = arith.constant 3.200000e+01 : f32
    %503 = vector.broadcast %cst_211 : f32 to vector<16x1xf32>
    %504 = arith.divf %502, %503 : vector<16x1xf32>
    %505 = vector.broadcast %504 : vector<16x1xf32> to vector<16x32xf32>
    %506 = arith.subf %498, %505 : vector<16x32xf32>
    %507 = arith.mulf %506, %506 : vector<16x32xf32>
    %cst_212 = arith.constant dense<0.000000e+00> : vector<16xf32>
    %508 = vector.multi_reduction <add>, %507, %cst_212 [1] : vector<16x32xf32> to vector<16xf32>
    %509 = vector.shape_cast %508 : vector<16xf32> to vector<16x1xf32>
    %cst_213 = arith.constant 3.200000e+01 : f32
    %510 = vector.broadcast %cst_213 : f32 to vector<16x1xf32>
    %511 = arith.divf %509, %510 : vector<16x1xf32>
    %512 = vector.broadcast %504 : vector<16x1xf32> to vector<16x32xf32>
    %513 = arith.subf %498, %512 : vector<16x32xf32>
    %cst_214 = arith.constant 9.99999974E-6 : f32
    %514 = vector.broadcast %cst_214 : f32 to vector<16x1xf32>
    %515 = arith.addf %511, %514 : vector<16x1xf32>
    %516 = math.rsqrt %515 : vector<16x1xf32>
    %517 = vector.broadcast %516 : vector<16x1xf32> to vector<16x32xf32>
    %518 = arith.mulf %513, %517 : vector<16x32xf32>
    %519 = vector.broadcast %499 : vector<1x32xf32> to vector<16x32xf32>
    %520 = arith.mulf %518, %519 : vector<16x32xf32>
    %521 = vector.broadcast %500 : vector<1x32xf32> to vector<16x32xf32>
    %522 = arith.addf %520, %521 : vector<16x32xf32>
    %c0_215 = arith.constant 0 : index
    %c0_216 = arith.constant 0 : index
    %523 = vector.load %arg35[%c0_215, %c0_216] : memref<1x32xf32, #tpu.memory_space<vmem>>, vector<1x32xf32>
    %c0_217 = arith.constant 0 : index
    %c0_218 = arith.constant 0 : index
    %524 = vector.load %arg36[%c0_217, %c0_218] : memref<1x32xf32, #tpu.memory_space<vmem>>, vector<1x32xf32>
    %cst_219 = arith.constant dense<0.000000e+00> : vector<16xf32>
    %525 = vector.multi_reduction <add>, %522, %cst_219 [1] : vector<16x32xf32> to vector<16xf32>
    %526 = vector.shape_cast %525 : vector<16xf32> to vector<16x1xf32>
    %cst_220 = arith.constant 3.200000e+01 : f32
    %527 = vector.broadcast %cst_220 : f32 to vector<16x1xf32>
    %528 = arith.divf %526, %527 : vector<16x1xf32>
    %529 = vector.broadcast %528 : vector<16x1xf32> to vector<16x32xf32>
    %530 = arith.subf %522, %529 : vector<16x32xf32>
    %531 = arith.mulf %530, %530 : vector<16x32xf32>
    %cst_221 = arith.constant dense<0.000000e+00> : vector<16xf32>
    %532 = vector.multi_reduction <add>, %531, %cst_221 [1] : vector<16x32xf32> to vector<16xf32>
    %533 = vector.shape_cast %532 : vector<16xf32> to vector<16x1xf32>
    %cst_222 = arith.constant 3.200000e+01 : f32
    %534 = vector.broadcast %cst_222 : f32 to vector<16x1xf32>
    %535 = arith.divf %533, %534 : vector<16x1xf32>
    %536 = vector.broadcast %528 : vector<16x1xf32> to vector<16x32xf32>
    %537 = arith.subf %522, %536 : vector<16x32xf32>
    %cst_223 = arith.constant 9.99999974E-6 : f32
    %538 = vector.broadcast %cst_223 : f32 to vector<16x1xf32>
    %539 = arith.addf %535, %538 : vector<16x1xf32>
    %540 = math.rsqrt %539 : vector<16x1xf32>
    %541 = vector.broadcast %540 : vector<16x1xf32> to vector<16x32xf32>
    %542 = arith.mulf %537, %541 : vector<16x32xf32>
    %543 = vector.broadcast %523 : vector<1x32xf32> to vector<16x32xf32>
    %544 = arith.mulf %542, %543 : vector<16x32xf32>
    %545 = vector.broadcast %524 : vector<1x32xf32> to vector<16x32xf32>
    %546 = arith.addf %544, %545 : vector<16x32xf32>
    %c0_224 = arith.constant 0 : index
    %c0_225 = arith.constant 0 : index
    %547 = vector.load %arg37[%c0_224, %c0_225] : memref<32x128xf32, #tpu.memory_space<vmem>>, vector<32x128xf32>
    %cst_226 = arith.constant dense<0.000000e+00> : vector<16x128xf32>
    %548 = tpu.matmul %546, %547, %cst_226 {dimension_numbers = #tpu.dot_dimension_numbers<[1], [0], [0], [1], [0, 0, 1, 1], [], []>} : vector<16x32xf32>, vector<32x128xf32>, vector<16x128xf32> -> vector<16x128xf32>
    %c0_227 = arith.constant 0 : index
    %c0_228 = arith.constant 0 : index
    %549 = vector.load %arg38[%c0_227, %c0_228] : memref<1x128xf32, #tpu.memory_space<vmem>>, vector<1x128xf32>
    %550 = vector.broadcast %549 : vector<1x128xf32> to vector<16x128xf32>
    %551 = arith.addf %548, %550 : vector<16x128xf32>
    %c0_229 = arith.constant 0 : index
    %c0_230 = arith.constant 0 : index
    %552 = vector.load %arg39[%c0_229, %c0_230] : memref<16x128xf32, #tpu.memory_space<vmem>>, vector<16x128xf32>
    tpu.vector_store %arg39[%c0_229, %c0_230], %551 {strides = array<i32>} : memref<16x128xf32, #tpu.memory_space<vmem>>, vector<16x128xf32>,
    return
  }
}

</mosaic_0001>

<bundles_post_ra>
// kernel: model_forward.1
= control target key start
LH: loop header
LB: loop body
LE: loop exit
PB: predicated region body
PF: predicated region fallthrough
CT: control target
= control target key end

     0   :  { %s6624_s3 = smov 2   ;;  %s6625_s10 = smov 9   ;;  %vm175_vm0 = vcmask 1043456   ;;  %vm168_vm1 = vcmask 97280   ;;  %vm6626_vm2 = vmmov 1   ;;  %vm280_vm4 = vcmask 261120   ;;  %s7593_s0 = inlined_call_operand.smem [shape: u32[40], index: -1, kind: input, shape index: {}] }
   0x1   :  { %s4951_s6 = sld [smem:[%s7593_s0 + %s6624_s3]]   ;;  %vm6685_vm3 = vmpackc.low %vm175_vm0, %vm6626_vm2  ;;  %s6627_s14 = smov 3   ;;  %vm392_vm5 = vcmask 64512   ;;  %vm546_vm7 = vcmask 523264  }
   0x2   :  { %s1_s9 = sld [smem:[%s7593_s0]]   ;;  %s6628_s18 = smov 10   ;;  %vm6741_vm6 = vmpackc.low %vm392_vm5, %vm392_vm5 }
   0x3   :  { %s6683_s13 = sld [smem:[%s7593_s0 + %s6625_s10]]   ;;  %s6629_s22 = smov 112  }
   0x4   :  { %s4952_s17 = sld [smem:[%s7593_s0 + %s6627_s14]]   ;;  %s6630_s23 = smov 120  }
   0x5   :  { %s6713_s21 = sld [smem:[%s7593_s0 + %s6628_s18]]   ;;  %s6631_s24 = smov 104  }
   0x6   :  { %s6632_s25 = smov 96   ;;  %s6633_s26 = smov 6  }
   0x7   :  { %v164_v1 = vld [vmem:[%s4951_s6] sm:$0xff]  ;;  %v165_v2 = vld [vmem:[%s4951_s6 + $0x8] sm:$0xf]  ;;  %s6771_s29 = sld [smem:[%s7593_s0 + %s6633_s26]]   ;;  %s6634_s30 = smov 64  }
   0x8   :  { %v162_v3 = vld [vmem:[%s1_s9] sm:$0xff]  ;;  %v5934_v4 = vpack.c.bf16 %v165_v2, %v164_v1  ;;  %v163_v8 = vld [vmem:[%s1_s9 + $0x8] sm:$0xff]  ;;  %s6635_s1 = smov 11   ;;  %s6636_s5 = smov 12  }
   0x9   :  { %5464 = vmatprep.mubr.msk.f32.mxu1 %vm168_vm1, %v162_v3  ;;  %v256_v5 = vld [vmem:[%s6683_s13] sm:$0xff]  ;;  %v257_v6 = vld [vmem:[%s6683_s13 + $0x8] sm:$0xff]  ;;  %v258_v9 = vld [vmem:[%s6683_s13 + $0x10] sm:$0xff]  ;;  %s6864_s4 = sld [smem:[%s7593_s0 + %s6635_s1]]   ;;  %s6637_s9 = smov 13  }
   0xa   :  { %v5940_v7 = vpack.c.bf16 %v257_v6, %v256_v5  ;;  %5936 = vmatprep.subr.msk.bf16.mxu1 %vm6685_vm3, %v5934_v4  ;;  %v259_v10 = vld [vmem:[%s6683_s13 + $0x18] sm:$0xff]  ;;  %v166_v12 = vld [vmem:[%s4952_s17] sm:$0xff]  ;;  %v167_v13 = vld [vmem:[%s4952_s17 + $0x8] sm:$0xff]  ;;  %s6881_s8 = sld [smem:[%s7593_s0 + %s6636_s5]]   ;;  %s6638_s14 = smov 15  }
   0xb   :  { %5939 = vmatpush3.bf16.msk.msra.mxu1 %vm6685_vm3, %v5934_v4  ;;  %v5944_v11 = vpack.c.bf16 %v259_v10, %v258_v9  ;;  %v4992_v18 = vld [vmem:[%s6713_s21] ss:$0 sm:$0xff]  ;;  %s6893_s12 = sld [smem:[%s7593_s0 + %s6637_s9]]   ;;  %s6639_s18 = smov 17  }
   0xc   :  { %5941 = vmatprep.subr.bf16.mxu1 %v5940_v7  ;;  %s6902_s17 = sld [smem:[%s7593_s0 + %s6638_s14]]   ;;  %s6640_s27 = smov 18  }
   0xd   :  { %v6774_v51 = vld [vmem:[%s6771_s29 + $0x8] sm:$0xff]  ;;  %v6777_v54 = vld [vmem:[%s6771_s29] sm:$0xff]  ;;  %v6783_v62 = vld [vmem:[%s6771_s29 + $0x10] sm:$0xff]  ;;  %s6909_s26 = sld [smem:[%s7593_s0 + %s6639_s18]]   ;;  %s6641_s2 = smov 14  }
   0xe   :  { %5465 = vmatmul.mubr.msk.f32.vlgmr.msra.gmra.mrb[0].mxu1 %vm168_vm1, %v163_v8  ;;  %v6787_v2 = vld [vmem:[%s6771_s29 + $0x18] sm:$0xff]  ;;  %s6914_s1 = sld [smem:[%s7593_s0 + %s6640_s27]]   ;;  %s6642_s7 = smov 16  }
   0xf   :  { %5943 = vmatpush3.bf16.msra.mxu1 %v5940_v7  ;;  %v6792_v7 = vld [vmem:[%s6771_s29 + $0x20] sm:$0xff]  ;;  %s6942_s6 = sld [smem:[%s7593_s0 + %s6641_s2]]   ;;  %s6644_s16 = smov 1  }
  0x10   :  { %5945 = vmatprep.subr.bf16.mxu1 %v5944_v11  ;;  %s6950_s11 = sld [smem:[%s7593_s0 + %s6642_s7]]   ;;  %s6646_s2 = smov 5  }
  0x11   :  { %s4950_s20 = sld [smem:[%s7593_s0 + %s6644_s16]]   ;;  %s6647_s9 = smov 22  }
  0x12   :  { %s4954_s7 = sld [smem:[%s7593_s0 + %s6646_s2]]   ;;  %s6651_s19 = smov 25  }
  0x13   :  { %5947 = vmatpush3.bf16.msra.mxu1 %v5944_v11  ;;  %v6796_v11 = vld [vmem:[%s6771_s29 + $0x28] sm:$0xff]  ;;  %s4974_s27 = sld [smem:[%s7593_s0 + %s6651_s19]]   ;;  %s6652_s28 = smov 26  }
  0x14   :  { %s4975_s3 = sld [smem:[%s7593_s0 + %s6652_s28]]   ;;  %s6653_s5 = smov 19  }
  0x15   :  { %s4968_s10 = sld [smem:[%s7593_s0 + %s6653_s5]]   ;;  %s6655_s14 = smov 33  }
  0x16   :  { %s6660_s2 = smov 29   ;;  %s6666_s19 = smov 36  }
  0x17   :  { %s6667_s28 = smov 38   ;;  %s6668_s5 = smov 39  }
  0xe1   :  { %v5466_v14 = vpop.f32.mrb[0].mxu1 }
  0xe2   :  { %v245_v15 = vpop.f32.mrb[1].mxu1  ;;  %v6704_v17 = vadd.f32 %v5466_v14, %v167_v13 }
  0xe3   :  { %v6702_v16 = vadd.f32 %v245_v15, %v166_v12 }
  0xe5   :  { %5475 = vmatprep.mubr.msk.f32.mxu1 %vm280_vm4, %v6702_v16 }
  0xe6   :  { %5476 = vmatmul.mubr.msk.f32.vlgmr.msra.gmra.mrb[2].mxu1 %vm280_vm4, %v6704_v17 }
 0x1b9   :  { %v5477_v19 = vpop.f32.mrb[2].mxu1 }
 0x1ba   :  { %v353_v20 = vpop.f32.mrb[3].mxu1  ;;  %v359_v22 = vadd.f32 %v5477_v19, %v4992_v18 }
 0x1bb   :  { %v354_v21 = vadd.f32 %v4992_v18, %v353_v20  ;;  %v6803_v18 = vld [vmem:[%s6771_s29 + $0x30] sm:$0xff] }
 0x1bd   :  { %368 = vrot.lane.b32.xlu1 %v354_v21, %s6629_s22  ;;  %364 = vrot.lane.b32.xlu0 %v354_v21, %s6630_s23  ;;  %v6723_v23 = vpack.i.bf16 %v359_v22, %v354_v21 }
 0x1be   :  { %5494 = vmatprep.mubr.msk.f32.mxu0 %vm392_vm5, %v354_v21 }
 0x1c1   :  { %370 = vrot.lane.b32.xlu1 %v359_v22, %s6629_s22  ;;  %366 = vrot.lane.b32.xlu0 %v359_v22, %s6630_s23 }
 0x1c5   :  { %374 = vrot.lane.b32.xlu1 %v359_v22, %s6631_s24  ;;  %372 = vrot.lane.b32.xlu0 %v354_v21, %s6631_s24 }
 0x1c9   :  { %6296 = vrot.lane.b32.xlu0 %v6723_v23, %s6632_s25 }
 0x22f   :  { %v369_v24 = vpop.permute.xlu1 %368  ;;  %v365_v25 = vpop.permute.xlu0 %364 }
 0x233   :  { %v371_v26 = vpop.permute.xlu1 %370  ;;  %v367_v27 = vpop.permute.xlu0 %366 }
 0x234   :  { %v6727_v28 = vpack.i.bf16 %v371_v26, %v369_v24  ;;  %v6729_v29 = vpack.i.bf16 %v367_v27, %v365_v25 }
 0x236   :  { %6306 = vrot.lane.b32.xlu0 %v6727_v28, %s6632_s25  ;;  %6301 = vrot.lane.b32.xlu1 %v6729_v29, %s6632_s25 }
 0x237   :  { %v375_v30 = vpop.permute.xlu1 %374  ;;  %v373_v31 = vpop.permute.xlu0 %372 }
 0x238   :  { %v6735_v32 = vpack.i.bf16 %v375_v30, %v373_v31 }
 0x23a   :  { %6311 = vrot.lane.b32.xlu1 %v6735_v32, %s6632_s25 }
 0x23b   :  { %v6297_v33 = vpop.permute.xlu0 %6296 }
 0x23c   :  { %v6299_v34 = vunpack.i.h.bf16 %v6297_v33  ;;  %v6298_v35 = vunpack.i.l.bf16 %v6297_v33 }
 0x23e   :  { %v5948_v37 = vpack.c.bf16 %v6299_v34, %v6298_v35 }
 0x240   :  { %5950 = vmatprep.subr.msk.bf16.mxu0 %vm6741_vm6, %v5948_v37 }
 0x241   :  { %5953 = vmatpush3.bf16.xpose.msk.msra.mxu0 %vm6741_vm6, %v5948_v37 }
 0x2a8   :  { %v6302_v38 = vpop.permute.xlu1 %6301  ;;  %v6307_v39 = vpop.permute.xlu0 %6306 }
 0x2a9   :  { %v6304_v40 = vunpack.i.h.bf16 %v6302_v38  ;;  %v6303_v41 = vunpack.i.l.bf16 %v6302_v38  ;;  %v6309_v42 = vunpack.i.h.bf16 %v6307_v39  ;;  %v6308_v43 = vunpack.i.l.bf16 %v6307_v39 }
 0x2ab   :  { %v5954_v44 = vpack.c.bf16 %v6304_v40, %v6303_v41  ;;  %v5960_v45 = vpack.c.bf16 %v6309_v42, %v6308_v43 }
 0x2ac   :  { %v6312_v46 = vpop.permute.xlu1 %6311 }
 0x2ad   :  { %5956 = vmatprep.subr.msk.bf16.mxu0 %vm6741_vm6, %v5954_v44  ;;  %v6314_v47 = vunpack.i.h.bf16 %v6312_v46  ;;  %v6313_v48 = vunpack.i.l.bf16 %v6312_v46 }
 0x2ae   :  { %5959 = vmatpush3.bf16.xpose.msk.msra.mxu0 %vm6741_vm6, %v5954_v44 }
 0x2af   :  { %5962 = vmatprep.subr.msk.bf16.mxu0 %vm6741_vm6, %v5960_v45  ;;  %v5966_v49 = vpack.c.bf16 %v6314_v47, %v6313_v48 }
 0x2b6   :  { %5965 = vmatpush3.bf16.xpose.msk.msra.mxu0 %vm6741_vm6, %v5960_v45 }
 0x2b7   :  { %5968 = vmatprep.subr.msk.bf16.mxu0 %vm6741_vm6, %v5966_v49 }
 0x2be   :  { %5971 = vmatpush3.bf16.xpose.msk.msra.mxu0 %vm6741_vm6, %v5966_v49 }
 0x2c5   :  { %5495 = vmatmul.mubr.msk.f32.vlgmr.msra.gmra.mrb[0].mxu0 %vm392_vm5, %v359_v22 }
 0x2c6   :  { %5497 = vmatprep.mubr.msk.f32.mxu0 %vm392_vm5, %v365_v25 }
 0x2c9   :  { %5498 = vmatmul.mubr.msk.f32.gmra.mrb[2].mxu0 %vm392_vm5, %v367_v27 }
 0x2ca   :  { %5500 = vmatprep.mubr.msk.f32.mxu0 %vm392_vm5, %v369_v24  ;;  %v6809_v24 = vld [vmem:[%s6771_s29 + $0x38] sm:$0xff] }
 0x2cd   :  { %5501 = vmatmul.mubr.msk.f32.gmra.mrb[4].mxu0 %vm392_vm5, %v371_v26 }
 0x2ce   :  { %5503 = vmatprep.mubr.msk.f32.mxu0 %vm392_vm5, %v373_v31 }
 0x2d1   :  { %5504 = vmatmul.mubr.msk.f32.gmra.mrb[6].mxu0 %vm392_vm5, %v375_v30 }
 0x398   :  { %v5496_v50 = vpop.f32.mrb[0].mxu0 }
 0x399   :  { %v531_v52 = vmul.f32 0.35355338, %v5496_v50  ;;  %v491_v53 = vpop.f32.mrb[1].mxu0 }
 0x39a   :  { %v530_v55 = vmul.f32 0.35355338, %v491_v53 }
 0x39b   :  { %v539_v56 = vadd.f32 %v531_v52, %v6774_v51 }
 0x39c   :  { %v5499_v57 = vpop.f32.mrb[2].mxu0  ;;  %v538_v58 = vadd.f32 %v530_v55, %v6777_v54 }
 0x39d   :  { %v533_v59 = vmul.f32 0.35355338, %v5499_v57  ;;  %v501_v60 = vpop.f32.mrb[3].mxu0  ;;  %v550_v61 = vsel %vm546_vm7, %v539_v56, -inf }
 0x39e   :  { %v532_v63 = vmul.f32 0.35355338, %v501_v60  ;;  %551 = vmax.xlane.f32.xlu1 %v550_v61  ;;  %v547_v1 = vsel %vm546_vm7, %v538_v58, -inf }
 0x39f   :  { %548 = vmax.xlane.f32.xlu0 %v547_v1  ;;  %v541_v6 = vadd.f32 %v533_v59, %v6787_v2 }
 0x3a0   :  { %v5502_v3 = vpop.f32.mrb[4].mxu0  ;;  %v540_v4 = vadd.f32 %v532_v63, %v6783_v62 }
 0x3a1   :  { %v511_v5 = vpop.f32.mrb[5].mxu0  ;;  %v535_v8 = vmul.f32 0.35355338, %v5502_v3  ;;  %v556_v15 = vsel %vm546_vm7, %v541_v6, -inf }
 0x3a2   :  { %v534_v9 = vmul.f32 0.35355338, %v511_v5  ;;  %v553_v10 = vsel %vm546_vm7, %v540_v4, -inf }
 0x3a3   :  { %554 = vmax.xlane.f32.xlu0 %v553_v10  ;;  %v543_v22 = vadd.f32 %v535_v8, %v6796_v11 }
 0x3a4   :  { %v5505_v12 = vpop.f32.mrb[6].mxu0  ;;  %v6799_v13 = vadd.f32 %v534_v9, %v6792_v7 }
 0x3a5   :  { %v521_v14 = vpop.f32.mrb[7].mxu0  ;;  %v537_v19 = vmul.f32 0.35355338, %v5505_v12  ;;  %v562_v26 = vsel %vm546_vm7, %v543_v22, -inf }
 0x3a6   :  { %v536_v20 = vmul.f32 0.35355338, %v521_v14  ;;  %v559_v21 = vsel %vm546_vm7, %v6799_v13, -inf }
 0x3a7   :  { %557 = vmax.xlane.f32.xlu0 %v556_v15  ;;  %560 = vmax.xlane.f32.xlu1 %v559_v21  ;;  %v6818_v30 = vadd.f32 %v537_v19, %v6809_v24 }
 0x3a8   :  { %v6812_v25 = vadd.f32 %v536_v20, %v6803_v18 }
 0x3a9   :  { %v568_v31 = vsel %vm546_vm7, %v6818_v30, -inf }
 0x3aa   :  { %v565_v27 = vsel %vm546_vm7, %v6812_v25, -inf }
 0x3ab   :  { %563 = vmax.xlane.f32.xlu0 %v562_v26  ;;  %566 = vmax.xlane.f32.xlu1 %v565_v27 }
 0x3af   :  { %569 = vmax.xlane.f32.xlu0 %v568_v31 }
 0x3bc   :  { %6316 = vrot.lane.b32.xlu1 %v6723_v23, %s6634_s30 }
 0x3c5   :  { %6321 = vrot.lane.b32.xlu0 %v6729_v29, %s6634_s30 }
 0x42b   :  { %v552_v33 = vpop.xlane.xlu1 %551 }
 0x42c   :  { %v572_v34 = vsub.f32 %v539_v56, %v552_v33  ;;  %v549_v35 = vpop.xlane.xlu0 %548 }
 0x42d   :  { %v571_v37 = vsub.f32 %v538_v58, %v549_v35 }
 0x42e   :  { %v581_v38 = vmul.f32 1.442695, %v572_v34 }
 0x42f   :  { %v579_v39 = vmul.f32 1.442695, %v571_v37 }
 0x430   :  { %6460 = vpow2.f32 %v581_v38  ;;  %v555_v40 = vpop.xlane.xlu0 %554 }
 0x431   :  { %6462 = vpow2.f32 %v579_v39  ;;  %v573_v41 = vsub.f32 %v540_v4, %v555_v40 }
 0x433   :  { %v583_v42 = vmul.f32 1.442695, %v573_v41 }
 0x434   :  { %v558_v43 = vpop.xlane.xlu0 %557  ;;  %v561_v44 = vpop.xlane.xlu1 %560 }
 0x435   :  { %6464 = vpow2.f32 %v583_v42  ;;  %v574_v45 = vsub.f32 %v541_v6, %v558_v43  ;;  %v575_v10 = vsub.f32 %v6799_v13, %v561_v44 }
 0x437   :  { %v585_v46 = vmul.f32 1.442695, %v574_v45  ;;  %v587_v12 = vmul.f32 1.442695, %v575_v10 }
 0x438   :  { %v564_v23 = vpop.xlane.xlu0 %563  ;;  %v567_v47 = vpop.xlane.xlu1 %566 }
 0x439   :  { %6466 = vpow2.f32 %v585_v46  ;;  %v576_v29 = vsub.f32 %v543_v22, %v564_v23  ;;  %v577_v14 = vsub.f32 %v6812_v25, %v567_v47 }
 0x43a   :  { %v6826_v48 = vpop.eup %6460 }
 0x43b   :  { %v6463_v49 = vpop.eup %6462  ;;  %v589_v50 = vmul.f32 1.442695, %v576_v29  ;;  %v598_v52 = vsel %vm546_vm7, %v6826_v48, 0.0  ;;  %v591_v15 = vmul.f32 1.442695, %v577_v14 }
 0x43c   :  { %599 = vadd.xlane.f32.xlu0 %v598_v52  ;;  %v570_v53 = vpop.xlane.xlu0 %569  ;;  %v6317_v55 = vpop.permute.xlu1 %6316  ;;  %v595_v56 = vsel %vm546_vm7, %v6463_v49, 0.0 }
 0x43d   :  { %6468 = vpow2.f32 %v589_v50  ;;  %v6319_v57 = vunpack.i.h.bf16 %v6317_v55  ;;  %v6318_v58 = vunpack.i.l.bf16 %v6317_v55  ;;  %596 = vadd.xlane.f32.xlu1 %v595_v56  ;;  %v578_v19 = vsub.f32 %v6818_v30, %v570_v53 }
 0x43e   :  { %6470 = vpow2.f32 %v587_v12 }
 0x43f   :  { %v6831_v59 = vpop.eup %6464  ;;  %v5972_v60 = vpack.c.bf16 %v6319_v57, %v6318_v58  ;;  %6472 = vpow2.f32 %v591_v15  ;;  %v593_v20 = vmul.f32 1.442695, %v578_v19  ;;  %v5027_v19 = vld [vmem:[%s6881_s8] ss:$0 sm:$0xff] }
 0x440   :  { %v6322_v61 = vpop.permute.xlu0 %6321  ;;  %v601_v63 = vsel %vm546_vm7, %v6831_v59, 0.0 }
 0x441   :  { %v6324_v1 = vunpack.i.h.bf16 %v6322_v61  ;;  %v6323_v3 = vunpack.i.l.bf16 %v6322_v61  ;;  %602 = vadd.xlane.f32.xlu1 %v601_v63  ;;  %5973 = vmatprep.subr.bf16.mxu1 %v5972_v60  ;;  %6474 = vpow2.f32 %v593_v20  ;;  %v262_v63 = vld [vmem:[%s6864_s4 + $0x8] sm:$0xff] }
 0x442   :  { %5975 = vmatpush3.bf16.msra.mxu1 %v5972_v60 }
 0x443   :  { %v6467_v4 = vpop.eup %6466  ;;  %v5976_v5 = vpack.c.bf16 %v6324_v1, %v6323_v3  ;;  %v261_v1 = vld [vmem:[%s6864_s4] sm:$0xff] }
 0x444   :  { %v604_v6 = vsel %vm546_vm7, %v6467_v4, 0.0 }
 0x445   :  { %605 = vadd.xlane.f32.xlu0 %v604_v6  ;;  %5977 = vmatprep.subr.bf16.mxu1 %v5976_v5 }
 0x446   :  { %5979 = vmatpush3.bf16.msra.mxu1 %v5976_v5 }
 0x447   :  { %v6836_v8 = vpop.eup %6468 }
 0x448   :  { %v610_v9 = vsel %vm546_vm7, %v6836_v8, 0.0  ;;  %v6471_v21 = vpop.eup %6470 }
 0x449   :  { %611 = vadd.xlane.f32.xlu0 %v610_v9  ;;  %v607_v22 = vsel %vm546_vm7, %v6471_v21, 0.0  ;;  %v6473_v26 = vpop.eup %6472  ;;  %v264_v9 = vld [vmem:[%s6864_s4 + $0x18] sm:$0xff] }
 0x452   :  { %6326 = vrot.lane.b32.xlu1 %v6727_v28, %s6634_s30  ;;  %v613_v28 = vsel %vm546_vm7, %v6473_v26, 0.0 }
 0x45f   :  { %6331 = vrot.lane.b32.xlu0 %v6735_v32, %s6634_s30  ;;  %v6475_v32 = vpop.eup %6474 }
 0x460   :  { %v616_v13 = vsel %vm546_vm7, %v6475_v32, 0.0 }
 0x476   :  { %608 = vadd.xlane.f32.xlu1 %v607_v22 }
 0x47a   :  { %614 = vadd.xlane.f32.xlu1 %v613_v28 }
 0x47e   :  { %617 = vadd.xlane.f32.xlu1 %v616_v13 }
 0x4c9   :  { %v600_v27 = vpop.xlane.xlu0 %599 }
 0x4ca   :  { %v597_v25 = vpop.xlane.xlu1 %596 }
 0x4cb   :  { %6476 = vrcp.f32 %v597_v25 }
 0x4cc   :  { %6478 = vrcp.f32 %v600_v27 }
 0x4ce   :  { %v603_v31 = vpop.xlane.xlu1 %602 }
 0x4cf   :  { %6480 = vrcp.f32 %v603_v31 }
 0x4d2   :  { %v606_v30 = vpop.xlane.xlu0 %605  ;;  %v6327_v33 = vpop.permute.xlu1 %6326 }
 0x4d3   :  { %v6329_v34 = vunpack.i.h.bf16 %v6327_v33  ;;  %v6328_v35 = vunpack.i.l.bf16 %v6327_v33  ;;  %6482 = vrcp.f32 %v606_v30 }
 0x4d5   :  { %v6477_v37 = vpop.eup %6476  ;;  %v5980_v38 = vpack.c.bf16 %v6329_v34, %v6328_v35 }
 0x4d6   :  { %v612_v39 = vpop.xlane.xlu0 %611  ;;  %v627_v40 = vmul.f32 %v6477_v37, %v6463_v49  ;;  %v6479_v45 = vpop.eup %6478 }
 0x4d7   :  { %5981 = vmatprep.subr.bf16.mxu1 %v5980_v38  ;;  %v628_v23 = vmul.f32 %v6479_v45, %v6826_v48  ;;  %6484 = vrcp.f32 %v612_v39  ;;  %v1170_v45 = vld [vmem:[%s6902_s17] sm:$0xff] }
 0x4d8   :  { %5983 = vmatpush3.bf16.msra.mxu1 %v5980_v38  ;;  %5522 = vmatprep.mubr.msk.f32.mxu1 %vm546_vm7, %v627_v40  ;;  %v1166_v40 = vld [vmem:[%s6893_s12 + $0x8] sm:$0xff] }
 0x4d9   :  { %v6481_v46 = vpop.eup %6480 }
 0x4da   :  { %v6332_v41 = vpop.permute.xlu0 %6331  ;;  %v629_v29 = vmul.f32 %v6481_v46, %v6831_v59  ;;  %v1171_v46 = vld [vmem:[%s6902_s17 + $0x8] sm:$0xff] }
 0x4db   :  { %v6334_v42 = vunpack.i.h.bf16 %v6332_v41  ;;  %v6333_v43 = vunpack.i.l.bf16 %v6332_v41 }
 0x4dd   :  { %v5984_v44 = vpack.c.bf16 %v6334_v42, %v6333_v43  ;;  %v6483_v47 = vpop.eup %6482  ;;  %v1167_v42 = vld [vmem:[%s6893_s12 + $0x10] sm:$0xff]  ;;  %v1168_v43 = vld [vmem:[%s6893_s12 + $0x18] sm:$0xff] }
 0x4de   :  { %v630_v49 = vmul.f32 %v6483_v47, %v6467_v4 }
 0x4df   :  { %5985 = vmatprep.subr.bf16.mxu1 %v5984_v44 }
 0x4e0   :  { %5987 = vmatpush3.bf16.msra.mxu1 %v5984_v44  ;;  %v5992_v44 = vpack.c.bf16 %v1168_v43, %v1167_v42 }
 0x4e1   :  { %v6485_v55 = vpop.eup %6484  ;;  %5534 = vmatprep.subr.mxu1 %v262_v63 }
 0x4e2   :  { %v632_v57 = vmul.f32 %v6485_v55, %v6836_v8  ;;  %v263_v8 = vld [vmem:[%s6864_s4 + $0x10] sm:$0xff] }
 0x4e3   :  { %5523 = vmatmul.mubr.msk.f32.vlgmr.msra.gmra.mrb[4].mxu1 %vm546_vm7, %v628_v23  ;;  %v5996_v23 = vpack.c.bf16 %v1171_v46, %v1170_v45 }
 0x4e4   :  { %5525 = vmatprep.mubr.msk.f32.mxu1 %vm546_vm7, %v629_v29  ;;  %5535 = vmatpush3.msra.mxu1 %v262_v63 }
 0x4e5   :  { %5539 = vmatprep.subr.mxu1 %v261_v1 }
 0x4e7   :  { %5526 = vmatmul.mubr.msk.f32.gmra.mrb[6].mxu1 %vm546_vm7, %v630_v49  ;;  %v1153_v49 = vlaneseq }
 0x4e9   :  { %v6916_v55 = vshrl.u32 %v1153_v49, 7  ;;  %v5036_v49 = vld [vmem:[%s6683_s13 + $0x20] sm:$0xff] }
 0x503   :  { %v609_v50 = vpop.xlane.xlu1 %608 }
 0x504   :  { %6486 = vrcp.f32 %v609_v50 }
 0x507   :  { %v615_v52 = vpop.xlane.xlu1 %614 }
 0x508   :  { %6488 = vrcp.f32 %v615_v52 }
 0x50b   :  { %v618_v53 = vpop.xlane.xlu1 %617 }
 0x50c   :  { %6490 = vrcp.f32 %v618_v53 }
 0x50e   :  { %v6487_v56 = vpop.eup %6486 }
 0x50f   :  { %v631_v48 = vmul.f32 %v6487_v56, %v6471_v21 }
 0x511   :  { %5528 = vmatprep.mubr.msk.f32.mxu1 %vm546_vm7, %v631_v48  ;;  %v6919_v48 = vsub.s32 0, %v6916_v55 }
 0x512   :  { %v6489_v58 = vpop.eup %6488  ;;  %5529 = vmatmul.mubr.msk.f32.gmra.mrb[8].mxu1 %vm546_vm7, %v632_v57  ;;  %v6922_v57 = vld [vmem:[%s6909_s26] sm:$0x3] }
 0x513   :  { %v633_v59 = vmul.f32 %v6489_v58, %v6473_v26  ;;  %v6925_v58 = vld [vmem:[%s6914_s1] sm:$0x3] }
 0x514   :  { %v1162_v63 = vrot.slane %v6925_v58, %v6919_v48 }
 0x515   :  { %5531 = vmatprep.mubr.msk.f32.mxu1 %vm546_vm7, %v633_v59  ;;  %v1156_v59 = vrot.slane %v6922_v57, %v6919_v48 }
 0x516   :  { %v6491_v60 = vpop.eup %6490 }
 0x517   :  { %v634_v61 = vmul.f32 %v6491_v60, %v6475_v32 }
 0x519   :  { %5532 = vmatmul.mubr.msk.f32.gmra.mrb[10].mxu1 %vm546_vm7, %v634_v61 }
 0x5b6   :  { %v5524_v3 = vpop.f32.mrb[4].mxu1 }
 0x5b7   :  { %v749_v4 = vpop.f32.mrb[5].mxu1 }
 0x5ba   :  { %v5527_v5 = vpop.f32.mrb[6].mxu1 }
 0x5bb   :  { %v759_v6 = vpop.f32.mrb[7].mxu1 }
 0x5bc   :  { %5536 = vmatprep.mubr.msk.f32.mxu1 %vm392_vm5, %v759_v6  ;;  %v1172_v6 = vld [vmem:[%s6902_s17 + $0x10] sm:$0xff] }
 0x5bd   :  { %5537 = vmatmul.mubr.msk.f32.vlgmr.msra.gmra.mrb[12].mxu1 %vm392_vm5, %v5527_v5 }
 0x5be   :  { %5541 = vmatprep.mubr.msk.f32.mxu1 %vm392_vm5, %v749_v4  ;;  %5540 = vmatpush3.msra.mxu1 %v261_v1 }
 0x5bf   :  { %5544 = vmatprep.subr.mxu1 %v263_v8 }
 0x5c5   :  { %5542 = vmatmul.mubr.msk.f32.vlgmr.msra.gmra.mrb[12].mxu1 %vm392_vm5, %v5524_v3 }
 0x5c6   :  { %5545 = vmatpush3.msra.mxu1 %v263_v8  ;;  %v1173_v8 = vld [vmem:[%s6902_s17 + $0x18] sm:$0xff] }
 0x5c7   :  { %5549 = vmatprep.subr.mxu1 %v264_v9 }
 0x5e5   :  { %v5530_v10 = vpop.f32.mrb[8].mxu1 }
 0x5e6   :  { %v769_v12 = vpop.f32.mrb[9].mxu1 }
 0x5e7   :  { %5546 = vmatprep.mubr.msk.f32.mxu1 %vm392_vm5, %v769_v12  ;;  %v6000_v12 = vpack.c.bf16 %v1173_v8, %v1172_v6 }
 0x5e8   :  { %5547 = vmatmul.mubr.msk.f32.vlgmr.msra.gmra.mrb[12].mxu1 %vm392_vm5, %v5530_v10 }
 0x5e9   :  { %5550 = vmatpush3.msra.mxu1 %v264_v9 }
 0x5ec   :  { %v5533_v14 = vpop.f32.mrb[10].mxu1 }
 0x5ed   :  { %v779_v15 = vpop.f32.mrb[11].mxu1 }
 0x5ee   :  { %5551 = vmatprep.mubr.msk.f32.mxu1 %vm392_vm5, %v779_v15  ;;  %v1175_v15 = vld [vmem:[%s6902_s17 + $0x28] sm:$0xff] }
 0x5f0   :  { %5552 = vmatmul.mubr.msk.f32.vlgmr.msra.gmra.mrb[12].mxu1 %vm392_vm5, %v5533_v14  ;;  %v1174_v14 = vld [vmem:[%s6902_s17 + $0x20] sm:$0xff] }
 0x6c3   :  { %v5553_v20 = vpop.f32.mrb[12].mxu1 }
 0x6c4   :  { %v1105_v21 = vpop.f32.mrb[13].mxu1  ;;  %v1123_v22 = vadd.f32 %v5553_v20, %v5027_v19  ;;  %v1176_v20 = vld [vmem:[%s6902_s17 + $0x30] sm:$0xff] }
 0x6c5   :  { %v1122_v26 = vadd.f32 %v5027_v19, %v1105_v21  ;;  %v6004_v19 = vpack.c.bf16 %v1175_v15, %v1174_v14  ;;  %v1177_v21 = vld [vmem:[%s6902_s17 + $0x38] sm:$0xff] }
 0x6c6   :  { %v1125_v13 = vadd.f32 %v1123_v22, %v6704_v17  ;;  %v1165_v17 = vld [vmem:[%s6893_s12] sm:$0xff]  ;;  %v6008_v22 = vpack.c.bf16 %v1177_v21, %v1176_v20 }
 0x6c7   :  { %v1124_v28 = vadd.f32 %v1122_v26, %v6702_v16  ;;  %v5988_v41 = vpack.c.bf16 %v1166_v40, %v1165_v17  ;;  %v5028_v26 = vld [vmem:[%s6942_s6] ss:$0 sm:$0xff] }
 0x6c8   :  { %v1129_v25 = vsel %vm280_vm4, %v1125_v13, 0.0 }
 0x6c9   :  { %v1126_v32 = vsel %vm280_vm4, %v1124_v28, 0.0  ;;  %5989 = vmatprep.subr.bf16.mxu0 %v5988_v41 }
 0x6ca   :  { %1127 = vadd.xlane.f32.xlu1 %v1126_v32  ;;  %5991 = vmatpush3.bf16.msra.mxu0 %v5988_v41 }
 0x6cb   :  { %5993 = vmatprep.subr.bf16.mxu0 %v5992_v44 }
 0x6ce   :  { %1130 = vadd.xlane.f32.xlu1 %v1129_v25  ;;  %5995 = vmatpush3.bf16.msra.mxu0 %v5992_v44 }
 0x6cf   :  { %5997 = vmatprep.subr.bf16.mxu0 %v5996_v23 }
 0x757   :  { %v1128_v27 = vpop.xlane.xlu1 %1127 }
 0x758   :  { %v1133_v31 = vmul.f32 0.03125, %v1128_v27 }
 0x75a   :  { %v1135_v30 = vsub.f32 %v1124_v28, %v1133_v31 }
 0x75b   :  { %v1131_v33 = vpop.xlane.xlu1 %1130 }
 0x75c   :  { %v1134_v34 = vmul.f32 0.03125, %v1131_v33  ;;  %v1137_v35 = vmul.f32 %v1135_v30, %v1135_v30 }
 0x75e   :  { %v1136_v37 = vsub.f32 %v1125_v13, %v1134_v34  ;;  %v1139_v38 = vsel %vm280_vm4, %v1137_v35, 0.0 }
 0x75f   :  { %1140 = vadd.xlane.f32.xlu1 %v1139_v38 }
 0x760   :  { %v1138_v39 = vmul.f32 %v1136_v37, %v1136_v37 }
 0x762   :  { %v1142_v16 = vsel %vm280_vm4, %v1138_v39, 0.0 }
 0x763   :  { %1143 = vadd.xlane.f32.xlu1 %v1142_v16 }
 0x7ec   :  { %v1141_v47 = vpop.xlane.xlu1 %1140 }
 0x7ed   :  { %v1145_v29 = vmul.f32 0.03125, %v1141_v47 }
 0x7ef   :  { %v1147_v50 = vadd.f32 1e-05, %v1145_v29 }
 0x7f0   :  { %v1144_v52 = vpop.xlane.xlu1 %1143 }
 0x7f1   :  { %6492 = vrsqrt.f32 %v1147_v50  ;;  %v1146_v53 = vmul.f32 0.03125, %v1144_v52  ;;  %v5037_v50 = vld [vmem:[%s6683_s13 + $0x28] sm:$0xff] }
 0x7f2   :  { %v6012_v52 = vpack.c.bf16 %v5037_v50, %v5036_v49 }
 0x7f3   :  { %v1148_v56 = vadd.f32 1e-05, %v1146_v53  ;;  %v5038_v53 = vld [vmem:[%s6683_s13 + $0x30] sm:$0xff] }
 0x7f4   :  { %6013 = vmatprep.subr.bf16.mxu1 %v6012_v52 }
 0x7f5   :  { %6494 = vrsqrt.f32 %v1148_v56  ;;  %6015 = vmatpush3.bf16.msra.mxu1 %v6012_v52  ;;  %v5039_v56 = vld [vmem:[%s6683_s13 + $0x38] sm:$0xff]  ;;  %s6643_s13 = smov 4  }
 0x7f6   :  { %s4953_s15 = sld [smem:[%s7593_s0 + %s6643_s13]]   ;;  %s6654_s13 = smov 20  }
 0x7fb   :  { %v6493_v60 = vpop.eup %6492 }
 0x7fc   :  { %v1151_v61 = vmul.f32 %v6493_v60, %v1135_v30  ;;  %v5031_v30 = vld [vmem:[%s6950_s11] ss:$0 sm:$0xff] }
 0x7fe   :  { %v1157_v1 = vmul.f32 %v1156_v59, %v1151_v61 }
 0x7ff   :  { %v6495_v3 = vpop.eup %6494 }
 0x800   :  { %v1152_v4 = vmul.f32 %v6495_v3, %v1136_v37  ;;  %v1163_v5 = vadd.f32 %v1162_v63, %v1157_v1 }
 0x802   :  { %v1158_v9 = vmul.f32 %v1156_v59, %v1152_v4  ;;  %5562 = vmatprep.mubr.msk.f32.mxu0 %vm280_vm4, %v1163_v5  ;;  %v6016_v59 = vpack.c.bf16 %v5039_v56, %v5038_v53 }
 0x804   :  { %v1164_v10 = vadd.f32 %v1162_v63, %v1158_v9  ;;  %6017 = vmatprep.subr.bf16.mxu1 %v6016_v59 }
 0x805   :  { %6019 = vmatpush3.bf16.msra.mxu1 %v6016_v59 }
 0x806   :  { %5563 = vmatmul.mubr.msk.f32.vlgmr.msra.gmra.mrb[8].mxu0 %vm280_vm4, %v1164_v10 }
 0x807   :  { %5999 = vmatpush3.bf16.msra.mxu0 %v5996_v23 }
 0x808   :  { %6001 = vmatprep.subr.bf16.mxu0 %v6000_v12 }
 0x80b   :  { %6003 = vmatpush3.bf16.msra.mxu0 %v6000_v12 }
 0x80c   :  { %6005 = vmatprep.subr.bf16.mxu0 %v6004_v19 }
 0x80f   :  { %6007 = vmatpush3.bf16.msra.mxu0 %v6004_v19 }
 0x810   :  { %6009 = vmatprep.subr.bf16.mxu0 %v6008_v22 }
 0x813   :  { %6011 = vmatpush3.bf16.msra.mxu0 %v6008_v22 }
 0x8d9   :  { %v5564_v28 = vpop.f32.mrb[8].mxu0 }
 0x8da   :  { %v1263_v32 = vadd.f32 %v5564_v28, %v5028_v26  ;;  %v1257_v13 = vpop.f32.mrb[9].mxu0 }
 0x8db   :  { %v1258_v25 = vadd.f32 %v5028_v26, %v1257_v13 }
 0x8dc   :  { %v1267_v31 = vmax.f32 %v1263_v32, 0.0 }
 0x8dd   :  { %v1266_v27 = vmax.f32 %v1258_v25, 0.0 }
 0x8df   :  { %5581 = vmatprep.mubr.msk.f32.mxu0 %vm546_vm7, %v1266_v27 }
 0x8e0   :  { %5582 = vmatmul.mubr.msk.f32.vlgmr.msra.gmra.mrb[10].mxu0 %vm546_vm7, %v1267_v31 }
 0x9b3   :  { %v5583_v33 = vpop.f32.mrb[10].mxu0 }
 0x9b4   :  { %v1352_v34 = vadd.f32 %v5583_v33, %v5031_v30  ;;  %v1346_v35 = vpop.f32.mrb[11].mxu0 }
 0x9b5   :  { %v1347_v37 = vadd.f32 %v5031_v30, %v1346_v35 }
 0x9b6   :  { %v1356_v38 = vadd.f32 %v1352_v34, %v1164_v10 }
 0x9b7   :  { %v1355_v39 = vadd.f32 %v1347_v37, %v1163_v5  ;;  %v6962_v5 = vsub.s32 1, %v6916_v55 }
 0x9b8   :  { %v1360_v16 = vsel %vm280_vm4, %v1356_v38, 0.0 }
 0x9b9   :  { %1361 = vadd.xlane.f32.xlu1 %v1360_v16  ;;  %v1357_v17 = vsel %vm280_vm4, %v1355_v39, 0.0  ;;  %v1386_v6 = vrot.slane %v6922_v57, %v6962_v5  ;;  %v1392_v10 = vrot.slane %v6925_v58, %v6962_v5  ;;  %v5046_v57 = vld [vmem:[%s6713_s21 + $0x1] ss:$0 sm:$0xff]  ;;  %s4971_s21 = sld [smem:[%s7593_s0 + %s6647_s9]]   ;;  %s6661_s9 = smov 31  }
 0x9ba   :  { %1358 = vadd.xlane.f32.xlu0 %v1357_v17 }
 0xa46   :  { %v1362_v40 = vpop.xlane.xlu1 %1361 }
 0xa47   :  { %v1364_v41 = vmul.f32 0.03125, %v1362_v40  ;;  %v1359_v42 = vpop.xlane.xlu0 %1358 }
 0xa48   :  { %v1363_v43 = vmul.f32 0.03125, %v1359_v42 }
 0xa49   :  { %v1366_v44 = vsub.f32 %v1356_v38, %v1364_v41 }
 0xa4a   :  { %v1365_v45 = vsub.f32 %v1355_v39, %v1363_v43 }
 0xa4b   :  { %v1368_v47 = vmul.f32 %v1366_v44, %v1366_v44 }
 0xa4c   :  { %v1367_v46 = vmul.f32 %v1365_v45, %v1365_v45 }
 0xa4d   :  { %v1372_v29 = vsel %vm280_vm4, %v1368_v47, 0.0 }
 0xa4e   :  { %v1369_v23 = vsel %vm280_vm4, %v1367_v46, 0.0 }
 0xa4f   :  { %1370 = vadd.xlane.f32.xlu1 %v1369_v23 }
 0xa53   :  { %1373 = vadd.xlane.f32.xlu1 %v1372_v29 }
 0xadc   :  { %v1371_v60 = vpop.xlane.xlu1 %1370 }
 0xadd   :  { %v1375_v61 = vmul.f32 0.03125, %v1371_v60 }
 0xadf   :  { %v1377_v63 = vadd.f32 1e-05, %v1375_v61 }
 0xae0   :  { %v1374_v1 = vpop.xlane.xlu1 %1373 }
 0xae1   :  { %6496 = vrsqrt.f32 %v1377_v63  ;;  %v1376_v3 = vmul.f32 0.03125, %v1374_v1 }
 0xae3   :  { %v1378_v4 = vadd.f32 1e-05, %v1376_v3 }
 0xae5   :  { %6498 = vrsqrt.f32 %v1378_v4 }
 0xaeb   :  { %v6497_v8 = vpop.eup %6496 }
 0xaec   :  { %v1381_v9 = vmul.f32 %v6497_v8, %v1365_v45 }
 0xaee   :  { %v1387_v12 = vmul.f32 %v1386_v6, %v1381_v9 }
 0xaef   :  { %v6499_v14 = vpop.eup %6498 }
 0xaf0   :  { %v1382_v15 = vmul.f32 %v6499_v14, %v1366_v44  ;;  %v6968_v19 = vadd.f32 %v1392_v10, %v1387_v12 }
 0xaf2   :  { %v1388_v20 = vmul.f32 %v1386_v6, %v1382_v15  ;;  %5592 = vmatprep.mubr.msk.f32.mxu1 %vm280_vm4, %v6968_v19 }
 0xaf4   :  { %v6972_v21 = vadd.f32 %v1392_v10, %v1388_v20 }
 0xaf6   :  { %5593 = vmatmul.mubr.msk.f32.vlgmr.msra.gmra.mrb[14].mxu1 %vm280_vm4, %v6972_v21 }
 0xbc9   :  { %v5594_v22 = vpop.f32.mrb[14].mxu1 }
 0xbca   :  { %v1497_v26 = vadd.f32 %v5594_v22, %v5046_v57  ;;  %v1491_v28 = vpop.f32.mrb[15].mxu1 }
 0xbcb   :  { %v1492_v32 = vadd.f32 %v5046_v57, %v1491_v28 }
 0xbcc   :  { %1504 = vrot.lane.b32.xlu0 %v1497_v26, %s6630_s23 }
 0xbcd   :  { %1502 = vrot.lane.b32.xlu1 %v1492_v32, %s6630_s23  ;;  %5611 = vmatprep.mubr.msk.f32.mxu1 %vm392_vm5, %v1492_v32  ;;  %v6984_v58 = vpack.i.bf16 %v1497_v26, %v1492_v32 }
 0xbd1   :  { %1508 = vrot.lane.b32.xlu1 %v1497_v26, %s6629_s22 }
 0xbd5   :  { %1506 = vrot.lane.b32.xlu1 %v1492_v32, %s6629_s22 }
 0xbd9   :  { %1510 = vrot.lane.b32.xlu1 %v1492_v32, %s6631_s24 }
 0xbdd   :  { %1512 = vrot.lane.b32.xlu1 %v1497_v26, %s6631_s24 }
 0xbe1   :  { %6336 = vrot.lane.b32.xlu1 %v6984_v58, %s6632_s25 }
 0xc3e   :  { %v1505_v13 = vpop.permute.xlu0 %1504 }
 0xc3f   :  { %v1503_v25 = vpop.permute.xlu1 %1502 }
 0xc40   :  { %v6988_v27 = vpack.i.bf16 %v1505_v13, %v1503_v25 }
 0xc42   :  { %6341 = vrot.lane.b32.xlu1 %v6988_v27, %s6632_s25 }
 0xc43   :  { %v1509_v31 = vpop.permute.xlu1 %1508 }
 0xc47   :  { %v1507_v30 = vpop.permute.xlu1 %1506 }
 0xc48   :  { %v6992_v33 = vpack.i.bf16 %v1509_v31, %v1507_v30 }
 0xc4a   :  { %6346 = vrot.lane.b32.xlu0 %v6992_v33, %s6632_s25 }
 0xc4b   :  { %v1511_v34 = vpop.permute.xlu1 %1510 }
 0xc4f   :  { %v1513_v35 = vpop.permute.xlu1 %1512 }
 0xc50   :  { %v6996_v37 = vpack.i.bf16 %v1513_v35, %v1511_v34 }
 0xc52   :  { %6351 = vrot.lane.b32.xlu1 %v6996_v37, %s6632_s25 }
 0xc53   :  { %v6337_v38 = vpop.permute.xlu1 %6336 }
 0xc54   :  { %v6339_v39 = vunpack.i.h.bf16 %v6337_v38  ;;  %v6338_v16 = vunpack.i.l.bf16 %v6337_v38 }
 0xc56   :  { %v6020_v17 = vpack.c.bf16 %v6339_v39, %v6338_v16 }
 0xc58   :  { %6022 = vmatprep.subr.msk.bf16.mxu1 %vm6741_vm6, %v6020_v17 }
 0xc59   :  { %6025 = vmatpush3.bf16.xpose.msk.msra.mxu1 %vm6741_vm6, %v6020_v17 }
 0xcb4   :  { %v6342_v40 = vpop.permute.xlu1 %6341 }
 0xcb5   :  { %v6344_v41 = vunpack.i.h.bf16 %v6342_v40  ;;  %v6343_v42 = vunpack.i.l.bf16 %v6342_v40 }
 0xcb7   :  { %v6026_v43 = vpack.c.bf16 %v6344_v41, %v6343_v42 }
 0xcb9   :  { %6028 = vmatprep.subr.msk.bf16.mxu1 %vm6741_vm6, %v6026_v43 }
 0xcba   :  { %6031 = vmatpush3.bf16.xpose.msk.msra.mxu1 %vm6741_vm6, %v6026_v43 }
 0xcbc   :  { %v6347_v44 = vpop.permute.xlu0 %6346 }
 0xcbd   :  { %v6349_v45 = vunpack.i.h.bf16 %v6347_v44  ;;  %v6348_v46 = vunpack.i.l.bf16 %v6347_v44 }
 0xcbf   :  { %v6032_v23 = vpack.c.bf16 %v6349_v45, %v6348_v46 }
 0xcc1   :  { %6034 = vmatprep.subr.msk.bf16.mxu1 %vm6741_vm6, %v6032_v23 }
 0xcc2   :  { %6037 = vmatpush3.bf16.xpose.msk.msra.mxu1 %vm6741_vm6, %v6032_v23 }
 0xcc4   :  { %v6352_v47 = vpop.permute.xlu1 %6351 }
 0xcc5   :  { %v6354_v29 = vunpack.i.h.bf16 %v6352_v47  ;;  %v6353_v49 = vunpack.i.l.bf16 %v6352_v47 }
 0xcc7   :  { %v6038_v50 = vpack.c.bf16 %v6354_v29, %v6353_v49 }
 0xcc9   :  { %6040 = vmatprep.subr.msk.bf16.mxu1 %vm6741_vm6, %v6038_v50 }
 0xcca   :  { %6043 = vmatpush3.bf16.xpose.msk.msra.mxu1 %vm6741_vm6, %v6038_v50 }
 0xcd1   :  { %5612 = vmatmul.mubr.msk.f32.vlgmr.msra.gmra.mrb[16].mxu1 %vm392_vm5, %v1497_v26 }
 0xcd2   :  { %5614 = vmatprep.mubr.msk.f32.mxu1 %vm392_vm5, %v1503_v25 }
 0xcd5   :  { %5615 = vmatmul.mubr.msk.f32.gmra.mrb[18].mxu1 %vm392_vm5, %v1505_v13 }
 0xcd6   :  { %5617 = vmatprep.mubr.msk.f32.mxu1 %vm392_vm5, %v1507_v30 }
 0xcd9   :  { %5618 = vmatmul.mubr.msk.f32.gmra.mrb[20].mxu1 %vm392_vm5, %v1509_v31 }
 0xcda   :  { %5620 = vmatprep.mubr.msk.f32.mxu1 %vm392_vm5, %v1511_v34 }
 0xcdd   :  { %5621 = vmatmul.mubr.msk.f32.gmra.mrb[22].mxu1 %vm392_vm5, %v1513_v35 }
 0xda4   :  { %v5613_v52 = vpop.f32.mrb[16].mxu1 }
 0xda5   :  { %v1668_v53 = vmul.f32 0.35355338, %v5613_v52  ;;  %v1628_v56 = vpop.f32.mrb[17].mxu1 }
 0xda6   :  { %v1667_v59 = vmul.f32 0.35355338, %v1628_v56 }
 0xda7   :  { %v1676_v60 = vadd.f32 %v1668_v53, %v6774_v51 }
 0xda8   :  { %v5616_v61 = vpop.f32.mrb[18].mxu1  ;;  %v1675_v63 = vadd.f32 %v1667_v59, %v6777_v54 }
 0xda9   :  { %v1638_v1 = vpop.f32.mrb[19].mxu1  ;;  %v1686_v3 = vsel %vm546_vm7, %v1676_v60, -inf  ;;  %v1670_v4 = vmul.f32 0.35355338, %v5616_v61 }
 0xdaa   :  { %v1669_v6 = vmul.f32 0.35355338, %v1638_v1  ;;  %1687 = vmax.xlane.f32.xlu1 %v1686_v3  ;;  %v1683_v8 = vsel %vm546_vm7, %v1675_v63, -inf }
 0xdab   :  { %1684 = vmax.xlane.f32.xlu0 %v1683_v8  ;;  %v1678_v20 = vadd.f32 %v1670_v4, %v6787_v2 }
 0xdac   :  { %v5619_v9 = vpop.f32.mrb[20].mxu1  ;;  %v1677_v10 = vadd.f32 %v1669_v6, %v6783_v62 }
 0xdad   :  { %v1672_v12 = vmul.f32 0.35355338, %v5619_v9  ;;  %v1648_v14 = vpop.f32.mrb[21].mxu1  ;;  %v1692_v13 = vsel %vm546_vm7, %v1678_v20, -inf }
 0xdae   :  { %v1671_v15 = vmul.f32 0.35355338, %v1648_v14  ;;  %v1689_v51 = vsel %vm546_vm7, %v1677_v10, -inf }
 0xdaf   :  { %1690 = vmax.xlane.f32.xlu0 %v1689_v51  ;;  %v1680_v54 = vadd.f32 %v1672_v12, %v6796_v11 }
 0xdb0   :  { %v5622_v57 = vpop.f32.mrb[22].mxu1  ;;  %v7034_v62 = vadd.f32 %v1671_v15, %v6792_v7 }
 0xdb1   :  { %v1674_v22 = vmul.f32 0.35355338, %v5622_v57  ;;  %v1658_v26 = vpop.f32.mrb[23].mxu1  ;;  %v1698_v28 = vsel %vm546_vm7, %v1680_v54, -inf }
 0xdb2   :  { %v1673_v32 = vmul.f32 0.35355338, %v1658_v26  ;;  %1699 = vmax.xlane.f32.xlu1 %v1698_v28  ;;  %v1695_v11 = vsel %vm546_vm7, %v7034_v62, -inf }
 0xdb3   :  { %1693 = vmax.xlane.f32.xlu0 %v1692_v13  ;;  %v7037_v25 = vadd.f32 %v1674_v22, %v6809_v24 }
 0xdb4   :  { %v7044_v31 = vadd.f32 %v1673_v32, %v6803_v18 }
 0xdb5   :  { %v1704_v2 = vsel %vm546_vm7, %v7037_v25, -inf }
 0xdb6   :  { %1705 = vmax.xlane.f32.xlu1 %v1704_v2  ;;  %v1701_v30 = vsel %vm546_vm7, %v7044_v31, -inf }
 0xdb7   :  { %1696 = vmax.xlane.f32.xlu0 %v1695_v11 }
 0xdbb   :  { %1702 = vmax.xlane.f32.xlu0 %v1701_v30 }
 0xdc7   :  { %6361 = vrot.lane.b32.xlu1 %v6988_v27, %s6634_s30 }
 0xdd1   :  { %6356 = vrot.lane.b32.xlu0 %v6984_v58, %s6634_s30 }
 0xe37   :  { %v1688_v7 = vpop.xlane.xlu1 %1687 }
 0xe38   :  { %v1708_v24 = vsub.f32 %v1676_v60, %v1688_v7  ;;  %v1685_v34 = vpop.xlane.xlu0 %1684 }
 0xe39   :  { %v1707_v35 = vsub.f32 %v1675_v63, %v1685_v34 }
 0xe3a   :  { %v1717_v38 = vmul.f32 1.442695, %v1708_v24 }
 0xe3b   :  { %v1715_v39 = vmul.f32 1.442695, %v1707_v35 }
 0xe3c   :  { %6500 = vpow2.f32 %v1717_v38  ;;  %v1691_v18 = vpop.xlane.xlu0 %1690 }
 0xe3d   :  { %6502 = vpow2.f32 %v1715_v39  ;;  %v1709_v16 = vsub.f32 %v1677_v10, %v1691_v18 }
 0xe3f   :  { %v1719_v17 = vmul.f32 1.442695, %v1709_v16  ;;  %v1700_v40 = vpop.xlane.xlu1 %1699 }
 0xe40   :  { %v1712_v41 = vsub.f32 %v1680_v54, %v1700_v40  ;;  %v1694_v42 = vpop.xlane.xlu0 %1693 }
 0xe41   :  { %6504 = vpow2.f32 %v1719_v17  ;;  %v1710_v43 = vsub.f32 %v1678_v20, %v1694_v42 }
 0xe42   :  { %v1725_v27 = vmul.f32 1.442695, %v1712_v41 }
 0xe43   :  { %v1721_v44 = vmul.f32 1.442695, %v1710_v43  ;;  %v1706_v45 = vpop.xlane.xlu1 %1705 }
 0xe44   :  { %6506 = vpow2.f32 %v1725_v27  ;;  %v1697_v58 = vpop.xlane.xlu0 %1696  ;;  %v1714_v15 = vsub.f32 %v7037_v25, %v1706_v45 }
 0xe45   :  { %6508 = vpow2.f32 %v1721_v44  ;;  %v1711_v10 = vsub.f32 %v7034_v62, %v1697_v58 }
 0xe46   :  { %v7052_v46 = vpop.eup %6500  ;;  %v1729_v20 = vmul.f32 1.442695, %v1714_v15  ;;  %v2579_v15 = vld [vmem:[%s4950_s20 + $0x8] sm:$0xff] }
 0xe47   :  { %v6503_v23 = vpop.eup %6502  ;;  %v1734_v47 = vsel %vm546_vm7, %v7052_v46, 0.0  ;;  %v6362_v52 = vpop.permute.xlu1 %6361  ;;  %v1723_v12 = vmul.f32 1.442695, %v1711_v10 }
 0xe48   :  { %1735 = vadd.xlane.f32.xlu1 %v1734_v47  ;;  %v1703_v29 = vpop.xlane.xlu0 %1702  ;;  %v1731_v49 = vsel %vm546_vm7, %v6503_v23, 0.0  ;;  %v6364_v63 = vunpack.i.h.bf16 %v6362_v52  ;;  %v6363_v1 = vunpack.i.l.bf16 %v6362_v52  ;;  %v5042_v52 = vld [vmem:[%s6864_s4 + $0x28] sm:$0xff] }
 0xe49   :  { %1732 = vadd.xlane.f32.xlu0 %v1731_v49  ;;  %v1713_v14 = vsub.f32 %v7044_v31, %v1703_v29  ;;  %6510 = vpow2.f32 %v1723_v12 }
 0xe4a   :  { %v6048_v9 = vpack.c.bf16 %v6364_v63, %v6363_v1  ;;  %v5043_v63 = vld [vmem:[%s6864_s4 + $0x30] sm:$0xff]  ;;  %v5044_v1 = vld [vmem:[%s6864_s4 + $0x38] sm:$0xff] }
 0xe4b   :  { %v7057_v50 = vpop.eup %6504  ;;  %v1727_v51 = vmul.f32 1.442695, %v1713_v14  ;;  %v2578_v14 = vld [vmem:[%s4950_s20] sm:$0xff] }
 0xe4c   :  { %v6357_v53 = vpop.permute.xlu0 %6356  ;;  %v1737_v56 = vsel %vm546_vm7, %v7057_v50, 0.0 }
 0xe4d   :  { %v6359_v59 = vunpack.i.h.bf16 %v6357_v53  ;;  %v6358_v60 = vunpack.i.l.bf16 %v6357_v53  ;;  %1738 = vadd.xlane.f32.xlu0 %v1737_v56  ;;  %6512 = vpow2.f32 %v1727_v51  ;;  %v5041_v53 = vld [vmem:[%s6864_s4 + $0x20] sm:$0xff]  ;;  %s6645_s4 = smov 21  }
 0xe4e   :  { %v7061_v61 = vpop.eup %6506  ;;  %6514 = vpow2.f32 %v1729_v20  ;;  %s4970_s29 = sld [smem:[%s7593_s0 + %s6645_s4]]   ;;  %s6659_s4 = smov 28  }
 0xe4f   :  { %v6509_v3 = vpop.eup %6508  ;;  %v6044_v4 = vpack.c.bf16 %v6359_v59, %v6358_v60  ;;  %v1746_v6 = vsel %vm546_vm7, %v7061_v61, 0.0 }
 0xe50   :  { %v1740_v8 = vsel %vm546_vm7, %v6509_v3, 0.0 }
 0xe51   :  { %1741 = vadd.xlane.f32.xlu1 %v1740_v8  ;;  %1747 = vadd.xlane.f32.xlu0 %v1746_v6 }
 0xe52   :  { %6045 = vmatprep.subr.bf16.mxu0 %v6044_v4 }
 0xe53   :  { %6047 = vmatpush3.bf16.msra.mxu0 %v6044_v4  ;;  %v6511_v54 = vpop.eup %6510  ;;  %v2581_v4 = vld [vmem:[%s4953_s15 + $0x8] sm:$0xf] }
 0xe54   :  { %6049 = vmatprep.subr.bf16.mxu0 %v6048_v9  ;;  %v1743_v57 = vsel %vm546_vm7, %v6511_v54, 0.0  ;;  %v2670_v51 = vld [vmem:[%s4970_s29] sm:$0xff]  ;;  %v2671_v20 = vld [vmem:[%s4970_s29 + $0x8] sm:$0xff] }
 0xe57   :  { %6051 = vmatpush3.bf16.msra.mxu0 %v6048_v9  ;;  %v6513_v22 = vpop.eup %6512 }
 0xe62   :  { %6366 = vrot.lane.b32.xlu1 %v6992_v33, %s6634_s30  ;;  %v1749_v33 = vsel %vm546_vm7, %v6513_v22, 0.0 }
 0xe67   :  { %6371 = vrot.lane.b32.xlu0 %v6996_v37, %s6634_s30  ;;  %v6515_v37 = vpop.eup %6514 }
 0xe68   :  { %v1752_v26 = vsel %vm546_vm7, %v6515_v37, 0.0 }
 0xe86   :  { %1744 = vadd.xlane.f32.xlu1 %v1743_v57  ;;  %v2672_v57 = vld [vmem:[%s4970_s29 + $0x10] sm:$0xff] }
 0xe8a   :  { %1750 = vadd.xlane.f32.xlu1 %v1749_v33 }
 0xe8e   :  { %1753 = vadd.xlane.f32.xlu1 %v1752_v26  ;;  %v2582_v26 = vld [vmem:[%s4954_s7] sm:$0xff] }
 0xed5   :  { %v1736_v32 = vpop.xlane.xlu1 %1735 }
 0xed6   :  { %v1733_v28 = vpop.xlane.xlu0 %1732 }
 0xed7   :  { %6516 = vrcp.f32 %v1733_v28  ;;  %v2583_v28 = vld [vmem:[%s4954_s7 + $0x8] sm:$0xff]  ;;  %s4978_s7 = sld [smem:[%s7593_s0 + %s6660_s2]]  }
 0xed8   :  { %6518 = vrcp.f32 %v1736_v32 }
 0xeda   :  { %v1739_v13 = vpop.xlane.xlu0 %1738 }
 0xedb   :  { %6520 = vrcp.f32 %v1739_v13 }
 0xede   :  { %v1742_v62 = vpop.xlane.xlu1 %1741  ;;  %v1748_v25 = vpop.xlane.xlu0 %1747 }
 0xedf   :  { %6522 = vrcp.f32 %v1742_v62 }
 0xee0   :  { %6524 = vrcp.f32 %v1748_v25 }
 0xee1   :  { %v6517_v2 = vpop.eup %6516 }
 0xee2   :  { %v6367_v11 = vpop.permute.xlu1 %6366  ;;  %v6372_v31 = vpop.permute.xlu0 %6371  ;;  %v1763_v30 = vmul.f32 %v6517_v2, %v6503_v23  ;;  %v5107_v2 = vld [vmem:[%s4971_s21] ss:$0 sm:$0xff]  ;;  %s7541_s21 = sld [smem:[%s7593_s0 + %s6661_s9]]  }
 0xee3   :  { %v6369_v7 = vunpack.i.h.bf16 %v6367_v11  ;;  %v6368_v24 = vunpack.i.l.bf16 %v6367_v11  ;;  %v6374_v34 = vunpack.i.h.bf16 %v6372_v31  ;;  %v6373_v35 = vunpack.i.l.bf16 %v6372_v31  ;;  %v6519_v18 = vpop.eup %6518 }
 0xee4   :  { %5639 = vmatprep.mubr.msk.f32.mxu0 %vm546_vm7, %v1763_v30  ;;  %v1764_v17 = vmul.f32 %v6519_v18, %v7052_v46 }
 0xee5   :  { %v6052_v38 = vpack.c.bf16 %v6369_v7, %v6368_v24  ;;  %v6056_v39 = vpack.c.bf16 %v6374_v34, %v6373_v35  ;;  %v6521_v16 = vpop.eup %6520 }
 0xee6   :  { %v1765_v41 = vmul.f32 %v6521_v16, %v7057_v50 }
 0xee7   :  { %6053 = vmatprep.subr.bf16.mxu0 %v6052_v38 }
 0xee8   :  { %6055 = vmatpush3.bf16.msra.mxu0 %v6052_v38 }
 0xee9   :  { %6057 = vmatprep.subr.bf16.mxu0 %v6056_v39  ;;  %v6523_v40 = vpop.eup %6522 }
 0xeea   :  { %v1766_v42 = vmul.f32 %v6523_v40, %v6509_v3  ;;  %v6525_v58 = vpop.eup %6524  ;;  %v2580_v3 = vld [vmem:[%s4953_s15] sm:$0xff] }
 0xeeb   :  { %v1768_v23 = vmul.f32 %v6525_v58, %v7061_v61  ;;  %v6084_v9 = vpack.c.bf16 %v2581_v4, %v2580_v3  ;;  %v5081_v58 = vld [vmem:[%s6881_s8 + $0x1] ss:$0 sm:$0xff]  ;;  %s6648_s8 = smov 7  }
 0xeec   :  { %6059 = vmatpush3.bf16.msra.mxu0 %v6056_v39 }
 0xeed   :  { %5651 = vmatprep.subr.mxu0 %v5042_v52 }
 0xeef   :  { %5640 = vmatmul.mubr.msk.f32.vlgmr.msra.gmra.mrb[12].mxu0 %vm546_vm7, %v1764_v17 }
 0xef0   :  { %5642 = vmatprep.mubr.msk.f32.mxu0 %vm546_vm7, %v1765_v41  ;;  %5652 = vmatpush3.msra.mxu0 %v5042_v52 }
 0xef1   :  { %5656 = vmatprep.subr.mxu0 %v5041_v53 }
 0xef3   :  { %5643 = vmatmul.mubr.msk.f32.gmra.mrb[14].mxu0 %vm546_vm7, %v1766_v42 }
 0xf13   :  { %v1745_v43 = vpop.xlane.xlu1 %1744 }
 0xf14   :  { %6526 = vrcp.f32 %v1745_v43 }
 0xf17   :  { %v1751_v27 = vpop.xlane.xlu1 %1750 }
 0xf18   :  { %6528 = vrcp.f32 %v1751_v27 }
 0xf1b   :  { %v1754_v44 = vpop.xlane.xlu1 %1753 }
 0xf1c   :  { %6530 = vrcp.f32 %v1754_v44 }
 0xf1e   :  { %v6527_v45 = vpop.eup %6526 }
 0xf1f   :  { %v1767_v46 = vmul.f32 %v6527_v45, %v6511_v54  ;;  %v6090_v54 = vpack.c.bf16 %v2671_v20, %v2670_v51 }
 0xf21   :  { %5645 = vmatprep.mubr.msk.f32.mxu0 %vm546_vm7, %v1767_v46 }
 0xf22   :  { %v6529_v47 = vpop.eup %6528  ;;  %5646 = vmatmul.mubr.msk.f32.gmra.mrb[16].mxu0 %vm546_vm7, %v1768_v23 }
 0xf23   :  { %v1769_v29 = vmul.f32 %v6529_v47, %v6513_v22  ;;  %v2673_v22 = vld [vmem:[%s4970_s29 + $0x18] sm:$0xff]  ;;  %s4977_s29 = sld [smem:[%s7593_s0 + %s6659_s4]]  }
 0xf24   :  { %v6094_v33 = vpack.c.bf16 %v2673_v22, %v2672_v57  ;;  %v5083_v57 = vld [vmem:[%s6893_s12 + $0x28] sm:$0xff] }
 0xf25   :  { %5648 = vmatprep.mubr.msk.f32.mxu0 %vm546_vm7, %v1769_v29 }
 0xf26   :  { %v6531_v49 = vpop.eup %6530 }
 0xf27   :  { %v1770_v50 = vmul.f32 %v6531_v49, %v6515_v37 }
 0xf29   :  { %5649 = vmatmul.mubr.msk.f32.gmra.mrb[18].mxu0 %vm546_vm7, %v1770_v50 }
 0xfc2   :  { %v5641_v56 = vpop.f32.mrb[12].mxu0 }
 0xfc3   :  { %v1885_v59 = vpop.f32.mrb[13].mxu0 }
 0xfc6   :  { %v5644_v60 = vpop.f32.mrb[14].mxu0 }
 0xfc7   :  { %v1895_v61 = vpop.f32.mrb[15].mxu0 }
 0xfc8   :  { %5653 = vmatprep.mubr.msk.f32.mxu0 %vm392_vm5, %v1895_v61 }
 0xfc9   :  { %5654 = vmatmul.mubr.msk.f32.vlgmr.msra.gmra.mrb[20].mxu0 %vm392_vm5, %v5644_v60 }
 0xfca   :  { %5658 = vmatprep.mubr.msk.f32.mxu0 %vm392_vm5, %v1885_v59  ;;  %5657 = vmatpush3.msra.mxu0 %v5041_v53 }
 0xfcb   :  { %5661 = vmatprep.subr.mxu0 %v5043_v63 }
 0xfd1   :  { %5659 = vmatmul.mubr.msk.f32.vlgmr.msra.gmra.mrb[20].mxu0 %vm392_vm5, %v5641_v56 }
 0xfd2   :  { %5662 = vmatpush3.msra.mxu0 %v5043_v63 }
 0xfd3   :  { %5666 = vmatprep.subr.mxu0 %v5044_v1 }
 0xff5   :  { %v5647_v6 = vpop.f32.mrb[16].mxu0 }
 0xff6   :  { %v1905_v8 = vpop.f32.mrb[17].mxu0 }
 0xff7   :  { %5663 = vmatprep.mubr.msk.f32.mxu0 %vm392_vm5, %v1905_v8 }
 0xff8   :  { %5664 = vmatmul.mubr.msk.f32.vlgmr.msra.gmra.mrb[20].mxu0 %vm392_vm5, %v5647_v6 }
 0xff9   :  { %5667 = vmatpush3.msra.mxu0 %v5044_v1 }
 0xffa   :  { %6086 = vmatprep.subr.msk.bf16.mxu0 %vm6685_vm3, %v6084_v9 }
 0xffc   :  { %v5650_v10 = vpop.f32.mrb[18].mxu0 }
 0xffd   :  { %v1915_v12 = vpop.f32.mrb[19].mxu0 }
 0xffe   :  { %5668 = vmatprep.mubr.msk.f32.mxu0 %vm392_vm5, %v1915_v12 }
0x1000   :  { %5669 = vmatmul.mubr.msk.f32.vlgmr.msra.gmra.mrb[20].mxu0 %vm392_vm5, %v5650_v10 }
0x1001   :  { %6089 = vmatpush3.bf16.msk.msra.mxu0 %vm6685_vm3, %v6084_v9  ;;  %5705 = vmatprep.mubr.msk.f32.mxu0 %vm168_vm1, %v2578_v14 }
0x1002   :  { %6091 = vmatprep.subr.bf16.mxu0 %v6090_v54 }
0x1004   :  { %5706 = vmatmul.mubr.msk.f32.vlgmr.msra.gmra.mrb[22].mxu0 %vm168_vm1, %v2579_v15 }
0x1005   :  { %6093 = vmatpush3.bf16.msra.mxu0 %v6090_v54  ;;  %v5082_v54 = vld [vmem:[%s6893_s12 + $0x20] sm:$0xff] }
0x1006   :  { %6095 = vmatprep.subr.bf16.mxu0 %v6094_v33  ;;  %v6060_v22 = vpack.c.bf16 %v5083_v57, %v5082_v54 }
0x1008   :  { %6061 = vmatprep.subr.bf16.mxu1 %v6060_v22 }
0x1009   :  { %6097 = vmatpush3.bf16.msra.mxu0 %v6094_v33  ;;  %6063 = vmatpush3.bf16.msra.mxu1 %v6060_v22  ;;  %v5084_v33 = vld [vmem:[%s6893_s12 + $0x30] sm:$0xff] }
0x10d3   :  { %v5670_v0 = vpop.f32.mrb[20].mxu0 }
0x10d4   :  { %v2241_v37 = vpop.f32.mrb[21].mxu0  ;;  %v2259_v47 = vadd.f32 %v5670_v0, %v5081_v58  ;;  %v5085_v0 = vld [vmem:[%s6893_s12 + $0x38] sm:$0xff]  ;;  %s4969_s12 = sld [smem:[%s7593_s0 + %s6654_s13]]  }
0x10d5   :  { %v2258_v45 = vadd.f32 %v5081_v58, %v2241_v37  ;;  %v6064_v37 = vpack.c.bf16 %v5085_v0, %v5084_v33 }
0x10d6   :  { %v2261_v29 = vadd.f32 %v2259_v47, %v6972_v21 }
0x10d7   :  { %v5707_v32 = vpop.f32.mrb[22].mxu0  ;;  %v2260_v46 = vadd.f32 %v2258_v45, %v6968_v19  ;;  %6065 = vmatprep.subr.bf16.mxu1 %v6064_v37 }
0x10d8   :  { %v2659_v13 = vpop.f32.mrb[23].mxu0  ;;  %v7119_v25 = vadd.f32 %v5707_v32, %v2583_v28  ;;  %v2265_v49 = vsel %vm280_vm4, %v2261_v29, 0.0  ;;  %6067 = vmatpush3.bf16.msra.mxu1 %v6064_v37 }
0x10d9   :  { %v7117_v62 = vadd.f32 %v2659_v13, %v2582_v26  ;;  %v2262_v23 = vsel %vm280_vm4, %v2260_v46, 0.0 }
0x10db   :  { %5716 = vmatprep.mubr.msk.f32.mxu0 %vm280_vm4, %v7117_v62 }
0x10dc   :  { %5717 = vmatmul.mubr.msk.f32.vlgmr.msra.gmra.mrb[24].mxu0 %vm280_vm4, %v7119_v25 }
0x11af   :  { %v5718_v11 = vpop.f32.mrb[24].mxu0 }
0x11b0   :  { %v2772_v31 = vadd.f32 %v5718_v11, %v5107_v2  ;;  %v2766_v30 = vpop.f32.mrb[25].mxu0  ;;  %v7186_v11 = vld [vmem:[%s6909_s26 + $0x2] sm:$0x3]  ;;  %s7200_s26 = sld [smem:[%s7593_s0 + %s6648_s8]]   ;;  %s6662_s8 = smov 30  }
0x11b1   :  { %v2767_v7 = vadd.f32 %v5107_v2, %v2766_v30  ;;  %v7189_v30 = vld [vmem:[%s6914_s1 + $0x2] sm:$0x3]  ;;  %s6656_s1 = smov 34  }
0x11b2   :  { %2779 = vrot.lane.b32.xlu0 %v2772_v31, %s6630_s23  ;;  %s4983_s15 = sld [smem:[%s7593_s0 + %s6656_s1]]  }
0x11b3   :  { %2777 = vrot.lane.b32.xlu1 %v2767_v7, %s6630_s23  ;;  %5735 = vmatprep.mubr.msk.f32.mxu0 %vm392_vm5, %v2767_v7  ;;  %v7135_v24 = vpack.i.bf16 %v2772_v31, %v2767_v7 }
0x11b6   :  { %2781 = vrot.lane.b32.xlu0 %v2767_v7, %s6629_s22  ;;  %v2681_v58 = vld [vmem:[%s7200_s26 + $0x8] sm:$0xff]  ;;  %v2686_v33 = vld [vmem:[%s7200_s26 + $0x30] sm:$0xff] }
0x11b7   :  { %2783 = vrot.lane.b32.xlu1 %v2772_v31, %s6629_s22 }
0x11ba   :  { %2785 = vrot.lane.b32.xlu0 %v2767_v7, %s6631_s24  ;;  %v2291_v7 = vrot.slane %v7186_v11, %v6919_v48 }
0x11bb   :  { %2787 = vrot.lane.b32.xlu1 %v2772_v31, %s6631_s24 }
0x11be   :  { %6376 = vrot.lane.b32.xlu0 %v7135_v24, %s6632_s25 }
0x1224   :  { %v2780_v34 = vpop.permute.xlu0 %2779 }
0x1225   :  { %v2778_v35 = vpop.permute.xlu1 %2777 }
0x1226   :  { %v7139_v38 = vpack.i.bf16 %v2780_v34, %v2778_v35 }
0x1228   :  { %v2782_v39 = vpop.permute.xlu0 %2781  ;;  %6381 = vrot.lane.b32.xlu1 %v7139_v38, %s6632_s25 }
0x1229   :  { %v2784_v18 = vpop.permute.xlu1 %2783 }
0x122a   :  { %v7143_v16 = vpack.i.bf16 %v2784_v18, %v2782_v39 }
0x122c   :  { %v2786_v17 = vpop.permute.xlu0 %2785  ;;  %6386 = vrot.lane.b32.xlu0 %v7143_v16, %s6632_s25 }
0x122d   :  { %v2788_v40 = vpop.permute.xlu1 %2787 }
0x122e   :  { %v7147_v41 = vpack.i.bf16 %v2788_v40, %v2786_v17 }
0x1230   :  { %v6377_v42 = vpop.permute.xlu0 %6376  ;;  %6391 = vrot.lane.b32.xlu1 %v7147_v41, %s6632_s25 }
0x1231   :  { %v6379_v43 = vunpack.i.h.bf16 %v6377_v42  ;;  %v6378_v27 = vunpack.i.l.bf16 %v6377_v42 }
0x1233   :  { %v6098_v44 = vpack.c.bf16 %v6379_v43, %v6378_v27 }
0x1235   :  { %6100 = vmatprep.subr.msk.bf16.mxu0 %vm6741_vm6, %v6098_v44 }
0x1236   :  { %6103 = vmatpush3.bf16.xpose.msk.msra.mxu0 %vm6741_vm6, %v6098_v44 }
0x124b   :  { %2263 = vadd.xlane.f32.xlu0 %v2262_v23  ;;  %v2680_v23 = vld [vmem:[%s7200_s26] sm:$0xff] }
0x1254   :  { %2266 = vadd.xlane.f32.xlu1 %v2265_v49 }
0x129a   :  { %v6382_v50 = vpop.permute.xlu1 %6381 }
0x129b   :  { %v6384_v52 = vunpack.i.h.bf16 %v6382_v50  ;;  %v6383_v53 = vunpack.i.l.bf16 %v6382_v50 }
0x129d   :  { %v6104_v56 = vpack.c.bf16 %v6384_v52, %v6383_v53  ;;  %v2683_v52 = vld [vmem:[%s7200_s26 + $0x18] sm:$0xff] }
0x129e   :  { %v6387_v59 = vpop.permute.xlu0 %6386 }
0x129f   :  { %v6389_v60 = vunpack.i.h.bf16 %v6387_v59  ;;  %v6388_v61 = vunpack.i.l.bf16 %v6387_v59  ;;  %6106 = vmatprep.subr.msk.bf16.mxu0 %vm6741_vm6, %v6104_v56 }
0x12a0   :  { %6109 = vmatpush3.bf16.xpose.msk.msra.mxu0 %vm6741_vm6, %v6104_v56 }
0x12a1   :  { %v6110_v19 = vpack.c.bf16 %v6389_v60, %v6388_v61  ;;  %v2682_v60 = vld [vmem:[%s7200_s26 + $0x10] sm:$0xff] }
0x12a2   :  { %v6392_v63 = vpop.permute.xlu1 %6391 }
0x12a3   :  { %v6394_v1 = vunpack.i.h.bf16 %v6392_v63  ;;  %v6393_v21 = vunpack.i.l.bf16 %v6392_v63  ;;  %6112 = vmatprep.subr.msk.bf16.mxu0 %vm6741_vm6, %v6110_v19 }
0x12a5   :  { %v6116_v3 = vpack.c.bf16 %v6394_v1, %v6393_v21 }
0x12a8   :  { %6115 = vmatpush3.bf16.xpose.msk.msra.mxu0 %vm6741_vm6, %v6110_v19 }
0x12a9   :  { %6118 = vmatprep.subr.msk.bf16.mxu0 %vm6741_vm6, %v6116_v3 }
0x12b0   :  { %6121 = vmatpush3.bf16.xpose.msk.msra.mxu0 %vm6741_vm6, %v6116_v3  ;;  %v2685_v3 = vld [vmem:[%s7200_s26 + $0x28] sm:$0xff] }
0x12b7   :  { %5736 = vmatmul.mubr.msk.f32.vlgmr.msra.gmra.mrb[26].mxu0 %vm392_vm5, %v2772_v31 }
0x12b8   :  { %5738 = vmatprep.mubr.msk.f32.mxu0 %vm392_vm5, %v2778_v35 }
0x12bb   :  { %5739 = vmatmul.mubr.msk.f32.gmra.mrb[28].mxu0 %vm392_vm5, %v2780_v34 }
0x12bc   :  { %5741 = vmatprep.mubr.msk.f32.mxu0 %vm392_vm5, %v2782_v39  ;;  %v2297_v39 = vrot.slane %v7189_v30, %v6919_v48 }
0x12bf   :  { %5742 = vmatmul.mubr.msk.f32.gmra.mrb[30].mxu0 %vm392_vm5, %v2784_v18 }
0x12c0   :  { %5744 = vmatprep.mubr.msk.f32.mxu0 %vm392_vm5, %v2786_v17 }
0x12c3   :  { %5745 = vmatmul.mubr.msk.f32.gmra.mrb[32].mxu0 %vm392_vm5, %v2788_v40 }
0x12d8   :  { %v2264_v4 = vpop.xlane.xlu0 %2263 }
0x12d9   :  { %v2268_v6 = vmul.f32 0.03125, %v2264_v4 }
0x12db   :  { %v2270_v8 = vsub.f32 %v2260_v46, %v2268_v6 }
0x12dd   :  { %v2272_v9 = vmul.f32 %v2270_v8, %v2270_v8 }
0x12df   :  { %v2274_v10 = vsel %vm280_vm4, %v2272_v9, 0.0  ;;  %v2684_v9 = vld [vmem:[%s7200_s26 + $0x20] sm:$0xff] }
0x12e0   :  { %2275 = vadd.xlane.f32.xlu0 %v2274_v10 }
0x12e1   :  { %v2267_v12 = vpop.xlane.xlu1 %2266 }
0x12e2   :  { %v2269_v14 = vmul.f32 0.03125, %v2267_v12 }
0x12e4   :  { %v2271_v15 = vsub.f32 %v2261_v29, %v2269_v14 }
0x12e6   :  { %v2273_v51 = vmul.f32 %v2271_v15, %v2271_v15 }
0x12e8   :  { %v2277_v20 = vsel %vm280_vm4, %v2273_v51, 0.0 }
0x12e9   :  { %2278 = vadd.xlane.f32.xlu0 %v2277_v20 }
0x136d   :  { %v2276_v26 = vpop.xlane.xlu0 %2275 }
0x136e   :  { %v2280_v28 = vmul.f32 0.03125, %v2276_v26 }
0x1370   :  { %v2282_v32 = vadd.f32 1e-05, %v2280_v28 }
0x1372   :  { %6532 = vrsqrt.f32 %v2282_v32 }
0x1376   :  { %v2279_v13 = vpop.xlane.xlu0 %2278 }
0x1377   :  { %v2281_v2 = vmul.f32 0.03125, %v2279_v13 }
0x1379   :  { %v2283_v31 = vadd.f32 1e-05, %v2281_v2  ;;  %v5087_v2 = vld [vmem:[%s6902_s17 + $0x40] sm:$0xff] }
0x137b   :  { %6534 = vrsqrt.f32 %v2283_v31  ;;  %v5088_v31 = vld [vmem:[%s6902_s17 + $0x48] sm:$0xff] }
0x137c   :  { %v6533_v34 = vpop.eup %6532 }
0x137d   :  { %v2286_v35 = vmul.f32 %v6533_v34, %v2270_v8  ;;  %v5089_v34 = vld [vmem:[%s6902_s17 + $0x50] sm:$0xff] }
0x137f   :  { %v2292_v18 = vmul.f32 %v2291_v7, %v2286_v35  ;;  %v5090_v35 = vld [vmem:[%s6902_s17 + $0x58] sm:$0xff] }
0x1381   :  { %v7195_v17 = vadd.f32 %v2297_v39, %v2292_v18  ;;  %v5091_v18 = vld [vmem:[%s6902_s17 + $0x60] sm:$0xff] }
0x1383   :  { %5679 = vmatprep.mubr.msk.f32.mxu1 %vm280_vm4, %v7195_v17 }
0x1385   :  { %v6535_v40 = vpop.eup %6534 }
0x1386   :  { %v2287_v42 = vmul.f32 %v6535_v40, %v2271_v15  ;;  %v2687_v15 = vld [vmem:[%s7200_s26 + $0x38] sm:$0xff]  ;;  %v5092_v40 = vld [vmem:[%s6902_s17 + $0x68] sm:$0xff]  ;;  %s4979_s26 = sld [smem:[%s7593_s0 + %s6662_s8]]  }
0x1388   :  { %v2293_v43 = vmul.f32 %v2291_v7, %v2287_v42  ;;  %v6068_v7 = vpack.c.bf16 %v5088_v31, %v5087_v2  ;;  %v6076_v42 = vpack.c.bf16 %v5092_v40, %v5091_v18  ;;  %v5096_v31 = vld [vmem:[%s6942_s6 + $0x1] ss:$0 sm:$0xff] }
0x138a   :  { %v7204_v27 = vadd.f32 %v2297_v39, %v2293_v43  ;;  %v5737_v44 = vpop.f32.mrb[26].mxu0  ;;  %6069 = vmatprep.subr.bf16.mxu1 %v6068_v7  ;;  %v6072_v39 = vpack.c.bf16 %v5090_v35, %v5089_v34  ;;  %v5093_v43 = vld [vmem:[%s6902_s17 + $0x70] sm:$0xff] }
0x138b   :  { %v2943_v45 = vmul.f32 0.35355338, %v5737_v44  ;;  %v2903_v46 = vpop.f32.mrb[27].mxu0  ;;  %v5094_v44 = vld [vmem:[%s6902_s17 + $0x78] sm:$0xff]  ;;  %s4982_s17 = sld [smem:[%s7593_s0 + %s6655_s14]]  }
0x138c   :  { %v2942_v47 = vmul.f32 0.35355338, %v2903_v46  ;;  %5680 = vmatmul.mubr.msk.f32.vlgmr.msra.gmra.mrb[24].mxu1 %vm280_vm4, %v7204_v27 }
0x138d   :  { %v7210_v29 = vadd.f32 %v2943_v45, %v2681_v58  ;;  %6071 = vmatpush3.bf16.msra.mxu1 %v6068_v7  ;;  %v6080_v58 = vpack.c.bf16 %v5094_v44, %v5093_v43 }
0x138e   :  { %v5740_v49 = vpop.f32.mrb[28].mxu0  ;;  %v7212_v50 = vadd.f32 %v2942_v47, %v2680_v23  ;;  %6073 = vmatprep.subr.bf16.mxu1 %v6072_v39 }
0x138f   :  { %v2945_v53 = vmul.f32 0.35355338, %v5740_v49  ;;  %v2913_v56 = vpop.f32.mrb[29].mxu0  ;;  %v2961_v59 = vsel %vm546_vm7, %v7210_v29, -inf }
0x1390   :  { %v2944_v61 = vmul.f32 0.35355338, %v2913_v56  ;;  %2962 = vmax.xlane.f32.xlu1 %v2961_v59  ;;  %v2958_v19 = vsel %vm546_vm7, %v7212_v50, -inf }
0x1391   :  { %2959 = vmax.xlane.f32.xlu0 %v2958_v19  ;;  %v7220_v63 = vadd.f32 %v2945_v53, %v2683_v52  ;;  %6075 = vmatpush3.bf16.msra.mxu1 %v6072_v39 }
0x1392   :  { %v5743_v1 = vpop.f32.mrb[30].mxu0  ;;  %v7222_v21 = vadd.f32 %v2944_v61, %v2682_v60  ;;  %6077 = vmatprep.subr.bf16.mxu1 %v6076_v42 }
0x1393   :  { %v2947_v4 = vmul.f32 0.35355338, %v5743_v1  ;;  %v2923_v6 = vpop.f32.mrb[31].mxu0  ;;  %v2967_v8 = vsel %vm546_vm7, %v7220_v63, -inf }
0x1394   :  { %v2946_v10 = vmul.f32 0.35355338, %v2923_v6  ;;  %2968 = vmax.xlane.f32.xlu1 %v2967_v8  ;;  %v2964_v12 = vsel %vm546_vm7, %v7222_v21, -inf }
0x1395   :  { %2965 = vmax.xlane.f32.xlu0 %v2964_v12  ;;  %v2955_v14 = vadd.f32 %v2947_v4, %v2685_v3  ;;  %6079 = vmatpush3.bf16.msra.mxu1 %v6076_v42 }
0x1396   :  { %v5746_v51 = vpop.f32.mrb[32].mxu0  ;;  %v7231_v20 = vadd.f32 %v2946_v10, %v2684_v9  ;;  %6081 = vmatprep.subr.bf16.mxu1 %v6080_v58 }
0x1397   :  { %v2949_v54 = vmul.f32 0.35355338, %v5746_v51  ;;  %v2933_v57 = vpop.f32.mrb[33].mxu0  ;;  %v2973_v22 = vsel %vm546_vm7, %v2955_v14, -inf }
0x1398   :  { %v2948_v0 = vmul.f32 0.35355338, %v2933_v57  ;;  %2974 = vmax.xlane.f32.xlu1 %v2973_v22  ;;  %v2970_v37 = vsel %vm546_vm7, %v7231_v20, -inf }
0x1399   :  { %v7237_v26 = vadd.f32 %v2949_v54, %v2687_v15  ;;  %2971 = vmax.xlane.f32.xlu0 %v2970_v37  ;;  %6083 = vmatpush3.bf16.msra.mxu1 %v6080_v58 }
0x139a   :  { %v7239_v28 = vadd.f32 %v2948_v0, %v2686_v33 }
0x139b   :  { %v2979_v32 = vsel %vm546_vm7, %v7237_v26, -inf }
0x139c   :  { %2980 = vmax.xlane.f32.xlu1 %v2979_v32  ;;  %v2976_v13 = vsel %vm546_vm7, %v7239_v28, -inf }
0x139d   :  { %2977 = vmax.xlane.f32.xlu0 %v2976_v13 }
0x13ad   :  { %6401 = vrot.lane.b32.xlu1 %v7139_v38, %s6634_s30 }
0x13b3   :  { %6396 = vrot.lane.b32.xlu0 %v7135_v24, %s6634_s30 }
0x141d   :  { %v2963_v45 = vpop.xlane.xlu1 %2962 }
0x141e   :  { %v2983_v46 = vsub.f32 %v7210_v29, %v2963_v45  ;;  %v2960_v23 = vpop.xlane.xlu0 %2959 }
0x141f   :  { %v2982_v47 = vsub.f32 %v7212_v50, %v2960_v23 }
0x1420   :  { %v2992_v49 = vmul.f32 1.442695, %v2983_v46 }
0x1421   :  { %v2990_v52 = vmul.f32 1.442695, %v2982_v47  ;;  %v2969_v53 = vpop.xlane.xlu1 %2968 }
0x1422   :  { %6536 = vpow2.f32 %v2992_v49  ;;  %v2985_v38 = vsub.f32 %v7220_v63, %v2969_v53  ;;  %v2966_v56 = vpop.xlane.xlu0 %2965 }
0x1423   :  { %6538 = vpow2.f32 %v2990_v52  ;;  %v2984_v59 = vsub.f32 %v7222_v21, %v2966_v56 }
0x1424   :  { %v2996_v60 = vmul.f32 1.442695, %v2985_v38 }
0x1425   :  { %v2994_v61 = vmul.f32 1.442695, %v2984_v59  ;;  %v2975_v24 = vpop.xlane.xlu1 %2974 }
0x1426   :  { %6540 = vpow2.f32 %v2996_v60  ;;  %v2987_v19 = vsub.f32 %v2955_v14, %v2975_v24  ;;  %v2972_v1 = vpop.xlane.xlu0 %2971 }
0x1427   :  { %6542 = vpow2.f32 %v2994_v61  ;;  %v2986_v22 = vsub.f32 %v7231_v20, %v2972_v1 }
0x1428   :  { %v3000_v29 = vmul.f32 1.442695, %v2987_v19 }
0x1429   :  { %v2998_v33 = vmul.f32 1.442695, %v2986_v22  ;;  %v2981_v37 = vpop.xlane.xlu1 %2980 }
0x142a   :  { %6544 = vpow2.f32 %v3000_v29  ;;  %v2978_v50 = vpop.xlane.xlu0 %2977  ;;  %v2989_v32 = vsub.f32 %v7237_v26, %v2981_v37 }
0x142b   :  { %v2988_v0 = vsub.f32 %v7239_v28, %v2978_v50  ;;  %6546 = vpow2.f32 %v2998_v33 }
0x142c   :  { %v7261_v3 = vpop.eup %6536  ;;  %v3004_v2 = vmul.f32 1.442695, %v2989_v32  ;;  %v5099_v32 = vld [vmem:[%s6950_s11 + $0x1] ss:$0 sm:$0xff]  ;;  %s6650_s11 = smov 24  }
0x142d   :  { %v7263_v4 = vpop.eup %6538  ;;  %v3009_v63 = vsel %vm546_vm7, %v7261_v3, 0.0  ;;  %v3002_v13 = vmul.f32 1.442695, %v2988_v0  ;;  %v6402_v7 = vpop.permute.xlu1 %6401  ;;  %s4973_s18 = sld [smem:[%s7593_s0 + %s6650_s11]]   ;;  %s6664_s11 = smov 37  }
0x142e   :  { %3010 = vadd.xlane.f32.xlu1 %v3009_v63  ;;  %v6397_v6 = vpop.permute.xlu0 %6396  ;;  %v3006_v21 = vsel %vm546_vm7, %v7263_v4, 0.0  ;;  %v6403_v18 = vunpack.i.l.bf16 %v6402_v7 }
0x142f   :  { %v6399_v8 = vunpack.i.h.bf16 %v6397_v6  ;;  %v6398_v9 = vunpack.i.l.bf16 %v6397_v6  ;;  %3007 = vadd.xlane.f32.xlu0 %v3006_v21  ;;  %6548 = vpow2.f32 %v3002_v13 }
0x1430   :  { %v7269_v10 = vpop.eup %6540  ;;  %6550 = vpow2.f32 %v3004_v2 }
0x1431   :  { %v7271_v12 = vpop.eup %6542  ;;  %v6122_v14 = vpack.c.bf16 %v6399_v8, %v6398_v9  ;;  %v3015_v15 = vsel %vm546_vm7, %v7269_v10, 0.0 }
0x1432   :  { %3016 = vadd.xlane.f32.xlu1 %v3015_v15  ;;  %v3012_v51 = vsel %vm546_vm7, %v7271_v12, 0.0 }
0x1433   :  { %3013 = vadd.xlane.f32.xlu0 %v3012_v51  ;;  %6123 = vmatprep.subr.bf16.mxu1 %v6122_v14 }
0x1434   :  { %v7277_v54 = vpop.eup %6544 }
0x1435   :  { %v3021_v57 = vsel %vm546_vm7, %v7277_v54, 0.0  ;;  %v6547_v20 = vpop.eup %6546 }
0x1436   :  { %v3018_v26 = vsel %vm546_vm7, %v6547_v20, 0.0 }
0x1437   :  { %3022 = vadd.xlane.f32.xlu0 %v3021_v57 }
0x1439   :  { %v6549_v43 = vpop.eup %6548 }
0x143a   :  { %v3024_v44 = vsel %vm546_vm7, %v6549_v43, 0.0  ;;  %v6551_v58 = vpop.eup %6550 }
0x143b   :  { %v3027_v45 = vsel %vm546_vm7, %v6551_v58, 0.0 }
0x1443   :  { %6406 = vrot.lane.b32.xlu1 %v7143_v16, %s6634_s30 }
0x144d   :  { %6411 = vrot.lane.b32.xlu0 %v7147_v41, %s6634_s30  ;;  %v6404_v41 = vunpack.i.h.bf16 %v6402_v7  ;;  %s6649_s30 = smov 23  }
0x144e   :  { %s4972_s6 = sld [smem:[%s7593_s0 + %s6649_s30]]   ;;  %s6663_s30 = smov 32  }
0x144f   :  { %v6126_v28 = vpack.c.bf16 %v6404_v41, %v6403_v18 }
0x1454   :  { %v2676_v37 = vld [vmem:[%s4972_s6 + $0x8] sm:$0xff] }
0x145f   :  { %v5681_v34 = vpop.f32.mrb[24].mxu1 }
0x1460   :  { %v2402_v35 = vadd.f32 %v5681_v34, %v5096_v31  ;;  %v2396_v16 = vpop.f32.mrb[25].mxu1 }
0x1461   :  { %v2397_v39 = vadd.f32 %v5096_v31, %v2396_v16 }
0x1462   :  { %v2406_v42 = vmax.f32 %v2402_v35, 0.0 }
0x1463   :  { %v2405_v40 = vmax.f32 %v2397_v39, 0.0 }
0x1465   :  { %5698 = vmatprep.mubr.msk.f32.mxu1 %vm546_vm7, %v2405_v40 }
0x1466   :  { %5699 = vmatmul.mubr.msk.f32.vlgmr.msra.gmra.mrb[26].mxu1 %vm546_vm7, %v2406_v42  ;;  %v2677_v42 = vld [vmem:[%s4972_s6 + $0x10] sm:$0xff] }
0x1467   :  { %6125 = vmatpush3.bf16.msra.mxu1 %v6122_v14  ;;  %3019 = vadd.xlane.f32.xlu1 %v3018_v26 }
0x1468   :  { %6127 = vmatprep.subr.bf16.mxu1 %v6126_v28 }
0x146b   :  { %6129 = vmatpush3.bf16.msra.mxu1 %v6126_v28  ;;  %3025 = vadd.xlane.f32.xlu1 %v3024_v44 }
0x146f   :  { %3028 = vadd.xlane.f32.xlu1 %v3027_v45 }
0x14bb   :  { %v3011_v46 = vpop.xlane.xlu1 %3010 }
0x14bc   :  { %v3008_v23 = vpop.xlane.xlu0 %3007 }
0x14bd   :  { %6552 = vrcp.f32 %v3008_v23 }
0x14be   :  { %6554 = vrcp.f32 %v3011_v46 }
0x14bf   :  { %v3017_v47 = vpop.xlane.xlu1 %3016 }
0x14c0   :  { %v3014_v49 = vpop.xlane.xlu0 %3013 }
0x14c1   :  { %6556 = vrcp.f32 %v3014_v49 }
0x14c2   :  { %6558 = vrcp.f32 %v3017_v47 }
0x14c3   :  { %v6407_v52 = vpop.permute.xlu1 %6406 }
0x14c4   :  { %v6409_v53 = vunpack.i.h.bf16 %v6407_v52  ;;  %v6408_v38 = vunpack.i.l.bf16 %v6407_v52  ;;  %v3023_v56 = vpop.xlane.xlu0 %3022 }
0x14c5   :  { %6560 = vrcp.f32 %v3023_v56 }
0x14c6   :  { %v6130_v59 = vpack.c.bf16 %v6409_v53, %v6408_v38 }
0x14c7   :  { %v6553_v60 = vpop.eup %6552 }
0x14c8   :  { %v6412_v61 = vpop.permute.xlu0 %6411  ;;  %6131 = vmatprep.subr.bf16.mxu1 %v6130_v59  ;;  %v3038_v24 = vmul.f32 %v6553_v60, %v7263_v4  ;;  %v6555_v50 = vpop.eup %6554 }
0x14c9   :  { %v6414_v19 = vunpack.i.h.bf16 %v6412_v61  ;;  %v6413_v1 = vunpack.i.l.bf16 %v6412_v61  ;;  %6133 = vmatpush3.bf16.msra.mxu1 %v6130_v59  ;;  %v3039_v6 = vmul.f32 %v6555_v50, %v7261_v3 }
0x14ca   :  { %5763 = vmatprep.mubr.msk.f32.mxu1 %vm546_vm7, %v3038_v24 }
0x14cb   :  { %v6134_v29 = vpack.c.bf16 %v6414_v19, %v6413_v1  ;;  %v6557_v63 = vpop.eup %6556  ;;  %v2525_v1 = vrot.slane %v7186_v11, %v6962_v5  ;;  %v5142_v11 = vld [vmem:[%s4973_s18] ss:$0 sm:$0xff] }
0x14cc   :  { %v6559_v21 = vpop.eup %6558  ;;  %v3040_v8 = vmul.f32 %v6557_v63, %v7271_v12  ;;  %v2531_v63 = vrot.slane %v7189_v30, %v6962_v5 }
0x14cd   :  { %6135 = vmatprep.subr.bf16.mxu1 %v6134_v29  ;;  %v3041_v4 = vmul.f32 %v6559_v21, %v7269_v10 }
0x14ce   :  { %6137 = vmatpush3.bf16.msra.mxu1 %v6134_v29 }
0x14cf   :  { %v6561_v51 = vpop.eup %6560  ;;  %5775 = vmatprep.subr.mxu1 %v2676_v37 }
0x14d0   :  { %v3043_v12 = vmul.f32 %v6561_v51, %v7277_v54  ;;  %v2675_v54 = vld [vmem:[%s4972_s6] sm:$0xff] }
0x14d1   :  { %5764 = vmatmul.mubr.msk.f32.vlgmr.msra.gmra.mrb[28].mxu1 %vm546_vm7, %v3039_v6 }
0x14d2   :  { %5766 = vmatprep.mubr.msk.f32.mxu1 %vm546_vm7, %v3040_v8  ;;  %5776 = vmatpush3.msra.mxu1 %v2676_v37 }
0x14d3   :  { %5780 = vmatprep.subr.mxu1 %v2675_v54 }
0x14d5   :  { %5767 = vmatmul.mubr.msk.f32.gmra.mrb[30].mxu1 %vm546_vm7, %v3041_v4 }
0x14f4   :  { %v3020_v9 = vpop.xlane.xlu1 %3019 }
0x14f5   :  { %6562 = vrcp.f32 %v3020_v9 }
0x14f8   :  { %v3026_v14 = vpop.xlane.xlu1 %3025 }
0x14f9   :  { %6564 = vrcp.f32 %v3026_v14 }
0x14fc   :  { %v3029_v15 = vpop.xlane.xlu1 %3028 }
0x14fd   :  { %6566 = vrcp.f32 %v3029_v15 }
0x14ff   :  { %v6563_v3 = vpop.eup %6562 }
0x1500   :  { %v3042_v57 = vmul.f32 %v6563_v3, %v6547_v20 }
0x1502   :  { %5769 = vmatprep.mubr.msk.f32.mxu1 %vm546_vm7, %v3042_v57 }
0x1503   :  { %v6565_v22 = vpop.eup %6564  ;;  %5770 = vmatmul.mubr.msk.f32.gmra.mrb[32].mxu1 %vm546_vm7, %v3043_v12 }
0x1504   :  { %v3044_v10 = vmul.f32 %v6565_v22, %v6549_v43 }
0x1506   :  { %5772 = vmatprep.mubr.msk.f32.mxu1 %vm546_vm7, %v3044_v10 }
0x1507   :  { %v6567_v33 = vpop.eup %6566 }
0x1508   :  { %v3045_v0 = vmul.f32 %v6567_v33, %v6551_v58 }
0x150a   :  { %5773 = vmatmul.mubr.msk.f32.gmra.mrb[34].mxu1 %vm546_vm7, %v3045_v0 }
0x1539   :  { %v5700_v13 = vpop.f32.mrb[26].mxu1 }
0x153a   :  { %v2485_v2 = vpop.f32.mrb[27].mxu1  ;;  %v2491_v31 = vadd.f32 %v5700_v13, %v5099_v32 }
0x153b   :  { %v2486_v7 = vadd.f32 %v5099_v32, %v2485_v2 }
0x153c   :  { %v2495_v35 = vadd.f32 %v2491_v31, %v7204_v27 }
0x153d   :  { %v2494_v34 = vadd.f32 %v2486_v7, %v7195_v17  ;;  %v2678_v17 = vld [vmem:[%s4972_s6 + $0x18] sm:$0xff]  ;;  %s4981_s6 = sld [smem:[%s7593_s0 + %s6663_s30]]  }
0x153e   :  { %v2499_v39 = vsel %vm280_vm4, %v2495_v35, 0.0 }
0x153f   :  { %v2496_v16 = vsel %vm280_vm4, %v2494_v34, 0.0 }
0x1540   :  { %2497 = vadd.xlane.f32.xlu1 %v2496_v16  ;;  %v3576_v16 = vld [vmem:[%s4974_s27 + $0x8] sm:$0xff] }
0x1544   :  { %2500 = vadd.xlane.f32.xlu1 %v2499_v39 }
0x15a4   :  { %v5765_v41 = vpop.f32.mrb[28].mxu1 }
0x15a5   :  { %v3160_v18 = vpop.f32.mrb[29].mxu1 }
0x15a8   :  { %v5768_v20 = vpop.f32.mrb[30].mxu1 }
0x15a9   :  { %v3170_v40 = vpop.f32.mrb[31].mxu1 }
0x15aa   :  { %5777 = vmatprep.mubr.msk.f32.mxu1 %vm392_vm5, %v3170_v40 }
0x15ab   :  { %5778 = vmatmul.mubr.msk.f32.vlgmr.msra.gmra.mrb[36].mxu1 %vm392_vm5, %v5768_v20 }
0x15ac   :  { %5782 = vmatprep.mubr.msk.f32.mxu1 %vm392_vm5, %v3160_v18  ;;  %5781 = vmatpush3.msra.mxu1 %v2675_v54 }
0x15ad   :  { %5785 = vmatprep.subr.mxu1 %v2677_v42 }
0x15b3   :  { %5783 = vmatmul.mubr.msk.f32.vlgmr.msra.gmra.mrb[36].mxu1 %vm392_vm5, %v5765_v41 }
0x15b4   :  { %5786 = vmatpush3.msra.mxu1 %v2677_v42 }
0x15b5   :  { %5790 = vmatprep.subr.mxu1 %v2678_v17 }
0x15cd   :  { %v2498_v27 = vpop.xlane.xlu1 %2497 }
0x15ce   :  { %v2502_v28 = vmul.f32 0.03125, %v2498_v27 }
0x15d0   :  { %v2504_v26 = vsub.f32 %v2494_v34, %v2502_v28 }
0x15d1   :  { %v2501_v43 = vpop.xlane.xlu1 %2500 }
0x15d2   :  { %v2503_v44 = vmul.f32 0.03125, %v2501_v43  ;;  %v2506_v58 = vmul.f32 %v2504_v26, %v2504_v26 }
0x15d4   :  { %v2505_v45 = vsub.f32 %v2495_v35, %v2503_v44  ;;  %v2508_v46 = vsel %vm280_vm4, %v2506_v58, 0.0  ;;  %v3577_v44 = vld [vmem:[%s4974_s27 + $0x10] sm:$0xff]  ;;  %v3578_v58 = vld [vmem:[%s4974_s27 + $0x18] sm:$0xff] }
0x15d5   :  { %2509 = vadd.xlane.f32.xlu1 %v2508_v46 }
0x15d6   :  { %v5771_v23 = vpop.f32.mrb[32].mxu1  ;;  %v2507_v47 = vmul.f32 %v2505_v45, %v2505_v45 }
0x15d7   :  { %v3180_v49 = vpop.f32.mrb[33].mxu1 }
0x15d8   :  { %5787 = vmatprep.mubr.msk.f32.mxu1 %vm392_vm5, %v3180_v49  ;;  %v2511_v52 = vsel %vm280_vm4, %v2507_v47, 0.0  ;;  %v7358_v47 = vld [vmem:[%s4975_s3] ss:$0 sm:$0xff]  ;;  %s4987_s3 = sld [smem:[%s7593_s0 + %s6667_s28]]  }
0x15d9   :  { %2512 = vadd.xlane.f32.xlu0 %v2511_v52  ;;  %5788 = vmatmul.mubr.msk.f32.vlgmr.msra.gmra.mrb[36].mxu1 %vm392_vm5, %v5771_v23  ;;  %v6142_v23 = vpack.c.bf16 %v3578_v58, %v3577_v44 }
0x15da   :  { %5791 = vmatpush3.msra.mxu1 %v2678_v17 }
0x15dd   :  { %v5774_v53 = vpop.f32.mrb[34].mxu1 }
0x15de   :  { %v3190_v38 = vpop.f32.mrb[35].mxu1 }
0x15df   :  { %5792 = vmatprep.mubr.msk.f32.mxu1 %vm392_vm5, %v3190_v38 }
0x15e1   :  { %5793 = vmatmul.mubr.msk.f32.vlgmr.msra.gmra.mrb[36].mxu1 %vm392_vm5, %v5774_v53 }
0x1662   :  { %v2510_v56 = vpop.xlane.xlu1 %2509 }
0x1663   :  { %v2514_v59 = vmul.f32 0.03125, %v2510_v56 }
0x1665   :  { %v2516_v60 = vadd.f32 1e-05, %v2514_v59 }
0x1666   :  { %v2513_v61 = vpop.xlane.xlu0 %2512 }
0x1667   :  { %6568 = vrsqrt.f32 %v2516_v60  ;;  %v2515_v24 = vmul.f32 0.03125, %v2513_v61 }
0x1669   :  { %v2517_v19 = vadd.f32 1e-05, %v2515_v24 }
0x166b   :  { %6570 = vrsqrt.f32 %v2517_v19 }
0x1671   :  { %v6569_v29 = vpop.eup %6568 }
0x1672   :  { %v2520_v50 = vmul.f32 %v6569_v29, %v2504_v26  ;;  %v5102_v29 = vld [vmem:[%s4968_s10] ss:$0 sm:$0xff]  ;;  %s4988_s10 = sld [smem:[%s7593_s0 + %s6668_s5]]  }
0x1674   :  { %v2526_v6 = vmul.f32 %v2525_v1, %v2520_v50 }
0x1675   :  { %v6571_v21 = vpop.eup %6570 }
0x1676   :  { %v2532_v8 = vadd.f32 %v2531_v63, %v2526_v6  ;;  %v2521_v4 = vmul.f32 %v6571_v21, %v2505_v45  ;;  %v6420_v45 = vpack.i.bf16 %v3578_v58, %v3577_v44 }
0x1678   :  { %v2536_v9 = vsel %vm280_vm4, %v2532_v8, 0.0  ;;  %v2527_v14 = vmul.f32 %v2525_v1, %v2521_v4 }
0x1679   :  { %2537 = vadd.xlane.f32.xlu1 %v2536_v9 }
0x167a   :  { %v2533_v15 = vadd.f32 %v2531_v63, %v2527_v14  ;;  %v5103_v63 = vld [vmem:[%s4969_s12] ss:$0 sm:$0xff] }
0x167c   :  { %v2539_v51 = vsel %vm280_vm4, %v2533_v15, 0.0 }
0x167d   :  { %2540 = vadd.xlane.f32.xlu1 %v2539_v51 }
0x16b4   :  { %v5794_v3 = vpop.f32.mrb[36].mxu1 }
0x16b5   :  { %v3516_v30 = vpop.f32.mrb[37].mxu1  ;;  %v3534_v57 = vadd.f32 %v5794_v3, %v5142_v11 }
0x16b6   :  { %v3533_v12 = vadd.f32 %v5142_v11, %v3516_v30 }
0x16b7   :  { %v3536_v10 = vadd.f32 %v3534_v57, %v7119_v25  ;;  %v3575_v25 = vld [vmem:[%s4974_s27] sm:$0xff]  ;;  %s4985_s27 = sld [smem:[%s7593_s0 + %s6666_s19]]  }
0x16b8   :  { %v3535_v22 = vadd.f32 %v3533_v12, %v7117_v62  ;;  %v6415_v39 = vpack.i.bf16 %v3576_v16, %v3575_v25  ;;  %v6138_v46 = vpack.c.bf16 %v3576_v16, %v3575_v25 }
0x16b9   :  { %v3540_v0 = vsel %vm280_vm4, %v3536_v10, 0.0 }
0x16ba   :  { %v3537_v33 = vsel %vm280_vm4, %v3535_v22, 0.0  ;;  %6139 = vmatprep.subr.bf16.mxu0 %v6138_v46 }
0x16bb   :  { %3538 = vadd.xlane.f32.xlu1 %v3537_v33  ;;  %6141 = vmatpush3.bf16.msra.mxu0 %v6138_v46 }
0x16bc   :  { %6143 = vmatprep.subr.bf16.mxu0 %v6142_v23 }
0x16bf   :  { %3541 = vadd.xlane.f32.xlu1 %v3540_v0  ;;  %6145 = vmatpush3.bf16.msra.mxu0 %v6142_v23  ;;  %v7375_v0 = vld [vmem:[%s4982_s17] sm:$0x7] }
0x1706   :  { %v2538_v37 = vpop.xlane.xlu1 %2537 }
0x1707   :  { %v2542_v54 = vmul.f32 0.03125, %v2538_v37 }
0x1709   :  { %v2544_v32 = vsub.f32 %v2532_v8, %v2542_v54 }
0x170a   :  { %v2541_v13 = vpop.xlane.xlu1 %2540 }
0x170b   :  { %v2543_v2 = vmul.f32 0.03125, %v2541_v13  ;;  %v2546_v31 = vmul.f32 %v2544_v32, %v2544_v32  ;;  %v7381_v13 = vld [vmem:[%s4983_s15] sm:$0x7] }
0x170d   :  { %v2545_v7 = vsub.f32 %v2533_v15, %v2543_v2  ;;  %v2548_v34 = vsel %vm280_vm4, %v2546_v31, 0.0 }
0x170e   :  { %2549 = vadd.xlane.f32.xlu1 %v2548_v34  ;;  %v3572_v34 = vrot.slane %v7381_v13, %v6919_v48 }
0x170f   :  { %v2547_v35 = vmul.f32 %v2545_v7, %v2545_v7 }
0x1711   :  { %v2551_v62 = vsel %vm280_vm4, %v2547_v35, 0.0 }
0x1712   :  { %2552 = vadd.xlane.f32.xlu1 %v2551_v62 }
0x1723   :  { %6416 = vrot.lane.b32.xlu1 %v6415_v39, %s6632_s25 }
0x1727   :  { %3696 = vrot.lane.b32.xlu1 %v7358_v47, %s6632_s25 }
0x1748   :  { %v3539_v41 = vpop.xlane.xlu1 %3538 }
0x1749   :  { %v3543_v18 = vmul.f32 0.03125, %v3539_v41 }
0x174b   :  { %v7344_v42 = vsub.f32 %v3535_v22, %v3543_v18 }
0x174c   :  { %v3542_v20 = vpop.xlane.xlu1 %3541 }
0x174d   :  { %v3544_v40 = vmul.f32 0.03125, %v3542_v20  ;;  %v3547_v26 = vmul.f32 %v7344_v42, %v7344_v42 }
0x174f   :  { %v7346_v17 = vsub.f32 %v3536_v10, %v3544_v40  ;;  %v3549_v43 = vsel %vm280_vm4, %v3547_v26, 0.0 }
0x1751   :  { %v3548_v27 = vmul.f32 %v7346_v17, %v7346_v17 }
0x1753   :  { %v3552_v28 = vsel %vm280_vm4, %v3548_v27, 0.0 }
0x1754   :  { %3553 = vadd.xlane.f32.xlu0 %v3552_v28 }
0x1758   :  { %3550 = vadd.xlane.f32.xlu0 %v3549_v43 }
0x176e   :  { %6421 = vrot.lane.b32.xlu0 %v6420_v45, %s6632_s25 }
0x179b   :  { %v2550_v49 = vpop.xlane.xlu1 %2549 }
0x179c   :  { %v2554_v52 = vmul.f32 0.03125, %v2550_v49 }
0x179e   :  { %v2556_v53 = vadd.f32 1e-05, %v2554_v52 }
0x179f   :  { %v2553_v38 = vpop.xlane.xlu1 %2552 }
0x17a0   :  { %6572 = vrsqrt.f32 %v2556_v53  ;;  %v2555_v56 = vmul.f32 0.03125, %v2553_v38 }
0x17a2   :  { %v2557_v59 = vadd.f32 1e-05, %v2555_v56 }
0x17a3   :  { %v6417_v60 = vpop.permute.xlu1 %6416 }
0x17a4   :  { %6574 = vrsqrt.f32 %v2557_v59  ;;  %v6419_v61 = vunpack.i.h.bf16 %v6417_v60  ;;  %v6418_v24 = vunpack.i.l.bf16 %v6417_v60 }
0x17a6   :  { %v6146_v19 = vpack.c.bf16 %v6419_v61, %v6418_v24 }
0x17a7   :  { %v3697_v16 = vpop.permute.xlu1 %3696 }
0x17a8   :  { %6147 = vmatprep.subr.bf16.mxu1 %v6146_v19 }
0x17a9   :  { %6149 = vmatpush3.bf16.msra.mxu1 %v6146_v19 }
0x17aa   :  { %v6573_v1 = vpop.eup %6572 }
0x17ab   :  { %v2560_v50 = vmul.f32 %v6573_v1, %v2544_v32  ;;  %v3566_v32 = vrot.slane %v7375_v0, %v6919_v48 }
0x17ad   :  { %v2568_v6 = vmul.f32 %v5102_v29, %v2560_v50 }
0x17ae   :  { %v6575_v21 = vpop.eup %6574 }
0x17af   :  { %v2561_v8 = vmul.f32 %v6575_v21, %v2545_v7  ;;  %v2576_v4 = vadd.f32 %v5103_v63, %v2568_v6 }
0x17b1   :  { %v2569_v9 = vmul.f32 %v5102_v29, %v2561_v8  ;;  %5814 = vmatprep.mubr.msk.f32.mxu1 %vm280_vm4, %v2576_v4 }
0x17b3   :  { %v2577_v14 = vadd.f32 %v5103_v63, %v2569_v9 }
0x17e1   :  { %v3554_v15 = vpop.xlane.xlu0 %3553 }
0x17e2   :  { %v3556_v51 = vmul.f32 0.03125, %v3554_v15 }
0x17e4   :  { %v3558_v11 = vadd.f32 1e-05, %v3556_v51 }
0x17e5   :  { %v3551_v3 = vpop.xlane.xlu0 %3550 }
0x17e6   :  { %6576 = vrsqrt.f32 %v3558_v11  ;;  %v3555_v30 = vmul.f32 0.03125, %v3551_v3 }
0x17e8   :  { %v3557_v57 = vadd.f32 1e-05, %v3555_v30 }
0x17e9   :  { %v6422_v12 = vpop.permute.xlu0 %6421 }
0x17ea   :  { %6578 = vrsqrt.f32 %v3557_v57  ;;  %v6424_v22 = vunpack.i.h.bf16 %v6422_v12  ;;  %v6423_v10 = vunpack.i.l.bf16 %v6422_v12 }
0x17ec   :  { %v6150_v33 = vpack.c.bf16 %v6424_v22, %v6423_v10 }
0x17ee   :  { %6151 = vmatprep.subr.bf16.mxu1 %v6150_v33 }
0x17ef   :  { %6153 = vmatpush3.bf16.msra.mxu1 %v6150_v33 }
0x17f0   :  { %v6577_v37 = vpop.eup %6576 }
0x17f1   :  { %v3562_v54 = vmul.f32 %v6577_v37, %v7346_v17 }
0x17f2   :  { %5815 = vmatmul.mubr.msk.f32.vlgmr.msra.gmra.mrb[38].mxu1 %vm280_vm4, %v2577_v14 }
0x17f3   :  { %v3568_v7 = vmul.f32 %v3566_v32, %v3562_v54 }
0x17f4   :  { %v6579_v2 = vpop.eup %6578 }
0x17f5   :  { %v3561_v31 = vmul.f32 %v6579_v2, %v7344_v42  ;;  %v7388_v25 = vadd.f32 %v3572_v34, %v3568_v7 }
0x17f7   :  { %v3567_v35 = vmul.f32 %v3566_v32, %v3561_v31 }
0x17f9   :  { %v7386_v62 = vadd.f32 %v3572_v34, %v3567_v35 }
0x17fb   :  { %5803 = vmatprep.mubr.msk.f32.mxu0 %vm280_vm4, %v7386_v62 }
0x17fc   :  { %5804 = vmatmul.mubr.msk.f32.vlgmr.msra.gmra.mrb[34].mxu0 %vm280_vm4, %v7388_v25 }
0x18c5   :  { %v5816_v39 = vpop.f32.mrb[38].mxu1 }
0x18c6   :  { %v3777_v41 = vadd.f32 %v5816_v39, %v3697_v16  ;;  %v3771_v18 = vpop.f32.mrb[39].mxu1 }
0x18c7   :  { %v3772_v20 = vadd.f32 %v3771_v18, %v3697_v16 }
0x18c9   :  { %v7394_v40 = vpack.i.bf16 %v3777_v41, %v3772_v20  ;;  %v6154_v42 = vpack.c.bf16 %v3777_v41, %v3772_v20 }
0x18cb   :  { %6426 = vrot.lane.b32.xlu1 %v7394_v40, %s6630_s23  ;;  %6156 = vmatprep.subr.msk.bf16.mxu0 %vm6741_vm6, %v6154_v42 }
0x18cc   :  { %6159 = vmatpush3.bf16.xpose.msk.msra.mxu0 %vm6741_vm6, %v6154_v42 }
0x18cf   :  { %v5805_v48 = vpop.f32.mrb[34].mxu0  ;;  %6431 = vrot.lane.b32.xlu1 %v7394_v40, %s6629_s22 }
0x18d0   :  { %v3677_v17 = vadd.f32 %v5805_v48, %v7358_v47  ;;  %v3671_v27 = vpop.f32.mrb[35].mxu0 }
0x18d1   :  { %v3672_v28 = vadd.f32 %v7358_v47, %v3671_v27 }
0x18d2   :  { %3784 = vrot.lane.b32.xlu0 %v3677_v17, %s6630_s23 }
0x18d3   :  { %5833 = vmatprep.mubr.msk.f32.mxu0 %vm392_vm5, %v3672_v28  ;;  %6436 = vrot.lane.b32.xlu1 %v7394_v40, %s6631_s24 }
0x18d6   :  { %3788 = vrot.lane.b32.xlu0 %v3677_v17, %s6629_s22 }
0x18d7   :  { %3782 = vrot.lane.b32.xlu1 %v3672_v28, %s6630_s23  ;;  %s4986_s23 = sld [smem:[%s7593_s0 + %s6664_s11]]  }
0x18da   :  { %3792 = vrot.lane.b32.xlu0 %v3677_v17, %s6631_s24 }
0x18db   :  { %3786 = vrot.lane.b32.xlu1 %v3672_v28, %s6629_s22  ;;  %s6657_s22 = smov 8  }
0x18dc   :  { %s7449_s16 = sld [smem:[%s7593_s0 + %s6657_s22]]  }
0x18df   :  { %3790 = vrot.lane.b32.xlu1 %v3672_v28, %s6631_s24  ;;  %s6665_s24 = smov 35  }
0x18e0   :  { %s4984_s18 = sld [smem:[%s7593_s0 + %s6665_s24]]  }
0x18e2   :  { %v3586_v36 = vld [vmem:[%s7449_s16 + $0x8] sm:$0xff]  ;;  %v3585_v50 = vld [vmem:[%s7449_s16] sm:$0xff]  ;;  %v3588_v4 = vld [vmem:[%s7449_s16 + $0x18] sm:$0xff] }
0x18e3   :  { %v3587_v15 = vld [vmem:[%s7449_s16 + $0x10] sm:$0xff]  ;;  %v3590_v22 = vld [vmem:[%s7449_s16 + $0x28] sm:$0xff]  ;;  %v3589_v37 = vld [vmem:[%s7449_s16 + $0x20] sm:$0xff] }
0x18e4   :  { %v3592_v35 = vld [vmem:[%s7449_s16 + $0x38] sm:$0xff]  ;;  %v3591_v41 = vld [vmem:[%s7449_s16 + $0x30] sm:$0xff] }
0x193d   :  { %v7415_v26 = vpop.permute.xlu1 %6426 }
0x193e   :  { %v6429_v43 = vunpack.i.h.bf16 %v7415_v26  ;;  %v6428_v44 = vunpack.i.l.bf16 %v7415_v26 }
0x1940   :  { %v6160_v58 = vpack.c.bf16 %v6429_v43, %v6428_v44 }
0x1941   :  { %v7419_v45 = vpop.permute.xlu1 %6431 }
0x1942   :  { %v6434_v46 = vunpack.i.h.bf16 %v7419_v45  ;;  %v6433_v23 = vunpack.i.l.bf16 %v7419_v45  ;;  %6162 = vmatprep.subr.msk.bf16.mxu0 %vm6741_vm6, %v6160_v58 }
0x1943   :  { %6165 = vmatpush3.bf16.xpose.msk.msra.mxu0 %vm6741_vm6, %v6160_v58 }
0x1944   :  { %v6166_v47 = vpack.c.bf16 %v6434_v46, %v6433_v23  ;;  %v3785_v59 = vpop.permute.xlu0 %3784 }
0x1945   :  { %v7427_v49 = vpop.permute.xlu1 %6436 }
0x1946   :  { %v6439_v52 = vunpack.i.h.bf16 %v7427_v49  ;;  %v6438_v53 = vunpack.i.l.bf16 %v7427_v49  ;;  %6168 = vmatprep.subr.msk.bf16.mxu0 %vm6741_vm6, %v6166_v47 }
0x1948   :  { %v6172_v38 = vpack.c.bf16 %v6439_v52, %v6438_v53  ;;  %v3789_v61 = vpop.permute.xlu0 %3788 }
0x1949   :  { %v3783_v56 = vpop.permute.xlu1 %3782 }
0x194b   :  { %6171 = vmatpush3.bf16.xpose.msk.msra.mxu0 %vm6741_vm6, %v6166_v47 }
0x194c   :  { %6174 = vmatprep.subr.msk.bf16.mxu0 %vm6741_vm6, %v6172_v38  ;;  %v3793_v19 = vpop.permute.xlu0 %3792 }
0x194d   :  { %v3787_v60 = vpop.permute.xlu1 %3786 }
0x1951   :  { %v3791_v24 = vpop.permute.xlu1 %3790 }
0x1953   :  { %6177 = vmatpush3.bf16.xpose.msk.msra.mxu0 %vm6741_vm6, %v6172_v38 }
0x195a   :  { %5834 = vmatmul.mubr.msk.f32.vlgmr.msra.gmra.mrb[36].mxu0 %vm392_vm5, %v3677_v17 }
0x195b   :  { %5836 = vmatprep.mubr.msk.f32.mxu0 %vm392_vm5, %v3783_v56 }
0x195e   :  { %5837 = vmatmul.mubr.msk.f32.gmra.mrb[38].mxu0 %vm392_vm5, %v3785_v59 }
0x195f   :  { %5839 = vmatprep.mubr.msk.f32.mxu0 %vm392_vm5, %v3787_v60 }
0x1962   :  { %5840 = vmatmul.mubr.msk.f32.gmra.mrb[40].mxu0 %vm392_vm5, %v3789_v61 }
0x1963   :  { %5842 = vmatprep.mubr.msk.f32.mxu0 %vm392_vm5, %v3791_v24 }
0x1966   :  { %5843 = vmatmul.mubr.msk.f32.gmra.mrb[42].mxu0 %vm392_vm5, %v3793_v19 }
0x1a2d   :  { %v5835_v1 = vpop.f32.mrb[36].mxu0 }
0x1a2e   :  { %v3946_v29 = vmul.f32 0.35355338, %v5835_v1  ;;  %v3906_v63 = vpop.f32.mrb[37].mxu0 }
0x1a2f   :  { %v3945_v6 = vmul.f32 0.35355338, %v3906_v63 }
0x1a30   :  { %v3954_v21 = vadd.f32 %v3946_v29, %v3586_v36 }
0x1a31   :  { %v3953_v8 = vadd.f32 %v3945_v6, %v3585_v50  ;;  %v5838_v9 = vpop.f32.mrb[38].mxu0 }
0x1a32   :  { %v3948_v14 = vmul.f32 0.35355338, %v5838_v9  ;;  %v3916_v51 = vpop.f32.mrb[39].mxu0  ;;  %v3964_v11 = vsel %vm546_vm7, %v3954_v21, -inf }
0x1a33   :  { %v3947_v3 = vmul.f32 0.35355338, %v3916_v51  ;;  %3965 = vmax.xlane.f32.xlu0 %v3964_v11  ;;  %v3961_v30 = vsel %vm546_vm7, %v3953_v8, -inf }
0x1a34   :  { %v3956_v57 = vadd.f32 %v3948_v14, %v3588_v4  ;;  %3962 = vmax.xlane.f32.xlu1 %v3961_v30 }
0x1a35   :  { %v3955_v12 = vadd.f32 %v3947_v3, %v3587_v15  ;;  %v5841_v10 = vpop.f32.mrb[40].mxu0 }
0x1a36   :  { %v3950_v33 = vmul.f32 0.35355338, %v5841_v10  ;;  %v3926_v54 = vpop.f32.mrb[41].mxu0  ;;  %v3970_v32 = vsel %vm546_vm7, %v3956_v57, -inf }
0x1a37   :  { %v3949_v2 = vmul.f32 0.35355338, %v3926_v54  ;;  %v3967_v31 = vsel %vm546_vm7, %v3955_v12, -inf }
0x1a38   :  { %v7461_v7 = vadd.f32 %v3950_v33, %v3590_v22  ;;  %3971 = vmax.xlane.f32.xlu1 %v3970_v32  ;;  %3968 = vmax.xlane.f32.xlu0 %v3967_v31 }
0x1a39   :  { %v3957_v34 = vadd.f32 %v3949_v2, %v3589_v37  ;;  %v5844_v16 = vpop.f32.mrb[42].mxu0 }
0x1a3a   :  { %v3952_v39 = vmul.f32 0.35355338, %v5844_v16  ;;  %v3936_v18 = vpop.f32.mrb[43].mxu0  ;;  %v3976_v20 = vsel %vm546_vm7, %v7461_v7, -inf }
0x1a3b   :  { %v3951_v42 = vmul.f32 0.35355338, %v3936_v18  ;;  %v3973_v48 = vsel %vm546_vm7, %v3957_v34, -inf }
0x1a3c   :  { %v7468_v17 = vadd.f32 %v3952_v39, %v3592_v35  ;;  %3977 = vmax.xlane.f32.xlu1 %v3976_v20  ;;  %3974 = vmax.xlane.f32.xlu0 %v3973_v48 }
0x1a3d   :  { %v7470_v27 = vadd.f32 %v3951_v42, %v3591_v41 }
0x1a3e   :  { %v3982_v28 = vsel %vm546_vm7, %v7468_v17, -inf }
0x1a3f   :  { %v3979_v43 = vsel %vm546_vm7, %v7470_v27, -inf }
0x1a40   :  { %3983 = vmax.xlane.f32.xlu1 %v3982_v28  ;;  %3980 = vmax.xlane.f32.xlu0 %v3979_v43 }
0x1a51   :  { %6446 = vrot.lane.b32.xlu1 %v7415_v26, %s6632_s25 }
0x1a56   :  { %6441 = vrot.lane.b32.xlu0 %v7394_v40, %s6632_s25 }
0x1ac0   :  { %v3966_v44 = vpop.xlane.xlu0 %3965 }
0x1ac1   :  { %v3986_v58 = vsub.f32 %v3954_v21, %v3966_v44  ;;  %v3963_v46 = vpop.xlane.xlu1 %3962 }
0x1ac2   :  { %v3985_v23 = vsub.f32 %v3953_v8, %v3963_v46 }
0x1ac3   :  { %v3995_v47 = vmul.f32 1.442695, %v3986_v58 }
0x1ac4   :  { %v3993_v52 = vmul.f32 1.442695, %v3985_v23 }
0x1ac5   :  { %6580 = vpow2.f32 %v3995_v47  ;;  %v3972_v53 = vpop.xlane.xlu1 %3971  ;;  %v3969_v38 = vpop.xlane.xlu0 %3968 }
0x1ac6   :  { %6582 = vpow2.f32 %v3993_v52  ;;  %v3988_v56 = vsub.f32 %v3956_v57, %v3972_v53  ;;  %v3987_v59 = vsub.f32 %v3955_v12, %v3969_v38 }
0x1ac8   :  { %v3999_v60 = vmul.f32 1.442695, %v3988_v56  ;;  %v3997_v61 = vmul.f32 1.442695, %v3987_v59 }
0x1ac9   :  { %v3978_v24 = vpop.xlane.xlu1 %3977  ;;  %v3975_v19 = vpop.xlane.xlu0 %3974 }
0x1aca   :  { %6584 = vpow2.f32 %v3999_v60  ;;  %v3989_v26 = vsub.f32 %v3957_v34, %v3975_v19  ;;  %v3990_v33 = vsub.f32 %v7461_v7, %v3978_v24 }
0x1acb   :  { %6586 = vpow2.f32 %v3997_v61 }
0x1acc   :  { %v4001_v40 = vmul.f32 1.442695, %v3989_v26  ;;  %v4003_v37 = vmul.f32 1.442695, %v3990_v33 }
0x1acd   :  { %v3984_v36 = vpop.xlane.xlu1 %3983  ;;  %v3981_v1 = vpop.xlane.xlu0 %3980 }
0x1ace   :  { %6588 = vpow2.f32 %v4001_v40  ;;  %v3991_v54 = vsub.f32 %v7470_v27, %v3981_v1  ;;  %v3992_v32 = vsub.f32 %v7468_v17, %v3984_v36 }
0x1acf   :  { %v7480_v29 = vpop.eup %6580  ;;  %6590 = vpow2.f32 %v4003_v37 }
0x1ad0   :  { %v6583_v50 = vpop.eup %6582  ;;  %v4012_v63 = vsel %vm546_vm7, %v7480_v29, 0.0  ;;  %v4005_v2 = vmul.f32 1.442695, %v3991_v54  ;;  %v4007_v31 = vmul.f32 1.442695, %v3992_v32 }
0x1ad1   :  { %4013 = vadd.xlane.f32.xlu1 %v4012_v63  ;;  %v6447_v6 = vpop.permute.xlu1 %6446  ;;  %v6442_v21 = vpop.permute.xlu0 %6441  ;;  %v4009_v8 = vsel %vm546_vm7, %v6583_v50, 0.0 }
0x1ad2   :  { %v6444_v4 = vunpack.i.h.bf16 %v6442_v21  ;;  %4010 = vadd.xlane.f32.xlu0 %v4009_v8  ;;  %v6449_v9 = vunpack.i.h.bf16 %v6447_v6  ;;  %v6448_v14 = vunpack.i.l.bf16 %v6447_v6  ;;  %v6443_v15 = vunpack.i.l.bf16 %v6442_v21 }
0x1ad3   :  { %6592 = vpow2.f32 %v4005_v2 }
0x1ad4   :  { %v7485_v51 = vpop.eup %6584  ;;  %v6178_v3 = vpack.c.bf16 %v6444_v4, %v6443_v15  ;;  %v6182_v12 = vpack.c.bf16 %v6449_v9, %v6448_v14  ;;  %6594 = vpow2.f32 %v4007_v31 }
0x1ad5   :  { %v7487_v11 = vpop.eup %6586  ;;  %v4018_v30 = vsel %vm546_vm7, %v7485_v51, 0.0 }
0x1ad6   :  { %4019 = vadd.xlane.f32.xlu1 %v4018_v30  ;;  %v4015_v57 = vsel %vm546_vm7, %v7487_v11, 0.0  ;;  %6179 = vmatprep.subr.bf16.mxu1 %v6178_v3 }
0x1ad7   :  { %4016 = vadd.xlane.f32.xlu0 %v4015_v57  ;;  %6181 = vmatpush3.bf16.msra.mxu1 %v6178_v3 }
0x1ad8   :  { %v6589_v22 = vpop.eup %6588  ;;  %6183 = vmatprep.subr.bf16.mxu1 %v6182_v12 }
0x1ad9   :  { %v4021_v10 = vsel %vm546_vm7, %v6589_v22, 0.0  ;;  %v6591_v34 = vpop.eup %6590 }
0x1ada   :  { %v4024_v35 = vsel %vm546_vm7, %v6591_v34, 0.0 }
0x1adb   :  { %4022 = vadd.xlane.f32.xlu0 %v4021_v10  ;;  %6185 = vmatpush3.bf16.msra.mxu1 %v6182_v12 }
0x1add   :  { %v6593_v16 = vpop.eup %6592 }
0x1ae7   :  { %6451 = vrot.lane.b32.xlu1 %v7419_v45, %s6632_s25  ;;  %v4027_v45 = vsel %vm546_vm7, %v6593_v16, 0.0 }
0x1af1   :  { %6456 = vrot.lane.b32.xlu0 %v7427_v49, %s6632_s25  ;;  %v6595_v49 = vpop.eup %6594  ;;  %s6658_s25 = smov 27  }
0x1af2   :  { %v4030_v7 = vsel %vm546_vm7, %v6595_v49, 0.0  ;;  %s4976_s20 = sld [smem:[%s7593_s0 + %s6658_s25]]  }
0x1af8   :  { %v3581_v21 = vld [vmem:[%s4976_s20 + $0x8] sm:$0xff]  ;;  %v3580_v8 = vld [vmem:[%s4976_s20] sm:$0xff] }
0x1b0b   :  { %4025 = vadd.xlane.f32.xlu1 %v4024_v35 }
0x1b0f   :  { %4028 = vadd.xlane.f32.xlu1 %v4027_v45 }
0x1b13   :  { %4031 = vadd.xlane.f32.xlu1 %v4030_v7 }
0x1b5e   :  { %v4014_v39 = vpop.xlane.xlu1 %4013 }
0x1b5f   :  { %v4011_v41 = vpop.xlane.xlu0 %4010 }
0x1b60   :  { %6596 = vrcp.f32 %v4011_v41 }
0x1b61   :  { %6598 = vrcp.f32 %v4014_v39 }
0x1b63   :  { %v4020_v18 = vpop.xlane.xlu1 %4019 }
0x1b64   :  { %v4017_v20 = vpop.xlane.xlu0 %4016 }
0x1b65   :  { %6600 = vrcp.f32 %v4017_v20 }
0x1b66   :  { %6602 = vrcp.f32 %v4020_v18 }
0x1b67   :  { %v6452_v42 = vpop.permute.xlu1 %6451 }
0x1b68   :  { %v6454_v48 = vunpack.i.h.bf16 %v6452_v42  ;;  %v6453_v17 = vunpack.i.l.bf16 %v6452_v42  ;;  %v4023_v27 = vpop.xlane.xlu0 %4022  ;;  %v4579_v42 = vld [vmem:[%s4978_s7 + $0x8] sm:$0xff] }
0x1b69   :  { %6604 = vrcp.f32 %v4023_v27  ;;  %v4581_v27 = vld [vmem:[%s4978_s7 + $0x18] sm:$0xff] }
0x1b6a   :  { %v6597_v28 = vpop.eup %6596  ;;  %v6186_v43 = vpack.c.bf16 %v6454_v48, %v6453_v17  ;;  %v4580_v17 = vld [vmem:[%s4978_s7 + $0x10] sm:$0xff] }
0x1b6b   :  { %v4041_v44 = vmul.f32 %v6597_v28, %v6583_v50  ;;  %v6599_v52 = vpop.eup %6598  ;;  %v6198_v28 = vpack.c.bf16 %v4581_v27, %v4580_v17 }
0x1b6c   :  { %v6457_v58 = vpop.permute.xlu0 %6456  ;;  %6187 = vmatprep.subr.bf16.mxu1 %v6186_v43  ;;  %v4042_v38 = vmul.f32 %v6599_v52, %v7480_v29 }
0x1b6d   :  { %v6459_v46 = vunpack.i.h.bf16 %v6457_v58  ;;  %v6458_v23 = vunpack.i.l.bf16 %v6457_v58  ;;  %6189 = vmatpush3.bf16.msra.mxu1 %v6186_v43  ;;  %5861 = vmatprep.mubr.msk.f32.mxu1 %vm546_vm7, %v4041_v44  ;;  %v4583_v43 = vld [vmem:[%s7541_s21] sm:$0xff]  ;;  %v4584_v44 = vld [vmem:[%s7541_s21 + $0x8] sm:$0xff] }
0x1b6e   :  { %v6202_v58 = vpack.c.bf16 %v4584_v44, %v4583_v43 }
0x1b6f   :  { %v6190_v47 = vpack.c.bf16 %v6459_v46, %v6458_v23  ;;  %v6601_v53 = vpop.eup %6600 }
0x1b70   :  { %v6603_v56 = vpop.eup %6602  ;;  %v4043_v59 = vmul.f32 %v6601_v53, %v7487_v11  ;;  %v3583_v11 = vld [vmem:[%s4976_s20 + $0x18] sm:$0xff] }
0x1b71   :  { %6191 = vmatprep.subr.bf16.mxu1 %v6190_v47  ;;  %v4044_v61 = vmul.f32 %v6603_v56, %v7485_v51  ;;  %v3582_v51 = vld [vmem:[%s4976_s20 + $0x10] sm:$0xff]  ;;  %v4569_v56 = vrot.slane %v7375_v0, %v6962_v5 }
0x1b72   :  { %6193 = vmatpush3.bf16.msra.mxu1 %v6190_v47 }
0x1b73   :  { %v6605_v60 = vpop.eup %6604  ;;  %5873 = vmatprep.subr.mxu1 %v3581_v21 }
0x1b74   :  { %v4045_v24 = vmul.f32 %v6605_v60, %v6589_v22  ;;  %v5180_v22 = vld [vmem:[%s4977_s29] ss:$0 sm:$0xff] }
0x1b75   :  { %5862 = vmatmul.mubr.msk.f32.vlgmr.msra.gmra.mrb[40].mxu1 %vm546_vm7, %v4042_v38 }
0x1b76   :  { %5864 = vmatprep.mubr.msk.f32.mxu1 %vm546_vm7, %v4043_v59  ;;  %5874 = vmatpush3.msra.mxu1 %v3581_v21  ;;  %v4588_v21 = vld [vmem:[%s7541_s21 + $0x28] sm:$0xff] }
0x1b77   :  { %5878 = vmatprep.subr.mxu1 %v3580_v8 }
0x1b79   :  { %5865 = vmatmul.mubr.msk.f32.gmra.mrb[42].mxu1 %vm546_vm7, %v4044_v61  ;;  %v4575_v61 = vrot.slane %v7381_v13, %v6962_v5 }
0x1b7a   :  { %5867 = vmatprep.mubr.msk.f32.mxu1 %vm546_vm7, %v4045_v24 }
0x1b98   :  { %v4026_v19 = vpop.xlane.xlu1 %4025 }
0x1b99   :  { %6606 = vrcp.f32 %v4026_v19 }
0x1b9c   :  { %v4029_v26 = vpop.xlane.xlu1 %4028 }
0x1b9d   :  { %6608 = vrcp.f32 %v4029_v26 }
0x1ba0   :  { %v4032_v40 = vpop.xlane.xlu1 %4031 }
0x1ba1   :  { %6610 = vrcp.f32 %v4032_v40 }
0x1ba3   :  { %v6607_v36 = vpop.eup %6606 }
0x1ba4   :  { %v4046_v1 = vmul.f32 %v6607_v36, %v6591_v34  ;;  %v4585_v36 = vld [vmem:[%s7541_s21 + $0x10] sm:$0xff] }
0x1ba6   :  { %5868 = vmatmul.mubr.msk.f32.gmra.mrb[44].mxu1 %vm546_vm7, %v4046_v1  ;;  %v4586_v1 = vld [vmem:[%s7541_s21 + $0x18] sm:$0xff] }
0x1ba7   :  { %v6609_v29 = vpop.eup %6608 }
0x1ba8   :  { %v4047_v50 = vmul.f32 %v6609_v29, %v6593_v16 }
0x1baa   :  { %5870 = vmatprep.mubr.msk.f32.mxu1 %vm546_vm7, %v4047_v50 }
0x1bab   :  { %v6611_v63 = vpop.eup %6610 }
0x1bac   :  { %v4048_v6 = vmul.f32 %v6611_v63, %v6595_v49  ;;  %v6206_v63 = vpack.c.bf16 %v4586_v1, %v4585_v36 }
0x1bae   :  { %5871 = vmatmul.mubr.msk.f32.gmra.mrb[46].mxu1 %vm546_vm7, %v4048_v6  ;;  %v4587_v6 = vld [vmem:[%s7541_s21 + $0x20] sm:$0xff] }
0x1baf   :  { %v6210_v5 = vpack.c.bf16 %v4588_v21, %v4587_v6  ;;  %v4854_v6 = vld [vmem:[%s4986_s23 + $0x10] sm:$0xff]  ;;  %v4855_v21 = vld [vmem:[%s4986_s23 + $0x18] sm:$0xff] }
0x1c48   :  { %v5863_v4 = vpop.f32.mrb[40].mxu1 }
0x1c49   :  { %v4163_v9 = vpop.f32.mrb[41].mxu1 }
0x1c4c   :  { %v5866_v14 = vpop.f32.mrb[42].mxu1 }
0x1c4d   :  { %v4173_v15 = vpop.f32.mrb[43].mxu1 }
0x1c4e   :  { %5875 = vmatprep.mubr.msk.f32.mxu1 %vm392_vm5, %v4173_v15 }
0x1c4f   :  { %5876 = vmatmul.mubr.msk.f32.vlgmr.msra.gmra.mrb[48].mxu1 %vm392_vm5, %v5866_v14  ;;  %v5181_v14 = vld [vmem:[%s4979_s26] ss:$0 sm:$0xff] }
0x1c50   :  { %5880 = vmatprep.mubr.msk.f32.mxu1 %vm392_vm5, %v4163_v9  ;;  %5879 = vmatpush3.msra.mxu1 %v3580_v8  ;;  %v4589_v8 = vld [vmem:[%s7541_s21 + $0x30] sm:$0xff] }
0x1c51   :  { %5883 = vmatprep.subr.mxu1 %v3582_v51 }
0x1c57   :  { %5881 = vmatmul.mubr.msk.f32.vlgmr.msra.gmra.mrb[48].mxu1 %vm392_vm5, %v5863_v4  ;;  %v4590_v4 = vld [vmem:[%s7541_s21 + $0x38] sm:$0xff] }
0x1c58   :  { %5884 = vmatpush3.msra.mxu1 %v3582_v51  ;;  %v6214_v9 = vpack.c.bf16 %v4590_v4, %v4589_v8 }
0x1c59   :  { %5888 = vmatprep.subr.mxu1 %v3583_v11 }
0x1c79   :  { %v5869_v3 = vpop.f32.mrb[44].mxu1 }
0x1c7a   :  { %v4183_v30 = vpop.f32.mrb[45].mxu1 }
0x1c7b   :  { %5885 = vmatprep.mubr.msk.f32.mxu1 %vm392_vm5, %v4183_v30 }
0x1c7c   :  { %5886 = vmatmul.mubr.msk.f32.vlgmr.msra.gmra.mrb[48].mxu1 %vm392_vm5, %v5869_v3 }
0x1c7d   :  { %5889 = vmatpush3.msra.mxu1 %v3583_v11 }
0x1c81   :  { %v5872_v57 = vpop.f32.mrb[46].mxu1 }
0x1c82   :  { %v4193_v12 = vpop.f32.mrb[47].mxu1 }
0x1c83   :  { %5890 = vmatprep.mubr.msk.f32.mxu1 %vm392_vm5, %v4193_v12  ;;  %v5184_v12 = vld [vmem:[%s4981_s6] ss:$0 sm:$0xff] }
0x1c84   :  { %5891 = vmatmul.mubr.msk.f32.vlgmr.msra.gmra.mrb[48].mxu1 %vm392_vm5, %v5872_v57 }
0x1d57   :  { %v5892_v10 = vpop.f32.mrb[48].mxu1 }
0x1d58   :  { %v4519_v33 = vpop.f32.mrb[49].mxu1  ;;  %v4537_v37 = vadd.f32 %v5892_v10, %v5180_v22 }
0x1d59   :  { %v4536_v54 = vadd.f32 %v5180_v22, %v4519_v33 }
0x1d5a   :  { %v4539_v2 = vadd.f32 %v4537_v37, %v7388_v25  ;;  %v4578_v25 = vld [vmem:[%s4978_s7] sm:$0xff] }
0x1d5b   :  { %v4538_v32 = vadd.f32 %v4536_v54, %v7386_v62  ;;  %v6194_v48 = vpack.c.bf16 %v4579_v42, %v4578_v25 }
0x1d5c   :  { %v4543_v34 = vsel %vm280_vm4, %v4539_v2, 0.0 }
0x1d5d   :  { %v4540_v31 = vsel %vm280_vm4, %v4538_v32, 0.0  ;;  %6195 = vmatprep.subr.bf16.mxu0 %v6194_v48 }
0x1d5e   :  { %4541 = vadd.xlane.f32.xlu1 %v4540_v31  ;;  %6197 = vmatpush3.bf16.msra.mxu0 %v6194_v48 }
0x1d5f   :  { %6199 = vmatprep.subr.bf16.mxu0 %v6198_v28 }
0x1d62   :  { %4544 = vadd.xlane.f32.xlu1 %v4543_v34  ;;  %6201 = vmatpush3.bf16.msra.mxu0 %v6198_v28  ;;  %v4798_v28 = vsub.s32 2, %v6916_v55 }
0x1d63   :  { %6203 = vmatprep.subr.bf16.mxu0 %v6202_v58 }
0x1d64   :  { %v4799_v43 = vrot.slane %v7375_v0, %v4798_v28 }
0x1deb   :  { %v4542_v35 = vpop.xlane.xlu1 %4541 }
0x1dec   :  { %v4546_v16 = vmul.f32 0.03125, %v4542_v35 }
0x1dee   :  { %v4548_v45 = vsub.f32 %v4538_v32, %v4546_v16 }
0x1def   :  { %v4545_v49 = vpop.xlane.xlu1 %4544 }
0x1df0   :  { %v4547_v7 = vmul.f32 0.03125, %v4545_v49  ;;  %v4550_v39 = vmul.f32 %v4548_v45, %v4548_v45 }
0x1df2   :  { %v4549_v41 = vsub.f32 %v4539_v2, %v4547_v7  ;;  %v4552_v18 = vsel %vm280_vm4, %v4550_v39, 0.0 }
0x1df3   :  { %4553 = vadd.xlane.f32.xlu0 %v4552_v18 }
0x1df4   :  { %v4551_v20 = vmul.f32 %v4549_v41, %v4549_v41 }
0x1df6   :  { %v4555_v62 = vsel %vm280_vm4, %v4551_v20, 0.0 }
0x1df7   :  { %4556 = vadd.xlane.f32.xlu1 %v4555_v62 }
0x1e80   :  { %v4554_v46 = vpop.xlane.xlu0 %4553 }
0x1e81   :  { %v4558_v23 = vmul.f32 0.03125, %v4554_v46  ;;  %v4805_v46 = vrot.slane %v7381_v13, %v4798_v28 }
0x1e83   :  { %v4560_v47 = vadd.f32 1e-05, %v4558_v23 }
0x1e84   :  { %v4557_v52 = vpop.xlane.xlu1 %4556 }
0x1e85   :  { %6612 = vrsqrt.f32 %v4560_v47  ;;  %v4559_v53 = vmul.f32 0.03125, %v4557_v52 }
0x1e87   :  { %v4561_v38 = vadd.f32 1e-05, %v4559_v53 }
0x1e89   :  { %6614 = vrsqrt.f32 %v4561_v38 }
0x1e8f   :  { %v6613_v59 = vpop.eup %6612 }
0x1e90   :  { %v4564_v60 = vmul.f32 %v6613_v59, %v4548_v45 }
0x1e92   :  { %v4570_v24 = vmul.f32 %v4569_v56, %v4564_v60 }
0x1e93   :  { %v6615_v19 = vpop.eup %6614 }
0x1e94   :  { %v4565_v26 = vmul.f32 %v6615_v19, %v4549_v41  ;;  %v4576_v40 = vadd.f32 %v4575_v61, %v4570_v24 }
0x1e96   :  { %v4571_v29 = vmul.f32 %v4569_v56, %v4565_v26  ;;  %5901 = vmatprep.mubr.msk.f32.mxu0 %vm280_vm4, %v4576_v40 }
0x1e98   :  { %v4577_v50 = vadd.f32 %v4575_v61, %v4571_v29  ;;  %v4852_v29 = vld [vmem:[%s4986_s23] sm:$0xff] }
0x1e9a   :  { %5902 = vmatmul.mubr.msk.f32.vlgmr.msra.gmra.mrb[44].mxu0 %vm280_vm4, %v4577_v50 }
0x1e9b   :  { %6205 = vmatpush3.bf16.msra.mxu0 %v6202_v58 }
0x1e9c   :  { %6207 = vmatprep.subr.bf16.mxu0 %v6206_v63 }
0x1e9f   :  { %6209 = vmatpush3.bf16.msra.mxu0 %v6206_v63 }
0x1ea0   :  { %6211 = vmatprep.subr.bf16.mxu0 %v6210_v5 }
0x1ea3   :  { %6213 = vmatpush3.bf16.msra.mxu0 %v6210_v5  ;;  %v6222_v5 = vpack.c.bf16 %v4855_v21, %v4854_v6 }
0x1ea4   :  { %6215 = vmatprep.subr.bf16.mxu0 %v6214_v9 }
0x1ea7   :  { %6217 = vmatpush3.bf16.msra.mxu0 %v6214_v9 }
0x1f6d   :  { %v5903_v15 = vpop.f32.mrb[44].mxu0 }
0x1f6e   :  { %v4676_v51 = vadd.f32 %v5903_v15, %v5181_v14  ;;  %v4670_v11 = vpop.f32.mrb[45].mxu0 }
0x1f6f   :  { %v4671_v3 = vadd.f32 %v5181_v14, %v4670_v11 }
0x1f70   :  { %v4680_v57 = vmax.f32 %v4676_v51, 0.0 }
0x1f71   :  { %v4679_v30 = vmax.f32 %v4671_v3, 0.0  ;;  %v5187_v3 = vld [vmem:[%s4984_s18] ss:$0 sm:$0xff] }
0x1f73   :  { %5920 = vmatprep.mubr.msk.f32.mxu0 %vm546_vm7, %v4679_v30 }
0x1f74   :  { %5921 = vmatmul.mubr.msk.f32.vlgmr.msra.gmra.mrb[46].mxu0 %vm546_vm7, %v4680_v57  ;;  %v5188_v57 = vld [vmem:[%s4985_s27] ss:$0 sm:$0xff] }
0x2047   :  { %v5922_v22 = vpop.f32.mrb[46].mxu0 }
0x2048   :  { %v4759_v10 = vpop.f32.mrb[47].mxu0  ;;  %v4765_v33 = vadd.f32 %v5922_v22, %v5184_v12 }
0x2049   :  { %v4760_v37 = vadd.f32 %v5184_v12, %v4759_v10 }
0x204a   :  { %v4769_v32 = vadd.f32 %v4765_v33, %v4577_v50  ;;  %v4853_v50 = vld [vmem:[%s4986_s23 + $0x8] sm:$0xff] }
0x204b   :  { %v4768_v54 = vadd.f32 %v4760_v37, %v4576_v40  ;;  %v6218_v63 = vpack.c.bf16 %v4853_v50, %v4852_v29 }
0x204c   :  { %v4773_v31 = vsel %vm280_vm4, %v4769_v32, 0.0 }
0x204d   :  { %v4770_v2 = vsel %vm280_vm4, %v4768_v54, 0.0  ;;  %6219 = vmatprep.subr.bf16.mxu1 %v6218_v63 }
0x204e   :  { %4771 = vadd.xlane.f32.xlu1 %v4770_v2  ;;  %6221 = vmatpush3.bf16.msra.mxu1 %v6218_v63 }
0x204f   :  { %6223 = vmatprep.subr.bf16.mxu1 %v6222_v5 }
0x2052   :  { %4774 = vadd.xlane.f32.xlu1 %v4773_v31  ;;  %6225 = vmatpush3.bf16.msra.mxu1 %v6222_v5 }
0x20db   :  { %v4772_v34 = vpop.xlane.xlu1 %4771 }
0x20dc   :  { %v4776_v35 = vmul.f32 0.03125, %v4772_v34 }
0x20de   :  { %v4778_v16 = vsub.f32 %v4768_v54, %v4776_v35 }
0x20df   :  { %v4775_v45 = vpop.xlane.xlu1 %4774 }
0x20e0   :  { %v4777_v49 = vmul.f32 0.03125, %v4775_v45  ;;  %v4780_v7 = vmul.f32 %v4778_v16, %v4778_v16 }
0x20e2   :  { %v4779_v39 = vsub.f32 %v4769_v32, %v4777_v49  ;;  %v4782_v41 = vsel %vm280_vm4, %v4780_v7, 0.0  ;;  %v5189_v32 = vld [vmem:[%s4987_s3] ss:$0 sm:$0xff] }
0x20e3   :  { %4783 = vadd.xlane.f32.xlu1 %v4782_v41 }
0x20e4   :  { %v4781_v18 = vmul.f32 %v4779_v39, %v4779_v39 }
0x20e6   :  { %v4785_v20 = vsel %vm280_vm4, %v4781_v18, 0.0 }
0x20e7   :  { %4786 = vadd.xlane.f32.xlu1 %v4785_v20 }
0x2170   :  { %v4784_v62 = vpop.xlane.xlu1 %4783 }
0x2171   :  { %v4788_v25 = vmul.f32 0.03125, %v4784_v62 }
0x2173   :  { %v4790_v42 = vadd.f32 1e-05, %v4788_v25 }
0x2174   :  { %v4787_v48 = vpop.xlane.xlu1 %4786 }
0x2175   :  { %6616 = vrsqrt.f32 %v4790_v42  ;;  %v4789_v17 = vmul.f32 0.03125, %v4787_v48 }
0x2177   :  { %v4791_v27 = vadd.f32 1e-05, %v4789_v17 }
0x2179   :  { %6618 = vrsqrt.f32 %v4791_v27 }
0x217f   :  { %v6617_v44 = vpop.eup %6616 }
0x2180   :  { %v4794_v58 = vmul.f32 %v6617_v44, %v4778_v16 }
0x2182   :  { %v4800_v23 = vmul.f32 %v4799_v43, %v4794_v58 }
0x2183   :  { %v6619_v47 = vpop.eup %6618 }
0x2184   :  { %v4806_v52 = vadd.f32 %v4805_v46, %v4800_v23  ;;  %v4795_v53 = vmul.f32 %v6619_v47, %v4779_v39 }
0x2186   :  { %v4810_v38 = vsel %vm280_vm4, %v4806_v52, 0.0  ;;  %v4801_v56 = vmul.f32 %v4799_v43, %v4795_v53 }
0x2187   :  { %4811 = vadd.xlane.f32.xlu1 %v4810_v38 }
0x2188   :  { %v4807_v59 = vadd.f32 %v4805_v46, %v4801_v56 }
0x218a   :  { %v4813_v60 = vsel %vm280_vm4, %v4807_v59, 0.0 }
0x218b   :  { %4814 = vadd.xlane.f32.xlu1 %v4813_v60 }
0x2214   :  { %v4812_v61 = vpop.xlane.xlu1 %4811 }
0x2215   :  { %v4816_v55 = vmul.f32 0.03125, %v4812_v61 }
0x2217   :  { %v4818_v24 = vsub.f32 %v4806_v52, %v4816_v55 }
0x2218   :  { %v4815_v0 = vpop.xlane.xlu1 %4814 }
0x2219   :  { %v4817_v19 = vmul.f32 0.03125, %v4815_v0  ;;  %v4820_v26 = vmul.f32 %v4818_v24, %v4818_v24 }
0x221b   :  { %v4819_v40 = vsub.f32 %v4807_v59, %v4817_v19  ;;  %v4822_v13 = vsel %vm280_vm4, %v4820_v26, 0.0 }
0x221c   :  { %4823 = vadd.xlane.f32.xlu1 %v4822_v13 }
0x221d   :  { %v4821_v36 = vmul.f32 %v4819_v40, %v4819_v40 }
0x221f   :  { %v4825_v1 = vsel %vm280_vm4, %v4821_v36, 0.0 }
0x2220   :  { %4826 = vadd.xlane.f32.xlu0 %v4825_v1 }
0x22a9   :  { %v4824_v8 = vpop.xlane.xlu1 %4823 }
0x22aa   :  { %v4828_v4 = vmul.f32 0.03125, %v4824_v8 }
0x22ac   :  { %v4830_v9 = vadd.f32 1e-05, %v4828_v4 }
0x22ad   :  { %v4827_v14 = vpop.xlane.xlu0 %4826 }
0x22ae   :  { %6620 = vrsqrt.f32 %v4830_v9  ;;  %v4829_v15 = vmul.f32 0.03125, %v4827_v14 }
0x22b0   :  { %v4831_v51 = vadd.f32 1e-05, %v4829_v15 }
0x22b2   :  { %6622 = vrsqrt.f32 %v4831_v51 }
0x22b8   :  { %v6621_v11 = vpop.eup %6620 }
0x22b9   :  { %v4834_v30 = vmul.f32 %v6621_v11, %v4818_v24 }
0x22bb   :  { %v4842_v12 = vmul.f32 %v5187_v3, %v4834_v30 }
0x22bc   :  { %v6623_v22 = vpop.eup %6622 }
0x22bd   :  { %v4835_v10 = vmul.f32 %v6623_v22, %v4819_v40  ;;  %v4850_v33 = vadd.f32 %v5188_v57, %v4842_v12 }
0x22bf   :  { %v4843_v37 = vmul.f32 %v5187_v3, %v4835_v10  ;;  %5931 = vmatprep.mubr.msk.f32.mxu1 %vm280_vm4, %v4850_v33 }
0x22c1   :  { %v4851_v54 = vadd.f32 %v5188_v57, %v4843_v37 }
0x22c3   :  { %5932 = vmatmul.mubr.msk.f32.vlgmr.msra.gmra.mrb[50].mxu1 %vm280_vm4, %v4851_v54 }
0x2396   :  { %v5933_v2 = vpop.f32.mrb[50].mxu1 }
0x2397   :  { %v4941_v31 = vadd.f32 %v5933_v2, %v5189_v32  ;;  %v4935_v34 = vpop.f32.mrb[51].mxu1 }
0x2398   :  { %v4936_v35 = vadd.f32 %v5189_v32, %v4935_v34 }
0x2399   :  { %4945 = vst [vmem:[%s4988_s10 + $0x8] sm:$0xff] %v4941_v31 }
0x239a   :  { %4944 = vst [vmem:[%s4988_s10] sm:$0xff] %v4936_v35 }

</bundles_post_ra>
